<compile_context>
chip_gen: v7x
topology: tpu7x:2x2x1
jax: 0.10.0
libtpu: 0.0.40
codegen_flags: <defaults>
</compile_context>

<pallas_src>
import functools

import numpy as np

import jax
import jax.numpy as jnp
from jax import lax
from jax.experimental import pallas as pl
from jax.experimental.pallas import tpu as pltpu


# Images per grid step.  Must be a multiple of 8 (sublane granularity) so every static
# sublane slice in the kernel stays aligned; 8..32 is the sweet spot per the review.
BIMG = 8


# ---------------------------------------------------------------------------
# Fused forward kernel (BIMG images per grid step)
# ---------------------------------------------------------------------------

def _fused_forward_kernel(x_ref, w1_ref, b1_ref, w2_ref, b2_ref,
                          wf1_ref, bf1_ref, wf2_ref, bf2_ref,
                          out_ref, pe_ref, po_ref, *, bimg):
    f32 = jnp.float32
    B = bimg

    def mm(a, b):
        # Default precision: single-pass bf16 MXU with f32 accumulation (perf review).
        return jnp.dot(a, b, preferred_element_type=f32)

    # ---- conv1 + bias + ReLU (dy taps folded: one matmul per row-parity group) -----
    # x_ref[0, r] is (6*B, 78); row j*B+img = [padded rows r+4j, r+4j+1, r+4j+2] of
    # image img concatenated.  Output columns are ordered (px*12+xo)*16 + co with
    # x = 2*xo + px, so pool-x is a max of the two 192-lane halves.
    b1 = b1_ref[...]                                         # (1, 384) -> broadcast

    def conv1_group(r):
        return jnp.maximum(b1 + mm(x_ref[0, r], w1_ref[...]), 0.0)   # (6B, 384)

    # Keep only two row groups live at a time (pool over y immediately).
    m_even = jnp.maximum(conv1_group(0), conv1_group(1))     # rows (j,img) -> yo = 2j
    p1_even = jnp.maximum(m_even[:, 0:192], m_even[:, 192:384])      # (6B, 192)
    m_odd = jnp.maximum(conv1_group(2), conv1_group(3))      # yo = 2j+1
    p1_odd = jnp.maximum(m_odd[:, 0:192], m_odd[:, 192:384])         # (6B, 192)
    # p1_* columns: xo*16 + c  -> exactly the conv2 input layout.

    # ---- stash pooled conv1 map into y-padded scratches -----------------------------
    # Scratch row layout: i*B + img, i = 0 is a zero pad row, i = 1..6 hold pooled rows
    # (pe: yo = 2(i-1), po: yo = 2(i-1)+1), i = 7 is a zero pad row.
    # Only the pad rows are (re)written with zeros each step; rows B:7B are fully
    # overwritten.  Kept per-step (not program_id-gated) so megacore sharding is safe.
    zpad = jnp.zeros((B, 192), f32)
    pe_ref[0:B, :] = zpad
    pe_ref[7 * B:8 * B, :] = zpad
    po_ref[0:B, :] = zpad
    po_ref[7 * B:8 * B, :] = zpad
    pe_ref[B:7 * B, :] = p1_even
    po_ref[B:7 * B, :] = p1_odd

    # ---- conv2 + bias + ReLU + pool (banded taps, static contiguous slices) ---------
    b2 = b2_ref[...]                                         # (1, 384)
    c2_even = jnp.maximum(
        b2 + mm(po_ref[0:6 * B, :], w2_ref[0])
           + mm(pe_ref[B:7 * B, :], w2_ref[1])
           + mm(po_ref[B:7 * B, :], w2_ref[2]), 0.0)         # rows (m,img): y2 = 2m
    c2_odd = jnp.maximum(
        b2 + mm(pe_ref[B:7 * B, :], w2_ref[0])
           + mm(po_ref[B:7 * B, :], w2_ref[1])
           + mm(pe_ref[2 * B:8 * B, :], w2_ref[2]), 0.0)     # y2 = 2m+1
    m2 = jnp.maximum(c2_even, c2_odd)                        # pool over y2 -> yo2 = m
    p2 = jnp.maximum(m2[:, 0:192], m2[:, 192:384])           # pool over x2, (6B, 192)
    # p2[y*B + img, xo2*32 + c] = pooled conv2 feature map of image img, row y.

    # ---- fc1 + ReLU + fc2 (lane padded) ---------------------------------------------
    h = bf1_ref[...]                                         # (1, 128) -> broadcast
    for y in range(6):
        h = h + mm(p2[y * B:(y + 1) * B, :], wf1_ref[y])     # (B, 128) per-y matmuls
    h = jnp.maximum(h, 0.0)
    logits = mm(h, wf2_ref[...]) + bf2_ref[...]              # (B, 128); cols 0..1 valid
    out_ref[...] = logits.astype(out_ref.dtype)              # single lane-dense store


# ---------------------------------------------------------------------------
# One-time (hoisted) weight repacking
# ---------------------------------------------------------------------------

def prepare_params(params):
    w1 = np.asarray(params["conv1_w"], np.float32)   # (16, 1, 3, 3)
    b1 = np.asarray(params["conv1_b"], np.float32)   # (16,)
    w2 = np.asarray(params["conv2_w"], np.float32)   # (32, 16, 3, 3)
    b2 = np.asarray(params["conv2_b"], np.float32)   # (32,)
    fw1 = np.asarray(params["fc1_w"], np.float32)    # (128, 1152)
    fb1 = np.asarray(params["fc1_b"], np.float32)    # (128,)
    fw2 = np.asarray(params["fc2_w"], np.float32)    # (2, 128)
    fb2 = np.asarray(params["fc2_b"], np.float32)    # (2,)

    # conv1 banded weights with the 3 dy taps concatenated along K:
    #   W1cat[dy*26 + xin, (px*12+xo)*16 + co] = w1[co, 0, dy, dx]  where x = 2*xo+px,
    #   xin = x + dx indexes the zero-padded 26-wide row.
    W1 = np.zeros((3, 26, 24 * 16), np.float32)
    for dy in range(3):
        for x in range(24):
            xo, px = divmod(x, 2)
            col0 = (px * 12 + xo) * 16
            for dx in range(3):
                W1[dy, x + dx, col0:col0 + 16] = w1[:, 0, dy, dx]
    W1cat = W1.reshape(78, 384)
    B1 = np.tile(b1, 24).reshape(1, 384)

    # conv2 banded weights over the un-padded x axis (x padding handled by the band
    # simply not reaching outside 0..11; the padded values would be zero anyway).
    W2 = np.zeros((3, 12 * 16, 12 * 32), np.float32)
    for dy in range(3):
        for x2 in range(12):
            xo2, px2 = divmod(x2, 2)
            col0 = (px2 * 6 + xo2) * 32
            for dx in range(3):
                xin = x2 + dx - 1
                if 0 <= xin < 12:
                    W2[dy, xin * 16:(xin + 1) * 16, col0:col0 + 32] = w2[:, :, dy, dx].T
    B2 = np.tile(b2, 12).reshape(1, 384)

    # fc1: pre-permute columns so the kernel's (yo2, xo2*32+c) layout feeds it directly
    # (PyTorch NCHW flatten order is c*36 + y*6 + x).
    WF1 = np.transpose(fw1.reshape(128, 32, 6, 6), (2, 3, 1, 0)).reshape(6, 192, 128)
    BF1 = fb1.reshape(1, 128)

    # fc2 padded to 128 output lanes so the kernel's only HBM store is lane-dense.
    WF2 = np.zeros((128, 128), np.float32)
    WF2[:, :2] = fw2.T
    BF2 = np.zeros((1, 128), np.float32)
    BF2[0, :2] = fb2

    packed = dict(w1=W1cat, b1=B1, w2=W2, b2=B2, wf1=WF1, bf1=BF1, wf2=WF2, bf2=BF2)
    return {k: jnp.asarray(v) for k, v in packed.items()}


# ---------------------------------------------------------------------------
# Input pre-packing + forward wrapper
# ---------------------------------------------------------------------------

# Padded-row indices needed per (parity r, output-row j, dy): r + 4*j + dy  (0..25).
_ROW_IDX = (np.arange(4)[:, None, None]
            + 4 * np.arange(6)[None, :, None]
            + np.arange(3)[None, None, :])                   # (4, 6, 3)


def _pack_conv1_input(x, bimg):
    """(Bp, 1, 24, 24) -> (Bp//bimg, 4, 6*bimg, 78): zero-pad to 26x26 and, for every
    (row parity r, output row j, image img), concatenate the three padded rows the dy
    taps need (78 = 3*26).  Row order inside a block is (j major, img minor)."""
    Bp = x.shape[0]
    nb = Bp // bimg
    xp = jnp.pad(x[:, 0, :, :], ((0, 0), (1, 1), (1, 1)))    # (Bp, 26, 26)
    xg = xp[:, _ROW_IDX, :]                                  # (Bp, 4, 6, 3, 26)
    xg = xg.reshape(Bp, 4, 6, 78)
    xg = xg.reshape(nb, bimg, 4, 6, 78).transpose(0, 2, 3, 1, 4)   # (nb, 4, 6, bimg, 78)
    return xg.reshape(nb, 4, 6 * bimg, 78)


@jax.jit
def eye_state_forward(x_nchw, prepped):
    B = x_nchw.shape[0]
    nb = -(-B // BIMG)
    Bp = nb * BIMG
    if Bp != B:                                              # pad batch to a multiple
        x_nchw = jnp.pad(x_nchw, ((0, Bp - B), (0, 0), (0, 0), (0, 0)))
    x_packed = _pack_conv1_input(x_nchw, BIMG)

    grid_spec = pltpu.PrefetchScalarGridSpec(
        num_scalar_prefetch=0,
        grid=(nb,),
        in_specs=[
            pl.BlockSpec((1, 4, 6 * BIMG, 78), lambda i: (i, 0, 0, 0)),  # packed image rows
            pl.BlockSpec((78, 384), lambda i: (0, 0)),        # conv1 banded weights (dy folded)
            pl.BlockSpec((1, 384), lambda i: (0, 0)),         # conv1 bias (tiled)
            pl.BlockSpec((3, 192, 384), lambda i: (0, 0, 0)),  # conv2 banded weights
            pl.BlockSpec((1, 384), lambda i: (0, 0)),         # conv2 bias (tiled)
            pl.BlockSpec((6, 192, 128), lambda i: (0, 0, 0)),  # fc1 (row-blocked, permuted)
            pl.BlockSpec((1, 128), lambda i: (0, 0)),          # fc1 bias
            pl.BlockSpec((128, 128), lambda i: (0, 0)),        # fc2 (lane padded)
            pl.BlockSpec((1, 128), lambda i: (0, 0)),          # fc2 bias (lane padded)
        ],
        out_specs=pl.BlockSpec((BIMG, 128), lambda i: (i, 0)),
        scratch_shapes=[pltpu.VMEM((8 * BIMG, 192), jnp.float32),   # pooled conv1, even yo
                        pltpu.VMEM((8 * BIMG, 192), jnp.float32)],  # pooled conv1, odd yo
    )
    out = pl.pallas_call(
        functools.partial(_fused_forward_kernel, bimg=BIMG),
        out_shape=jax.ShapeDtypeStruct((Bp, 128), jnp.float32),
        grid_spec=grid_spec,
        compiler_params=pltpu.CompilerParams(
            dimension_semantics=("parallel",)),
    )(x_packed, prepped["w1"], prepped["b1"], prepped["w2"], prepped["b2"],
      prepped["wf1"], prepped["bf1"], prepped["wf2"], prepped["bf2"])
    return out[:B, :2]


# ---------------------------------------------------------------------------
# Pure-JAX reference (default precision, for the correctness check)
# ---------------------------------------------------------------------------

def _pool_ref(y):
    B, C, H, W = y.shape
    return y.reshape(B, C, H // 2, 2, W // 2, 2).max(axis=(3, 5))


def reference_forward(x, params):
    dn = ("NCHW", "OIHW", "NCHW")
    y = lax.conv_general_dilated(x, params["conv1_w"], (1, 1), ((1, 1), (1, 1)),
                                 dimension_numbers=dn)
    y = _pool_ref(jnp.maximum(y + params["conv1_b"][None, :, None, None], 0.0))
    y = lax.conv_general_dilated(y, params["conv2_w"], (1, 1), ((1, 1), (1, 1)),
                                 dimension_numbers=dn)
    y = _pool_ref(jnp.maximum(y + params["conv2_b"][None, :, None, None], 0.0))
    flat = y.reshape(y.shape[0], 32 * 6 * 6)
    h = jnp.maximum(jnp.dot(flat, params["fc1_w"].T) + params["fc1_b"], 0.0)
    return jnp.dot(h, params["fc2_w"].T) + params["fc2_b"]


# ---------------------------------------------------------------------------
# Main
# ---------------------------------------------------------------------------

if __name__ == "__main__":
    key = jax.random.PRNGKey(0)
    ks = jax.random.split(key, 9)

    # Deterministic synthetic parameters (shapes from the module __init__).
    params = {
        "conv1_w": 0.1 * jax.random.normal(ks[0], (16, 1, 3, 3), jnp.float32),
        "conv1_b": 0.1 * jax.random.normal(ks[1], (16,), jnp.float32),
        "conv2_w": 0.05 * jax.random.normal(ks[2], (32, 16, 3, 3), jnp.float32),
        "conv2_b": 0.1 * jax.random.normal(ks[3], (32,), jnp.float32),
        "fc1_w": 0.02 * jax.random.normal(ks[4], (128, 32 * 6 * 6), jnp.float32),
        "fc1_b": 0.1 * jax.random.normal(ks[5], (128,), jnp.float32),
        "fc2_w": 0.05 * jax.random.normal(ks[6], (2, 128), jnp.float32),
        "fc2_b": 0.1 * jax.random.normal(ks[7], (2,), jnp.float32),
    }

    # Input: 1 channel, 24x24 (24 -> pool -> 12 -> pool -> 6 matches 32*6*6).
    # batch=10 exercises the pad-to-BIMG path and gives a 2-step grid (even length).
    x = jax.random.normal(ks[8], (10, 1, 24, 24), jnp.float32)

    prepped = prepare_params(params)     # one-time weight repacking (outside hot path)

    out = jax.block_until_ready(eye_state_forward(x, prepped))
    assert out.shape == (10, 2), out.shape

    ref = jax.block_until_ready(reference_forward(x, params))
    # Tolerance relaxed vs. the old HIGHEST-precision kernel: both sides now use
    # default (single-pass bf16) MXU precision, differing only in accumulation order.
    max_err = float(jnp.max(jnp.abs(out - ref)))
    assert jnp.allclose(out, ref, rtol=2e-2, atol=2e-2), (max_err, out, ref)

    print("KERNEL_OK")
</pallas_src>

<mosaic_0001>
module attributes {stable_mosaic.version = 11 : i64} {
  func.func @_fused_forward_kernel(%arg0: i32, %arg1: memref<1x4x48x78xf32, #tpu.memory_space<vmem>>, %arg2: memref<78x384xf32, #tpu.memory_space<vmem>>, %arg3: memref<1x384xf32, #tpu.memory_space<vmem>>, %arg4: memref<3x192x384xf32, #tpu.memory_space<vmem>>, %arg5: memref<1x384xf32, #tpu.memory_space<vmem>>, %arg6: memref<6x192x128xf32, #tpu.memory_space<vmem>>, %arg7: memref<1x128xf32, #tpu.memory_space<vmem>>, %arg8: memref<128x128xf32, #tpu.memory_space<vmem>>, %arg9: memref<1x128xf32, #tpu.memory_space<vmem>>, %arg10: memref<8x128xf32, #tpu.memory_space<vmem>>, %arg11: memref<64x192xf32, #tpu.memory_space<vmem>>, %arg12: memref<64x192xf32, #tpu.memory_space<vmem>>) attributes {dimension_semantics = [#tpu.dimension_semantics<parallel>], iteration_bounds = array<i64: 2>, scalar_prefetch = 0 : i64, scratch_operands = 2 : i64, tpu.core_type = #tpu.core_type<tc>, window_params = [{transform_indices = @transform_0, window_bounds = array<i64: 1, 4, 48, 78>}, {pipeline_mode = #tpu.pipeline_mode<synchronous>, transform_indices = @transform_1, window_bounds = array<i64: 78, 384>}, {pipeline_mode = #tpu.pipeline_mode<synchronous>, transform_indices = @transform_2, window_bounds = array<i64: 1, 384>}, {pipeline_mode = #tpu.pipeline_mode<synchronous>, transform_indices = @transform_3, window_bounds = array<i64: 3, 192, 384>}, {pipeline_mode = #tpu.pipeline_mode<synchronous>, transform_indices = @transform_4, window_bounds = array<i64: 1, 384>}, {pipeline_mode = #tpu.pipeline_mode<synchronous>, transform_indices = @transform_5, window_bounds = array<i64: 6, 192, 128>}, {pipeline_mode = #tpu.pipeline_mode<synchronous>, transform_indices = @transform_6, window_bounds = array<i64: 1, 128>}, {pipeline_mode = #tpu.pipeline_mode<synchronous>, transform_indices = @transform_7, window_bounds = array<i64: 128, 128>}, {pipeline_mode = #tpu.pipeline_mode<synchronous>, transform_indices = @transform_8, window_bounds = array<i64: 1, 128>}, {transform_indices = @transform_9, window_bounds = array<i64: 8, 128>}]} {
    %c0 = arith.constant 0 : index
    %c0_0 = arith.constant 0 : index
    %0 = vector.load %arg3[%c0, %c0_0] : memref<1x384xf32, #tpu.memory_space<vmem>>, vector<1x384xf32>
    %c0_1 = arith.constant 0 : index
    %c0_2 = arith.constant 0 : index
    %c0_3 = arith.constant 0 : index
    %c0_4 = arith.constant 0 : index
    %1 = vector.load %arg1[%c0_1, %c0_2, %c0_3, %c0_4] : memref<1x4x48x78xf32, #tpu.memory_space<vmem>>, vector<1x1x48x78xf32>
    %2 = vector.shape_cast %1 : vector<1x1x48x78xf32> to vector<48x78xf32>
    %c0_5 = arith.constant 0 : index
    %c0_6 = arith.constant 0 : index
    %3 = vector.load %arg2[%c0_5, %c0_6] : memref<78x384xf32, #tpu.memory_space<vmem>>, vector<78x384xf32>
    %cst = arith.constant dense<0.000000e+00> : vector<48x384xf32>
    %4 = tpu.matmul %2, %3, %cst {dimension_numbers = #tpu.dot_dimension_numbers<[1], [0], [0], [1], [0, 0, 1, 1], [], []>} : vector<48x78xf32>, vector<78x384xf32>, vector<48x384xf32> -> vector<48x384xf32>
    %5 = vector.broadcast %0 : vector<1x384xf32> to vector<48x384xf32>
    %6 = arith.addf %5, %4 : vector<48x384xf32>
    %cst_7 = arith.constant 0.000000e+00 : f32
    %7 = vector.broadcast %cst_7 : f32 to vector<48x384xf32>
    %8 = arith.maximumf %6, %7 : vector<48x384xf32>
    %c0_8 = arith.constant 0 : index
    %c1 = arith.constant 1 : index
    %c0_9 = arith.constant 0 : index
    %c0_10 = arith.constant 0 : index
    %9 = vector.load %arg1[%c0_8, %c1, %c0_9, %c0_10] : memref<1x4x48x78xf32, #tpu.memory_space<vmem>>, vector<1x1x48x78xf32>
    %10 = vector.shape_cast %9 : vector<1x1x48x78xf32> to vector<48x78xf32>
    %c0_11 = arith.constant 0 : index
    %c0_12 = arith.constant 0 : index
    %11 = vector.load %arg2[%c0_11, %c0_12] : memref<78x384xf32, #tpu.memory_space<vmem>>, vector<78x384xf32>
    %cst_13 = arith.constant dense<0.000000e+00> : vector<48x384xf32>
    %12 = tpu.matmul %10, %11, %cst_13 {dimension_numbers = #tpu.dot_dimension_numbers<[1], [0], [0], [1], [0, 0, 1, 1], [], []>} : vector<48x78xf32>, vector<78x384xf32>, vector<48x384xf32> -> vector<48x384xf32>
    %13 = vector.broadcast %0 : vector<1x384xf32> to vector<48x384xf32>
    %14 = arith.addf %13, %12 : vector<48x384xf32>
    %cst_14 = arith.constant 0.000000e+00 : f32
    %15 = vector.broadcast %cst_14 : f32 to vector<48x384xf32>
    %16 = arith.maximumf %14, %15 : vector<48x384xf32>
    %17 = arith.maximumf %8, %16 : vector<48x384xf32>
    %18 = vector.extract_strided_slice %17 {offsets = [0, 0], sizes = [48, 192], strides = [1, 1]} : vector<48x384xf32> to vector<48x192xf32>
    %19 = vector.extract_strided_slice %17 {offsets = [0, 192], sizes = [48, 192], strides = [1, 1]} : vector<48x384xf32> to vector<48x192xf32>
    %20 = arith.maximumf %18, %19 : vector<48x192xf32>
    %c0_15 = arith.constant 0 : index
    %c2 = arith.constant 2 : index
    %c0_16 = arith.constant 0 : index
    %c0_17 = arith.constant 0 : index
    %21 = vector.load %arg1[%c0_15, %c2, %c0_16, %c0_17] : memref<1x4x48x78xf32, #tpu.memory_space<vmem>>, vector<1x1x48x78xf32>
    %22 = vector.shape_cast %21 : vector<1x1x48x78xf32> to vector<48x78xf32>
    %c0_18 = arith.constant 0 : index
    %c0_19 = arith.constant 0 : index
    %23 = vector.load %arg2[%c0_18, %c0_19] : memref<78x384xf32, #tpu.memory_space<vmem>>, vector<78x384xf32>
    %cst_20 = arith.constant dense<0.000000e+00> : vector<48x384xf32>
    %24 = tpu.matmul %22, %23, %cst_20 {dimension_numbers = #tpu.dot_dimension_numbers<[1], [0], [0], [1], [0, 0, 1, 1], [], []>} : vector<48x78xf32>, vector<78x384xf32>, vector<48x384xf32> -> vector<48x384xf32>
    %25 = vector.broadcast %0 : vector<1x384xf32> to vector<48x384xf32>
    %26 = arith.addf %25, %24 : vector<48x384xf32>
    %cst_21 = arith.constant 0.000000e+00 : f32
    %27 = vector.broadcast %cst_21 : f32 to vector<48x384xf32>
    %28 = arith.maximumf %26, %27 : vector<48x384xf32>
    %c0_22 = arith.constant 0 : index
    %c3 = arith.constant 3 : index
    %c0_23 = arith.constant 0 : index
    %c0_24 = arith.constant 0 : index
    %29 = vector.load %arg1[%c0_22, %c3, %c0_23, %c0_24] : memref<1x4x48x78xf32, #tpu.memory_space<vmem>>, vector<1x1x48x78xf32>
    %30 = vector.shape_cast %29 : vector<1x1x48x78xf32> to vector<48x78xf32>
    %c0_25 = arith.constant 0 : index
    %c0_26 = arith.constant 0 : index
    %31 = vector.load %arg2[%c0_25, %c0_26] : memref<78x384xf32, #tpu.memory_space<vmem>>, vector<78x384xf32>
    %cst_27 = arith.constant dense<0.000000e+00> : vector<48x384xf32>
    %32 = tpu.matmul %30, %31, %cst_27 {dimension_numbers = #tpu.dot_dimension_numbers<[1], [0], [0], [1], [0, 0, 1, 1], [], []>} : vector<48x78xf32>, vector<78x384xf32>, vector<48x384xf32> -> vector<48x384xf32>
    %33 = vector.broadcast %0 : vector<1x384xf32> to vector<48x384xf32>
    %34 = arith.addf %33, %32 : vector<48x384xf32>
    %cst_28 = arith.constant 0.000000e+00 : f32
    %35 = vector.broadcast %cst_28 : f32 to vector<48x384xf32>
    %36 = arith.maximumf %34, %35 : vector<48x384xf32>
    %37 = arith.maximumf %28, %36 : vector<48x384xf32>
    %38 = vector.extract_strided_slice %37 {offsets = [0, 0], sizes = [48, 192], strides = [1, 1]} : vector<48x384xf32> to vector<48x192xf32>
    %39 = vector.extract_strided_slice %37 {offsets = [0, 192], sizes = [48, 192], strides = [1, 1]} : vector<48x384xf32> to vector<48x192xf32>
    %40 = arith.maximumf %38, %39 : vector<48x192xf32>
    %cst_29 = arith.constant 0.000000e+00 : f32
    %41 = vector.broadcast %cst_29 : f32 to vector<8x192xf32>
    %c0_30 = arith.constant 0 : index
    %c0_31 = arith.constant 0 : index
    %42 = vector.load %arg11[%c0_30, %c0_31] : memref<64x192xf32, #tpu.memory_space<vmem>>, vector<8x192xf32>
    tpu.vector_store %arg11[%c0_30, %c0_31], %41 {strides = array<i32>} : memref<64x192xf32, #tpu.memory_space<vmem>>, vector<8x192xf32>,
    %c56 = arith.constant 56 : index
    %c0_32 = arith.constant 0 : index
    %43 = vector.load %arg11[%c56, %c0_32] : memref<64x192xf32, #tpu.memory_space<vmem>>, vector<8x192xf32>
    tpu.vector_store %arg11[%c56, %c0_32], %41 {strides = array<i32>} : memref<64x192xf32, #tpu.memory_space<vmem>>, vector<8x192xf32>,
    %c0_33 = arith.constant 0 : index
    %c0_34 = arith.constant 0 : index
    %44 = vector.load %arg12[%c0_33, %c0_34] : memref<64x192xf32, #tpu.memory_space<vmem>>, vector<8x192xf32>
    tpu.vector_store %arg12[%c0_33, %c0_34], %41 {strides = array<i32>} : memref<64x192xf32, #tpu.memory_space<vmem>>, vector<8x192xf32>,
    %c56_35 = arith.constant 56 : index
    %c0_36 = arith.constant 0 : index
    %45 = vector.load %arg12[%c56_35, %c0_36] : memref<64x192xf32, #tpu.memory_space<vmem>>, vector<8x192xf32>
    tpu.vector_store %arg12[%c56_35, %c0_36], %41 {strides = array<i32>} : memref<64x192xf32, #tpu.memory_space<vmem>>, vector<8x192xf32>,
    %c8 = arith.constant 8 : index
    %c0_37 = arith.constant 0 : index
    %46 = vector.load %arg11[%c8, %c0_37] : memref<64x192xf32, #tpu.memory_space<vmem>>, vector<48x192xf32>
    tpu.vector_store %arg11[%c8, %c0_37], %20 {strides = array<i32>} : memref<64x192xf32, #tpu.memory_space<vmem>>, vector<48x192xf32>,
    %c8_38 = arith.constant 8 : index
    %c0_39 = arith.constant 0 : index
    %47 = vector.load %arg12[%c8_38, %c0_39] : memref<64x192xf32, #tpu.memory_space<vmem>>, vector<48x192xf32>
    tpu.vector_store %arg12[%c8_38, %c0_39], %40 {strides = array<i32>} : memref<64x192xf32, #tpu.memory_space<vmem>>, vector<48x192xf32>,
    %c0_40 = arith.constant 0 : index
    %c0_41 = arith.constant 0 : index
    %48 = vector.load %arg5[%c0_40, %c0_41] : memref<1x384xf32, #tpu.memory_space<vmem>>, vector<1x384xf32>
    %c0_42 = arith.constant 0 : index
    %c0_43 = arith.constant 0 : index
    %49 = vector.load %arg12[%c0_42, %c0_43] : memref<64x192xf32, #tpu.memory_space<vmem>>, vector<48x192xf32>
    %c0_44 = arith.constant 0 : index
    %c0_45 = arith.constant 0 : index
    %c0_46 = arith.constant 0 : index
    %50 = vector.load %arg4[%c0_44, %c0_45, %c0_46] : memref<3x192x384xf32, #tpu.memory_space<vmem>>, vector<1x192x384xf32>
    %51 = vector.shape_cast %50 : vector<1x192x384xf32> to vector<192x384xf32>
    %cst_47 = arith.constant dense<0.000000e+00> : vector<48x384xf32>
    %52 = tpu.matmul %49, %51, %cst_47 {dimension_numbers = #tpu.dot_dimension_numbers<[1], [0], [0], [1], [0, 0, 1, 1], [], []>} : vector<48x192xf32>, vector<192x384xf32>, vector<48x384xf32> -> vector<48x384xf32>
    %53 = vector.broadcast %48 : vector<1x384xf32> to vector<48x384xf32>
    %54 = arith.addf %53, %52 : vector<48x384xf32>
    %c8_48 = arith.constant 8 : index
    %c0_49 = arith.constant 0 : index
    %55 = vector.load %arg11[%c8_48, %c0_49] : memref<64x192xf32, #tpu.memory_space<vmem>>, vector<48x192xf32>
    %c1_50 = arith.constant 1 : index
    %c0_51 = arith.constant 0 : index
    %c0_52 = arith.constant 0 : index
    %56 = vector.load %arg4[%c1_50, %c0_51, %c0_52] : memref<3x192x384xf32, #tpu.memory_space<vmem>>, vector<1x192x384xf32>
    %57 = vector.shape_cast %56 : vector<1x192x384xf32> to vector<192x384xf32>
    %cst_53 = arith.constant dense<0.000000e+00> : vector<48x384xf32>
    %58 = tpu.matmul %55, %57, %cst_53 {dimension_numbers = #tpu.dot_dimension_numbers<[1], [0], [0], [1], [0, 0, 1, 1], [], []>} : vector<48x192xf32>, vector<192x384xf32>, vector<48x384xf32> -> vector<48x384xf32>
    %59 = arith.addf %54, %58 : vector<48x384xf32>
    %c8_54 = arith.constant 8 : index
    %c0_55 = arith.constant 0 : index
    %60 = vector.load %arg12[%c8_54, %c0_55] : memref<64x192xf32, #tpu.memory_space<vmem>>, vector<48x192xf32>
    %c2_56 = arith.constant 2 : index
    %c0_57 = arith.constant 0 : index
    %c0_58 = arith.constant 0 : index
    %61 = vector.load %arg4[%c2_56, %c0_57, %c0_58] : memref<3x192x384xf32, #tpu.memory_space<vmem>>, vector<1x192x384xf32>
    %62 = vector.shape_cast %61 : vector<1x192x384xf32> to vector<192x384xf32>
    %cst_59 = arith.constant dense<0.000000e+00> : vector<48x384xf32>
    %63 = tpu.matmul %60, %62, %cst_59 {dimension_numbers = #tpu.dot_dimension_numbers<[1], [0], [0], [1], [0, 0, 1, 1], [], []>} : vector<48x192xf32>, vector<192x384xf32>, vector<48x384xf32> -> vector<48x384xf32>
    %64 = arith.addf %59, %63 : vector<48x384xf32>
    %cst_60 = arith.constant 0.000000e+00 : f32
    %65 = vector.broadcast %cst_60 : f32 to vector<48x384xf32>
    %66 = arith.maximumf %64, %65 : vector<48x384xf32>
    %c8_61 = arith.constant 8 : index
    %c0_62 = arith.constant 0 : index
    %67 = vector.load %arg11[%c8_61, %c0_62] : memref<64x192xf32, #tpu.memory_space<vmem>>, vector<48x192xf32>
    %c0_63 = arith.constant 0 : index
    %c0_64 = arith.constant 0 : index
    %c0_65 = arith.constant 0 : index
    %68 = vector.load %arg4[%c0_63, %c0_64, %c0_65] : memref<3x192x384xf32, #tpu.memory_space<vmem>>, vector<1x192x384xf32>
    %69 = vector.shape_cast %68 : vector<1x192x384xf32> to vector<192x384xf32>
    %cst_66 = arith.constant dense<0.000000e+00> : vector<48x384xf32>
    %70 = tpu.matmul %67, %69, %cst_66 {dimension_numbers = #tpu.dot_dimension_numbers<[1], [0], [0], [1], [0, 0, 1, 1], [], []>} : vector<48x192xf32>, vector<192x384xf32>, vector<48x384xf32> -> vector<48x384xf32>
    %71 = vector.broadcast %48 : vector<1x384xf32> to vector<48x384xf32>
    %72 = arith.addf %71, %70 : vector<48x384xf32>
    %c8_67 = arith.constant 8 : index
    %c0_68 = arith.constant 0 : index
    %73 = vector.load %arg12[%c8_67, %c0_68] : memref<64x192xf32, #tpu.memory_space<vmem>>, vector<48x192xf32>
    %c1_69 = arith.constant 1 : index
    %c0_70 = arith.constant 0 : index
    %c0_71 = arith.constant 0 : index
    %74 = vector.load %arg4[%c1_69, %c0_70, %c0_71] : memref<3x192x384xf32, #tpu.memory_space<vmem>>, vector<1x192x384xf32>
    %75 = vector.shape_cast %74 : vector<1x192x384xf32> to vector<192x384xf32>
    %cst_72 = arith.constant dense<0.000000e+00> : vector<48x384xf32>
    %76 = tpu.matmul %73, %75, %cst_72 {dimension_numbers = #tpu.dot_dimension_numbers<[1], [0], [0], [1], [0, 0, 1, 1], [], []>} : vector<48x192xf32>, vector<192x384xf32>, vector<48x384xf32> -> vector<48x384xf32>
    %77 = arith.addf %72, %76 : vector<48x384xf32>
    %c16 = arith.constant 16 : index
    %c0_73 = arith.constant 0 : index
    %78 = vector.load %arg11[%c16, %c0_73] : memref<64x192xf32, #tpu.memory_space<vmem>>, vector<48x192xf32>
    %c2_74 = arith.constant 2 : index
    %c0_75 = arith.constant 0 : index
    %c0_76 = arith.constant 0 : index
    %79 = vector.load %arg4[%c2_74, %c0_75, %c0_76] : memref<3x192x384xf32, #tpu.memory_space<vmem>>, vector<1x192x384xf32>
    %80 = vector.shape_cast %79 : vector<1x192x384xf32> to vector<192x384xf32>
    %cst_77 = arith.constant dense<0.000000e+00> : vector<48x384xf32>
    %81 = tpu.matmul %78, %80, %cst_77 {dimension_numbers = #tpu.dot_dimension_numbers<[1], [0], [0], [1], [0, 0, 1, 1], [], []>} : vector<48x192xf32>, vector<192x384xf32>, vector<48x384xf32> -> vector<48x384xf32>
    %82 = arith.addf %77, %81 : vector<48x384xf32>
    %cst_78 = arith.constant 0.000000e+00 : f32
    %83 = vector.broadcast %cst_78 : f32 to vector<48x384xf32>
    %84 = arith.maximumf %82, %83 : vector<48x384xf32>
    %85 = arith.maximumf %66, %84 : vector<48x384xf32>
    %86 = vector.extract_strided_slice %85 {offsets = [0, 0], sizes = [48, 192], strides = [1, 1]} : vector<48x384xf32> to vector<48x192xf32>
    %87 = vector.extract_strided_slice %85 {offsets = [0, 192], sizes = [48, 192], strides = [1, 1]} : vector<48x384xf32> to vector<48x192xf32>
    %88 = arith.maximumf %86, %87 : vector<48x192xf32>
    %c0_79 = arith.constant 0 : index
    %c0_80 = arith.constant 0 : index
    %89 = vector.load %arg7[%c0_79, %c0_80] : memref<1x128xf32, #tpu.memory_space<vmem>>, vector<1x128xf32>
    %90 = vector.extract_strided_slice %88 {offsets = [0, 0], sizes = [8, 192], strides = [1, 1]} : vector<48x192xf32> to vector<8x192xf32>
    %c0_81 = arith.constant 0 : index
    %c0_82 = arith.constant 0 : index
    %c0_83 = arith.constant 0 : index
    %91 = vector.load %arg6[%c0_81, %c0_82, %c0_83] : memref<6x192x128xf32, #tpu.memory_space<vmem>>, vector<1x192x128xf32>
    %92 = vector.shape_cast %91 : vector<1x192x128xf32> to vector<192x128xf32>
    %cst_84 = arith.constant dense<0.000000e+00> : vector<8x128xf32>
    %93 = tpu.matmul %90, %92, %cst_84 {dimension_numbers = #tpu.dot_dimension_numbers<[1], [0], [0], [1], [0, 0, 1, 1], [], []>} : vector<8x192xf32>, vector<192x128xf32>, vector<8x128xf32> -> vector<8x128xf32>
    %94 = vector.broadcast %89 : vector<1x128xf32> to vector<8x128xf32>
    %95 = arith.addf %94, %93 : vector<8x128xf32>
    %96 = vector.extract_strided_slice %88 {offsets = [8, 0], sizes = [8, 192], strides = [1, 1]} : vector<48x192xf32> to vector<8x192xf32>
    %c1_85 = arith.constant 1 : index
    %c0_86 = arith.constant 0 : index
    %c0_87 = arith.constant 0 : index
    %97 = vector.load %arg6[%c1_85, %c0_86, %c0_87] : memref<6x192x128xf32, #tpu.memory_space<vmem>>, vector<1x192x128xf32>
    %98 = vector.shape_cast %97 : vector<1x192x128xf32> to vector<192x128xf32>
    %cst_88 = arith.constant dense<0.000000e+00> : vector<8x128xf32>
    %99 = tpu.matmul %96, %98, %cst_88 {dimension_numbers = #tpu.dot_dimension_numbers<[1], [0], [0], [1], [0, 0, 1, 1], [], []>} : vector<8x192xf32>, vector<192x128xf32>, vector<8x128xf32> -> vector<8x128xf32>
    %100 = arith.addf %95, %99 : vector<8x128xf32>
    %101 = vector.extract_strided_slice %88 {offsets = [16, 0], sizes = [8, 192], strides = [1, 1]} : vector<48x192xf32> to vector<8x192xf32>
    %c2_89 = arith.constant 2 : index
    %c0_90 = arith.constant 0 : index
    %c0_91 = arith.constant 0 : index
    %102 = vector.load %arg6[%c2_89, %c0_90, %c0_91] : memref<6x192x128xf32, #tpu.memory_space<vmem>>, vector<1x192x128xf32>
    %103 = vector.shape_cast %102 : vector<1x192x128xf32> to vector<192x128xf32>
    %cst_92 = arith.constant dense<0.000000e+00> : vector<8x128xf32>
    %104 = tpu.matmul %101, %103, %cst_92 {dimension_numbers = #tpu.dot_dimension_numbers<[1], [0], [0], [1], [0, 0, 1, 1], [], []>} : vector<8x192xf32>, vector<192x128xf32>, vector<8x128xf32> -> vector<8x128xf32>
    %105 = arith.addf %100, %104 : vector<8x128xf32>
    %106 = vector.extract_strided_slice %88 {offsets = [24, 0], sizes = [8, 192], strides = [1, 1]} : vector<48x192xf32> to vector<8x192xf32>
    %c3_93 = arith.constant 3 : index
    %c0_94 = arith.constant 0 : index
    %c0_95 = arith.constant 0 : index
    %107 = vector.load %arg6[%c3_93, %c0_94, %c0_95] : memref<6x192x128xf32, #tpu.memory_space<vmem>>, vector<1x192x128xf32>
    %108 = vector.shape_cast %107 : vector<1x192x128xf32> to vector<192x128xf32>
    %cst_96 = arith.constant dense<0.000000e+00> : vector<8x128xf32>
    %109 = tpu.matmul %106, %108, %cst_96 {dimension_numbers = #tpu.dot_dimension_numbers<[1], [0], [0], [1], [0, 0, 1, 1], [], []>} : vector<8x192xf32>, vector<192x128xf32>, vector<8x128xf32> -> vector<8x128xf32>
    %110 = arith.addf %105, %109 : vector<8x128xf32>
    %111 = vector.extract_strided_slice %88 {offsets = [32, 0], sizes = [8, 192], strides = [1, 1]} : vector<48x192xf32> to vector<8x192xf32>
    %c4 = arith.constant 4 : index
    %c0_97 = arith.constant 0 : index
    %c0_98 = arith.constant 0 : index
    %112 = vector.load %arg6[%c4, %c0_97, %c0_98] : memref<6x192x128xf32, #tpu.memory_space<vmem>>, vector<1x192x128xf32>
    %113 = vector.shape_cast %112 : vector<1x192x128xf32> to vector<192x128xf32>
    %cst_99 = arith.constant dense<0.000000e+00> : vector<8x128xf32>
    %114 = tpu.matmul %111, %113, %cst_99 {dimension_numbers = #tpu.dot_dimension_numbers<[1], [0], [0], [1], [0, 0, 1, 1], [], []>} : vector<8x192xf32>, vector<192x128xf32>, vector<8x128xf32> -> vector<8x128xf32>
    %115 = arith.addf %110, %114 : vector<8x128xf32>
    %116 = vector.extract_strided_slice %88 {offsets = [40, 0], sizes = [8, 192], strides = [1, 1]} : vector<48x192xf32> to vector<8x192xf32>
    %c5 = arith.constant 5 : index
    %c0_100 = arith.constant 0 : index
    %c0_101 = arith.constant 0 : index
    %117 = vector.load %arg6[%c5, %c0_100, %c0_101] : memref<6x192x128xf32, #tpu.memory_space<vmem>>, vector<1x192x128xf32>
    %118 = vector.shape_cast %117 : vector<1x192x128xf32> to vector<192x128xf32>
    %cst_102 = arith.constant dense<0.000000e+00> : vector<8x128xf32>
    %119 = tpu.matmul %116, %118, %cst_102 {dimension_numbers = #tpu.dot_dimension_numbers<[1], [0], [0], [1], [0, 0, 1, 1], [], []>} : vector<8x192xf32>, vector<192x128xf32>, vector<8x128xf32> -> vector<8x128xf32>
    %120 = arith.addf %115, %119 : vector<8x128xf32>
    %cst_103 = arith.constant 0.000000e+00 : f32
    %121 = vector.broadcast %cst_103 : f32 to vector<8x128xf32>
    %122 = arith.maximumf %120, %121 : vector<8x128xf32>
    %c0_104 = arith.constant 0 : index
    %c0_105 = arith.constant 0 : index
    %123 = vector.load %arg8[%c0_104, %c0_105] : memref<128x128xf32, #tpu.memory_space<vmem>>, vector<128x128xf32>
    %cst_106 = arith.constant dense<0.000000e+00> : vector<8x128xf32>
    %124 = tpu.matmul %122, %123, %cst_106 {dimension_numbers = #tpu.dot_dimension_numbers<[1], [0], [0], [1], [0, 0, 1, 1], [], []>} : vector<8x128xf32>, vector<128x128xf32>, vector<8x128xf32> -> vector<8x128xf32>
    %c0_107 = arith.constant 0 : index
    %c0_108 = arith.constant 0 : index
    %125 = vector.load %arg9[%c0_107, %c0_108] : memref<1x128xf32, #tpu.memory_space<vmem>>, vector<1x128xf32>
    %126 = vector.broadcast %125 : vector<1x128xf32> to vector<8x128xf32>
    %127 = arith.addf %124, %126 : vector<8x128xf32>
    %c0_109 = arith.constant 0 : index
    %c0_110 = arith.constant 0 : index
    %128 = vector.load %arg10[%c0_109, %c0_110] : memref<8x128xf32, #tpu.memory_space<vmem>>, vector<8x128xf32>
    tpu.vector_store %arg10[%c0_109, %c0_110], %127 {strides = array<i32>} : memref<8x128xf32, #tpu.memory_space<vmem>>, vector<8x128xf32>,
    return
  }
  func.func @transform_0(%arg0: i32) -> (i32, i32, i32, i32) {
    %c0_i32 = arith.constant 0 : i32
    %c0_i32_0 = arith.constant 0 : i32
    %c0_i32_1 = arith.constant 0 : i32
    %c0_i32_2 = arith.constant 0 : i32
    return %arg0, %c0_i32, %c0_i32_0, %c0_i32_1 : i32, i32, i32, i32
  }
  func.func @transform_1(%arg0: i32) -> (i32, i32) {
    %c0_i32 = arith.constant 0 : i32
    %c0_i32_0 = arith.constant 0 : i32
    %c0_i32_1 = arith.constant 0 : i32
    return %c0_i32, %c0_i32_0 : i32, i32
  }
  func.func @transform_2(%arg0: i32) -> (i32, i32) {
    %c0_i32 = arith.constant 0 : i32
    %c0_i32_0 = arith.constant 0 : i32
    %c0_i32_1 = arith.constant 0 : i32
    return %c0_i32, %c0_i32_0 : i32, i32
  }
  func.func @transform_3(%arg0: i32) -> (i32, i32, i32) {
    %c0_i32 = arith.constant 0 : i32
    %c0_i32_0 = arith.constant 0 : i32
    %c0_i32_1 = arith.constant 0 : i32
    %c0_i32_2 = arith.constant 0 : i32
    return %c0_i32, %c0_i32_0, %c0_i32_1 : i32, i32, i32
  }
  func.func @transform_4(%arg0: i32) -> (i32, i32) {
    %c0_i32 = arith.constant 0 : i32
    %c0_i32_0 = arith.constant 0 : i32
    %c0_i32_1 = arith.constant 0 : i32
    return %c0_i32, %c0_i32_0 : i32, i32
  }
  func.func @transform_5(%arg0: i32) -> (i32, i32, i32) {
    %c0_i32 = arith.constant 0 : i32
    %c0_i32_0 = arith.constant 0 : i32
    %c0_i32_1 = arith.constant 0 : i32
    %c0_i32_2 = arith.constant 0 : i32
    return %c0_i32, %c0_i32_0, %c0_i32_1 : i32, i32, i32
  }
  func.func @transform_6(%arg0: i32) -> (i32, i32) {
    %c0_i32 = arith.constant 0 : i32
    %c0_i32_0 = arith.constant 0 : i32
    %c0_i32_1 = arith.constant 0 : i32
    return %c0_i32, %c0_i32_0 : i32, i32
  }
  func.func @transform_7(%arg0: i32) -> (i32, i32) {
    %c0_i32 = arith.constant 0 : i32
    %c0_i32_0 = arith.constant 0 : i32
    %c0_i32_1 = arith.constant 0 : i32
    return %c0_i32, %c0_i32_0 : i32, i32
  }
  func.func @transform_8(%arg0: i32) -> (i32, i32) {
    %c0_i32 = arith.constant 0 : i32
    %c0_i32_0 = arith.constant 0 : i32
    %c0_i32_1 = arith.constant 0 : i32
    return %c0_i32, %c0_i32_0 : i32, i32
  }
  func.func @transform_9(%arg0: i32) -> (i32, i32) {
    %c0_i32 = arith.constant 0 : i32
    %c0_i32_0 = arith.constant 0 : i32
    return %arg0, %c0_i32 : i32, i32
  }
}

</mosaic_0001>

<bundles_post_ra>
// kernel: eye_state_forward.1
= control target key start
LH: loop header
LB: loop body
LE: loop exit
PB: predicated region body
PF: predicated region fallthrough
CT: control target
= control target key end

     0   :  { %s5942_s30 = smov 0   ;;  %s8882_s0 = inlined_call_operand.vmem [shape: f32[2,4,48,78], index: 0, kind: input, shape index: {}]   ;;  %s8883_s1 = inlined_call_operand.vmem [shape: f32[78,384], index: 1, kind: input, shape index: {}]   ;;  %s8884_s2 = inlined_call_operand.vmem [shape: f32[1,384], index: 2, kind: input, shape index: {}]   ;;  %s8885_s3 = inlined_call_operand.vmem [shape: f32[3,192,384], index: 3, kind: input, shape index: {}]   ;;  %s8886_s4 = inlined_call_operand.vmem [shape: f32[1,384], index: 4, kind: input, shape index: {}]   ;;  %s8887_s5 = inlined_call_operand.vmem [shape: f32[6,192,128], index: 5, kind: input, shape index: {}]   ;;  %s8888_s6 = inlined_call_operand.vmem [shape: f32[1,128], index: 6, kind: input, shape index: {}]   ;;  %s8889_s7 = inlined_call_operand.vmem [shape: f32[128,128], index: 7, kind: input, shape index: {}]   ;;  %s8890_s8 = inlined_call_operand.vmem [shape: f32[1,128], index: 8, kind: input, shape index: {}]   ;;  %s8891_s9 = inlined_call_operand.vmem [shape: f32[16,128], index: 9, kind: output, shape index: {}]  }
   0x1 LB: > { %s4124_s10 = sadd.s32 4294967295, %s5885_s30   ;;  %p4128_p0 = scmp.ge.s32.totalorder %s5885_s30, 1  ;;  %s5885_s30 = sphi %s5942_s30, %s19_s30  }
   0x2   : > { %p287_p1 = scmp.lt.s32.totalorder %s5885_s30, 3 }
   0x4   : > { %p288_p2 = pnand %p4128_p0, %p287_p1 }
   0x6   : > { %291 = sbr.rel (%p288_p2) target bundleno = 1789 (0x6fd), region = 56 }
   0xd   : > { %v339_v0 = vld [vmem:[%s8883_s1 + $0x8] sm:$0xff]  ;;  %v342_v1 = vld [vmem:[%s8883_s1 + $0x20] sm:$0xff]  ;;  %v341_v4 = vld [vmem:[%s8883_s1 + $0x18] sm:$0xff]  ;;  %v5887_v7 = vmov 0.0   ;;  %vm956_vm0 = vcmask 523264   ;;  %p322_p3 = scmp.lt.s32.totalorder %s4124_s10, 1 }
   0xe   : > { %v338_v2 = vld [vmem:[%s8883_s1] sm:$0xff]  ;;  %v5959_v3 = vpack.c.bf16 %v342_v1, %v339_v0  ;;  %v345_v5 = vld [vmem:[%s8883_s1 + $0x38] sm:$0xff]  ;;  %v348_v6 = vld [vmem:[%s8883_s1 + $0x50] sm:$0xff]  ;;  %461 = vmatprep.mubr.f32.mxu0 %v5887_v7  ;;  %1585 = vst [vmem:[#allocation2] sm:$0xff] %v5887_v7  ;;  %vm368_vm1 = vcmask 637952   ;;  %vm387_vm2 = vcmask 1045504  }
   0xf   : > { %v5972_v8 = vpack.c.bf16 %v341_v4, %v338_v2  ;;  %v5974_v9 = vpack.c.bf16 %v348_v6, %v345_v5  ;;  %v344_v10 = vld [vmem:[%s8883_s1 + $0x30] sm:$0xff]  ;;  %v347_v11 = vld [vmem:[%s8883_s1 + $0x48] sm:$0xff]  ;;  %1588 = vst.msk [vmem:[#allocation2 + $0x78] sm:$0xff] %vm956_vm0, %v5887_v7  ;;  %1590 = vst.msk [vmem:[#allocation3 + $0x8] sm:$0xff] %vm956_vm0, %v5887_v7  ;;  %s9043_s10 = smov (!%p322_p3, %s4124_s10), 1  ;;  %vm5888_vm3 = vmmov 1  }
  0x10   : > { %v351_v12 = vld [vmem:[%s8883_s1 + $0x68] sm:$0xff]  ;;  %4788 = vmatprep.subr.bf16.mxu0 %v5959_v3  ;;  %v354_v13 = vld [vmem:[%s8883_s1 + $0x80] sm:$0xff]  ;;  %v5996_v14 = vpack.c.bf16 %v347_v11, %v344_v10  ;;  %v353_v17 = vld [vmem:[%s8883_s1 + $0x78] sm:$0xff]  ;;  %s5850_s16 = smul.u32 192, %s9043_s10  ;;  %s5890_s11 = smov 64   ;;  %vm5891_vm5 = vmmov 0  }
  0x11   : > { %4790 = vmatpush1.bf16.msra.mxu0 %v5972_v8  ;;  %v5999_v15 = vpack.c.bf16 %v354_v13, %v351_v12  ;;  %v350_v16 = vld [vmem:[%s8883_s1 + $0x60] sm:$0xff]  ;;  %v357_v18 = vld [vmem:[%s8883_s1 + $0x98] sm:$0xff]  ;;  %v360_v19 = vld [vmem:[%s8883_s1 + $0xb0] sm:$0xff]  ;;  %s4130_s15 = sshll.u32 %s9043_s10, 3 }
  0x12   : > { %4792 = vmatprep.subr.bf16.mxu0 %v5974_v9  ;;  %s6017_s23 = scalar_lea.vmem %s8882_s0, %s5850_s16  ;;  %v340_v20 = vld [vmem:[%s8883_s1 + $0x10] sm:$0xff]  ;;  %v343_v21 = vld [vmem:[%s8883_s1 + $0x28] sm:$0xff]  ;;  %v346_v22 = vld [vmem:[%s8883_s1 + $0x40] sm:$0xff]  ;;  %v6029_v23 = vpack.c.bf16 %v353_v17, %v350_v16  ;;  %v6038_v27 = vpack.c.bf16 %v360_v19, %v357_v18  ;;  %s330_s19 = scalar_lea.vmem %s8891_s9, %s4130_s15 }
  0x13   : > { %v356_v24 = vld [vmem:[%s8883_s1 + $0x90] sm:$0xff]  ;;  %v332_v25 = vld [vmem:[%s6017_s23] sm:$0xff]  ;;  %v6035_v26 = vpack.c.bf16 %v343_v21, %v340_v20  ;;  %v359_v28 = vld [vmem:[%s8883_s1 + $0xa8] sm:$0xff] }
  0x14   : > { %v349_v29 = vld [vmem:[%s8883_s1 + $0x58] sm:$0xff]  ;;  %v352_v30 = vld [vmem:[%s8883_s1 + $0x70] sm:$0xff]  ;;  %4656 = vmatprep.mubr.msk.f32.mxu1 %vm368_vm1, %v332_v25  ;;  %v363_v31 = vld [vmem:[%s8883_s1 + $0xc8] sm:$0xff]  ;;  %v6064_v35 = vpack.c.bf16 %v359_v28, %v356_v24 }
  0x15   : > { %4794 = vmatpush1.bf16.msra.mxu0 %v5996_v14  ;;  %v366_v32 = vld [vmem:[%s8883_s1 + $0xe0] sm:$0x3f]  ;;  %4810 = vmatprep.subr.bf16.mxu1 %v6035_v26  ;;  %v6057_v33 = vpack.c.bf16 %v349_v29, %v346_v22  ;;  %v355_v34 = vld [vmem:[%s8883_s1 + $0x88] sm:$0xff]  ;;  %v365_v39 = vld [vmem:[%s8883_s1 + $0xd8] sm:$0x3f] }
  0x16   : > { %4796 = vmatprep.subr.bf16.mxu0 %v5999_v15  ;;  %4812 = vmatpush3.bf16.msra.mxu1 %v6035_v26  ;;  %v362_v36 = vld [vmem:[%s8883_s1 + $0xc0] sm:$0xff]  ;;  %v6070_v37 = vpack.c.bf16 %v355_v34, %v352_v30  ;;  %v6073_v38 = vpack.c.bf16 %v366_v32, %v363_v31  ;;  %v361_v41 = vld [vmem:[%s8883_s1 + $0xb8] sm:$0xff]  ;;  %vm6084_vm4 = vmpackc.low %vm387_vm2, %vm5888_vm3 }
  0x17   : > { %4814 = vmatprep.subr.bf16.mxu1 %v6057_v33  ;;  %v358_v40 = vld [vmem:[%s8883_s1 + $0xa0] sm:$0xff]  ;;  %v6090_v43 = vpack.c.bf16 %v365_v39, %v362_v36  ;;  %v364_v45 = vld [vmem:[%s8883_s1 + $0xd0] sm:$0xff]  ;;  %v367_v46 = vld [vmem:[%s8883_s1 + $0xe8] sm:$0x3f] }
  0x18   : > { %v6093_v44 = vpack.c.bf16 %v361_v41, %v358_v40  ;;  %v6110_v47 = vpack.c.bf16 %v367_v46, %v364_v45  ;;  %v333_v48 = vld [vmem:[%s6017_s23 + $0x8] sm:$0xff]  ;;  %v334_v49 = vld [vmem:[%s6017_s23 + $0x10] sm:$0xff]  ;;  %v335_v50 = vld [vmem:[%s6017_s23 + $0x18] sm:$0xff] }
  0x19   : > { %4798 = vmatpush1.bf16.msra.mxu0 %v6029_v23  ;;  %v336_v51 = vld [vmem:[%s6017_s23 + $0x20] sm:$0xff]  ;;  %v337_v52 = vld [vmem:[%s6017_s23 + $0x28] sm:$0xff]  ;;  %v4146_v54 = vld [vmem:[%s6017_s23 + $0x30] sm:$0xff] }
  0x1a   : > { %4800 = vmatprep.subr.bf16.mxu0 %v6038_v27  ;;  %4816 = vmatpush3.bf16.msra.mxu1 %v6057_v33  ;;  %v6162_v53 = vld [vmem:[%s6017_s23 + $0x60] sm:$0xff]  ;;  %v6177_v55 = vld [vmem:[%s6017_s23 + $0x68] sm:$0xff]  ;;  %v4147_v56 = vld [vmem:[%s6017_s23 + $0x38] sm:$0xff] }
  0x1b   : > { %4818 = vmatprep.subr.bf16.mxu1 %v6070_v37  ;;  %v6189_v57 = vld [vmem:[%s6017_s23 + $0x70] sm:$0xff]  ;;  %v4148_v58 = vld [vmem:[%s6017_s23 + $0x40] sm:$0xff]  ;;  %v6201_v59 = vld [vmem:[%s6017_s23 + $0x78] sm:$0xff] }
  0x1c   : > { %v4149_v60 = vld [vmem:[%s6017_s23 + $0x48] sm:$0xff]  ;;  %v6213_v61 = vld [vmem:[%s6017_s23 + $0x80] sm:$0xff]  ;;  %v4150_v62 = vld [vmem:[%s6017_s23 + $0x50] sm:$0xff] }
  0x1d   : > { %4802 = vmatpush1.bf16.msra.mxu0 %v6064_v35  ;;  %v6225_v63 = vld [vmem:[%s6017_s23 + $0x88] sm:$0xff]  ;;  %v4151_v0 = vld [vmem:[%s6017_s23 + $0x58] sm:$0xff]  ;;  %v4188_v1 = vld [vmem:[%s6017_s23 + $0x90] sm:$0xff] }
  0x1e   : > { %4805 = vmatprep.subr.msk.bf16.mxu0 %vm6084_vm4, %v6073_v38  ;;  %4820 = vmatpush3.bf16.msra.mxu1 %v6070_v37  ;;  %v4189_v2 = vld [vmem:[%s6017_s23 + $0x98] sm:$0xff]  ;;  %v4191_v4 = vld [vmem:[%s6017_s23 + $0xa8] sm:$0xff]  ;;  %v4192_v5 = vld [vmem:[%s6017_s23 + $0xb0] sm:$0xff] }
  0x1f   : > { %4822 = vmatprep.subr.bf16.mxu1 %v6093_v44  ;;  %v4193_v6 = vld [vmem:[%s6017_s23 + $0xb8] sm:$0xff]  ;;  %v6325_v10 = vld [vmem:[%s8884_s2] sm:$0x7]  ;;  %v1631_v24 = vld [vmem:[%s8885_s3 + $0x8] sm:$0xff] }
  0x20   : > { %v1633_v30 = vld [vmem:[%s8885_s3 + $0x18] sm:$0xff]  ;;  %v1640_v32 = vld [vmem:[%s8885_s3 + $0x50] sm:$0xff]  ;;  %v1639_v36 = vld [vmem:[%s8885_s3 + $0x48] sm:$0xff] }
  0x21   : > { %4808 = vmatpush1.bf16.msk.msra.mxu0 %vm6084_vm4, %v6090_v43  ;;  %v1637_v31 = vld [vmem:[%s8885_s3 + $0x38] sm:$0xff]  ;;  %v1646_v40 = vld [vmem:[%s8885_s3 + $0x80] sm:$0xff] }
  0x22   : > { %4832 = vmatprep.subr.bf16.mxu0 %v5959_v3  ;;  %4824 = vmatpush3.bf16.msra.mxu1 %v6093_v44  ;;  %v6376_v34 = vpack.c.bf16 %v1640_v32, %v1637_v31  ;;  %v1664_v31 = vld [vmem:[%s8885_s3 + $0x110] sm:$0xff] }
  0x23   : > { %4827 = vmatprep.subr.msk.bf16.mxu1 %vm6084_vm4, %v6110_v47 }
  0x24   : > { %4133 = vmatmul.mubr.msk.f32.vlgmr.msra.gmra.mrb[0].mxu0 %vm368_vm1, %v332_v25  ;;  %v1634_v25 = vld [vmem:[%s8885_s3 + $0x20] sm:$0xff] }
  0x25   : > { %4834 = vmatpush1.bf16.msra.mxu0 %v5972_v8  ;;  %467 = vmatprep.mubr.f32.mxu0 %v5887_v7  ;;  %v6363_v29 = vpack.c.bf16 %v1634_v25, %v1631_v24  ;;  %v1657_v24 = vld [vmem:[%s8885_s3 + $0xd8] sm:$0xff] }
  0x26   : > { %4836 = vmatprep.subr.bf16.mxu0 %v5974_v9  ;;  %4830 = vmatpush3.bf16.msk.msra.mxu1 %vm6084_vm4, %v6110_v47  ;;  %v1661_v25 = vld [vmem:[%s8885_s3 + $0xf8] sm:$0xff] }
  0x27   : > { %4898 = vmatprep.subr.bf16.mxu1 %v6035_v26 }
  0x28   : > { %4134 = vmatmul.mubr.msk.f32.gmra.mrb[2].mxu0 %vm368_vm1, %v333_v48 }
  0x29   : > { %4838 = vmatpush1.bf16.msra.mxu0 %v5996_v14  ;;  %473 = vmatprep.mubr.f32.mxu0 %v5887_v7 }
  0x2a   : > { %4840 = vmatprep.subr.bf16.mxu0 %v5999_v15  ;;  %4657 = vmatmul.mubr.msk.f32.vlgmr.msra.gmra.mrb[0].mxu1 %vm368_vm1, %v333_v48  ;;  %v1645_v48 = vld [vmem:[%s8885_s3 + $0x78] sm:$0xff] }
  0x2b   : > { %4900 = vmatpush3.bf16.msra.mxu1 %v6035_v26  ;;  %4659 = vmatprep.mubr.msk.f32.mxu1 %vm368_vm1, %v334_v49 }
  0x2c   : > { %4135 = vmatmul.mubr.msk.f32.gmra.mrb[4].mxu0 %vm368_vm1, %v334_v49  ;;  %4902 = vmatprep.subr.bf16.mxu1 %v6057_v33  ;;  %v1649_v49 = vld [vmem:[%s8885_s3 + $0x98] sm:$0xff] }
  0x2d   : > { %479 = vmatprep.mubr.f32.mxu0 %v5887_v7  ;;  %4842 = vmatpush1.bf16.msra.mxu0 %v6029_v23 }
  0x2e   : > { %4844 = vmatprep.subr.bf16.mxu0 %v6038_v27  ;;  %4660 = vmatmul.mubr.msk.f32.gmra.mrb[2].mxu1 %vm368_vm1, %v335_v50 }
  0x2f   : > { %4904 = vmatpush3.bf16.msra.mxu1 %v6057_v33  ;;  %4662 = vmatprep.mubr.msk.f32.mxu1 %vm368_vm1, %v336_v51 }
  0x30   : > { %4136 = vmatmul.mubr.msk.f32.gmra.mrb[6].mxu0 %vm368_vm1, %v335_v50  ;;  %4906 = vmatprep.subr.bf16.mxu1 %v6070_v37  ;;  %v1652_v50 = vld [vmem:[%s8885_s3 + $0xb0] sm:$0xff] }
  0x31   : > { %485 = vmatprep.mubr.f32.mxu0 %v5887_v7  ;;  %4846 = vmatpush1.bf16.msra.mxu0 %v6064_v35 }
  0x32   : > { %4849 = vmatprep.subr.msk.bf16.mxu0 %vm6084_vm4, %v6073_v38  ;;  %4663 = vmatmul.mubr.msk.f32.gmra.mrb[4].mxu1 %vm368_vm1, %v337_v52 }
  0x33   : > { %4908 = vmatpush3.bf16.msra.mxu1 %v6070_v37  ;;  %4714 = vmatprep.mubr.msk.f32.mxu1 %vm368_vm1, %v6162_v53 }
  0x34   : > { %4137 = vmatmul.mubr.msk.f32.gmra.mrb[8].mxu0 %vm368_vm1, %v336_v51  ;;  %4910 = vmatprep.subr.bf16.mxu1 %v6093_v44 }
  0x35   : > { %491 = vmatprep.mubr.f32.mxu0 %v5887_v7  ;;  %4852 = vmatpush1.bf16.msk.msra.mxu0 %vm6084_vm4, %v6090_v43 }
  0x36   : > { %4854 = vmatprep.subr.bf16.mxu0 %v6035_v26 }
  0x37   : > { %4912 = vmatpush3.bf16.msra.mxu1 %v6093_v44 }
  0x38   : > { %4138 = vmatmul.mubr.msk.f32.gmra.mrb[10].mxu0 %vm368_vm1, %v337_v52  ;;  %4915 = vmatprep.subr.msk.bf16.mxu1 %vm6084_vm4, %v6110_v47 }
  0x39   : > { %734 = vmatprep.mubr.f32.mxu0 %v5887_v7 }
  0x3b   : > { %4918 = vmatpush3.bf16.msk.msra.mxu1 %vm6084_vm4, %v6110_v47 }
  0x3c   : > { %4154 = vmatmul.mubr.msk.f32.vlgmr.msra.gmra.mrb[12].mxu0 %vm368_vm1, %v4146_v54  ;;  %4920 = vmatprep.subr.bf16.mxu1 %v5959_v3 }
  0x3d   : > { %4856 = vmatpush3.bf16.msra.mxu0 %v6035_v26  ;;  %740 = vmatprep.mubr.f32.mxu0 %v5887_v7 }
  0x3e   : > { %4858 = vmatprep.subr.bf16.mxu0 %v6057_v33  ;;  %4715 = vmatmul.mubr.msk.f32.vlgmr.msra.gmra.mrb[6].mxu1 %vm368_vm1, %v6177_v55 }
  0x3f   : > { %4922 = vmatpush1.bf16.msra.mxu1 %v5972_v8  ;;  %4717 = vmatprep.mubr.msk.f32.mxu1 %vm368_vm1, %v6189_v57 }
  0x40   : > { %4155 = vmatmul.mubr.msk.f32.gmra.mrb[14].mxu0 %vm368_vm1, %v4147_v56  ;;  %4924 = vmatprep.subr.bf16.mxu1 %v5974_v9 }
  0x41   : > { %4860 = vmatpush3.bf16.msra.mxu0 %v6057_v33  ;;  %746 = vmatprep.mubr.f32.mxu0 %v5887_v7 }
  0x42   : > { %4862 = vmatprep.subr.bf16.mxu0 %v6070_v37  ;;  %4718 = vmatmul.mubr.msk.f32.gmra.mrb[8].mxu1 %vm368_vm1, %v6201_v59 }
  0x43   : > { %4926 = vmatpush1.bf16.msra.mxu1 %v5996_v14  ;;  %4720 = vmatprep.mubr.msk.f32.mxu1 %vm368_vm1, %v6213_v61 }
  0x44   : > { %4156 = vmatmul.mubr.msk.f32.gmra.mrb[16].mxu0 %vm368_vm1, %v4148_v58  ;;  %4928 = vmatprep.subr.bf16.mxu1 %v5999_v15 }
  0x45   : > { %752 = vmatprep.mubr.f32.mxu0 %v5887_v7  ;;  %4864 = vmatpush3.bf16.msra.mxu0 %v6070_v37 }
  0x46   : > { %4866 = vmatprep.subr.bf16.mxu0 %v6093_v44  ;;  %4721 = vmatmul.mubr.msk.f32.gmra.mrb[10].mxu1 %vm368_vm1, %v6225_v63 }
  0x47   : > { %4930 = vmatpush1.bf16.msra.mxu1 %v6029_v23  ;;  %1333 = vmatprep.mubr.f32.mxu1 %v5887_v7 }
  0x48   : > { %4157 = vmatmul.mubr.msk.f32.gmra.mrb[18].mxu0 %vm368_vm1, %v4149_v60  ;;  %4932 = vmatprep.subr.bf16.mxu1 %v6038_v27 }
  0x49   : > { %758 = vmatprep.mubr.f32.mxu0 %v5887_v7  ;;  %4868 = vmatpush3.bf16.msra.mxu0 %v6093_v44 }
  0x4a   : > { %4871 = vmatprep.subr.msk.bf16.mxu0 %vm6084_vm4, %v6110_v47 }
  0x4b   : > { %4934 = vmatpush1.bf16.msra.mxu1 %v6064_v35 }
  0x4c   : > { %4158 = vmatmul.mubr.msk.f32.gmra.mrb[20].mxu0 %vm368_vm1, %v4150_v62  ;;  %4937 = vmatprep.subr.msk.bf16.mxu1 %vm6084_vm4, %v6073_v38 }
  0x4d   : > { %764 = vmatprep.mubr.f32.mxu0 %v5887_v7  ;;  %4874 = vmatpush3.bf16.msk.msra.mxu0 %vm6084_vm4, %v6110_v47 }
  0x4e   : > { %4876 = vmatprep.subr.bf16.mxu0 %v5959_v3  ;;  %v4190_v3 = vld [vmem:[%s6017_s23 + $0xa0] sm:$0xff] }
  0x4f   : > { %4940 = vmatpush1.bf16.msk.msra.mxu1 %vm6084_vm4, %v6090_v43 }
  0x50   : > { %4159 = vmatmul.mubr.msk.f32.gmra.mrb[22].mxu0 %vm368_vm1, %v4151_v0 }
  0x51   : > { %4685 = vmatprep.mubr.msk.f32.mxu0 %vm368_vm1, %v4146_v54 }
  0x52   : > { %4196 = vmatmul.mubr.msk.f32.vlgmr.msra.gmra.mrb[12].mxu1 %vm368_vm1, %v4188_v1 }
  0x53   : > { %1339 = vmatprep.mubr.f32.mxu1 %v5887_v7 }
  0x54   : > { %4686 = vmatmul.mubr.msk.f32.vlgmr.msra.gmra.mrb[24].mxu0 %vm368_vm1, %v4147_v56  ;;  %v6433_v56 = vpack.c.bf16 %v1652_v50, %v1649_v49  ;;  %v4318_v49 = vld [vmem:[%s8885_s3 + $0x4e8] sm:$0xff]  ;;  %v4321_v50 = vld [vmem:[%s8885_s3 + $0x500] sm:$0xff] }
  0x55   : > { %4878 = vmatpush1.bf16.msra.mxu0 %v5972_v8  ;;  %4688 = vmatprep.mubr.msk.f32.mxu0 %vm368_vm1, %v4148_v58  ;;  %v1651_v58 = vld [vmem:[%s8885_s3 + $0xa8] sm:$0xff] }
  0x56   : > { %4880 = vmatprep.subr.bf16.mxu0 %v5974_v9  ;;  %4197 = vmatmul.mubr.msk.f32.gmra.mrb[14].mxu1 %vm368_vm1, %v4189_v2 }
  0x57   : > { %1345 = vmatprep.mubr.f32.mxu1 %v5887_v7 }
  0x58   : > { %4689 = vmatmul.mubr.msk.f32.gmra.mrb[26].mxu0 %vm368_vm1, %v4149_v60 }
  0x59   : > { %4882 = vmatpush1.bf16.msra.mxu0 %v5996_v14  ;;  %4691 = vmatprep.mubr.msk.f32.mxu0 %vm368_vm1, %v4150_v62  ;;  %v4306_v62 = vld [vmem:[%s8885_s3 + $0x488] sm:$0xff] }
  0x5a   : > { %4884 = vmatprep.subr.bf16.mxu0 %v5999_v15  ;;  %4198 = vmatmul.mubr.msk.f32.gmra.mrb[16].mxu1 %vm368_vm1, %v4190_v3 }
  0x5b   : > { %1351 = vmatprep.mubr.f32.mxu1 %v5887_v7 }
  0x5c   : > { %4692 = vmatmul.mubr.msk.f32.gmra.mrb[28].mxu0 %vm368_vm1, %v4151_v0 }
  0x5d   : > { %4886 = vmatpush1.bf16.msra.mxu0 %v6029_v23  ;;  %1076 = vmatprep.mubr.f32.mxu0 %v5887_v7 }
  0x5e   : > { %4888 = vmatprep.subr.bf16.mxu0 %v6038_v27  ;;  %4199 = vmatmul.mubr.msk.f32.gmra.mrb[18].mxu1 %vm368_vm1, %v4191_v4 }
  0x5f   : > { %1357 = vmatprep.mubr.f32.mxu1 %v5887_v7 }
  0x61   : > { %4890 = vmatpush1.bf16.msra.mxu0 %v6064_v35  ;;  %v1636_v35 = vld [vmem:[%s8885_s3 + $0x30] sm:$0xff] }
  0x62   : > { %4893 = vmatprep.subr.msk.bf16.mxu0 %vm6084_vm4, %v6073_v38  ;;  %4200 = vmatmul.mubr.msk.f32.gmra.mrb[20].mxu1 %vm368_vm1, %v4192_v5 }
  0x63   : > { %1363 = vmatprep.mubr.f32.mxu1 %v5887_v7 }
  0x65   : > { %4896 = vmatpush1.bf16.msk.msra.mxu0 %vm6084_vm4, %v6090_v43  ;;  %v6397_v43 = vpack.c.bf16 %v1639_v36, %v1636_v35  ;;  %v4311_v35 = vld [vmem:[%s8885_s3 + $0x4b0] sm:$0xff]  ;;  %v4314_v36 = vld [vmem:[%s8885_s3 + $0x4c8] sm:$0xff] }
  0x66   : > { %4942 = vmatprep.subr.bf16.mxu0 %v6035_v26  ;;  %4201 = vmatmul.mubr.msk.f32.gmra.mrb[22].mxu1 %vm368_vm1, %v4193_v6 }
  0x68   : > { %4175 = vmatmul.mubr.msk.f32.vlgmr.msra.gmra.mrb[30].mxu0 %vm368_vm1, %v6162_v53 }
  0x69   : > { %4944 = vmatpush3.bf16.msra.mxu0 %v6035_v26  ;;  %1082 = vmatprep.mubr.f32.mxu0 %v5887_v7  ;;  %v1630_v26 = vld [vmem:[%s8885_s3] sm:$0xff] }
  0x6a   : > { %4946 = vmatprep.subr.bf16.mxu0 %v6057_v33 }
  0x6c   : > { %4176 = vmatmul.mubr.msk.f32.gmra.mrb[32].mxu0 %vm368_vm1, %v6177_v55 }
  0x6d   : > { %4948 = vmatpush3.bf16.msra.mxu0 %v6057_v33  ;;  %1088 = vmatprep.mubr.f32.mxu0 %v5887_v7  ;;  %v6374_v33 = vpack.c.bf16 %v1633_v30, %v1630_v26  ;;  %v4315_v26 = vld [vmem:[%s8885_s3 + $0x4d0] sm:$0xff] }
  0x6e   : > { %4950 = vmatprep.subr.bf16.mxu0 %v6070_v37 }
  0x70   : > { %4177 = vmatmul.mubr.msk.f32.gmra.mrb[34].mxu0 %vm368_vm1, %v6189_v57  ;;  %v1648_v57 = vld [vmem:[%s8885_s3 + $0x90] sm:$0xff] }
  0x71   : > { %1094 = vmatprep.mubr.f32.mxu0 %v5887_v7  ;;  %4952 = vmatpush3.bf16.msra.mxu0 %v6070_v37  ;;  %v1643_v37 = vld [vmem:[%s8885_s3 + $0x68] sm:$0xff] }
  0x72   : > { %4954 = vmatprep.subr.bf16.mxu0 %v6093_v44  ;;  %v6405_v46 = vpack.c.bf16 %v1646_v40, %v1643_v37 }
  0x74   : > { %4178 = vmatmul.mubr.msk.f32.gmra.mrb[36].mxu0 %vm368_vm1, %v6201_v59  ;;  %v1655_v59 = vld [vmem:[%s8885_s3 + $0xc8] sm:$0xff] }
  0x75   : > { %1100 = vmatprep.mubr.f32.mxu0 %v5887_v7  ;;  %4956 = vmatpush3.bf16.msra.mxu0 %v6093_v44 }
  0x76   : > { %4959 = vmatprep.subr.msk.bf16.mxu0 %vm6084_vm4, %v6110_v47 }
  0x78   : > { %4179 = vmatmul.mubr.msk.f32.gmra.mrb[38].mxu0 %vm368_vm1, %v6213_v61  ;;  %v1658_v61 = vld [vmem:[%s8885_s3 + $0xe0] sm:$0xff] }
  0x79   : > { %1106 = vmatprep.mubr.f32.mxu0 %v5887_v7  ;;  %4962 = vmatpush3.bf16.msk.msra.mxu0 %vm6084_vm4, %v6110_v47  ;;  %v594_v7 = vlaneseq  ;;  %v1642_v47 = vld [vmem:[%s8885_s3 + $0x60] sm:$0xff] }
  0x7a   : > { %4964 = vmatprep.subr.bf16.mxu0 %v6363_v29  ;;  %v6425_v53 = vpack.c.bf16 %v1645_v48, %v1642_v47  ;;  %v6507_v48 = vpack.c.bf16 %v4314_v36, %v4311_v35 }
  0x7b   : > { %v6319_v8 = vshrl.u32 %v594_v7, 7  ;;  %v1654_v7 = vld [vmem:[%s8885_s3 + $0xc0] sm:$0xff] }
  0x7c   : > { %4180 = vmatmul.mubr.msk.f32.gmra.mrb[40].mxu0 %vm368_vm1, %v6225_v63  ;;  %v4309_v63 = vld [vmem:[%s8885_s3 + $0x4a0] sm:$0xff]  ;;  %8949 = vst [vmem:[#allocation9_spill] sm:$0xff] %v6507_v48 }
  0x7d   : > { %4743 = vmatprep.mubr.msk.f32.mxu0 %vm368_vm1, %v4188_v1  ;;  %8944 = vst [vmem:[#allocation4_spill] sm:$0xff] %v6319_v8  ;;  %v8893_v9 = vsub.s32 0, %v6319_v8  ;;  %v8892_v38 = vsub.s32 1, %v6319_v8 }
  0x7f   : > { %v6330_v11 = vrot.slane %v6325_v10, %v8893_v9  ;;  %v6422_v51 = vrot.slane %v6325_v10, %v8892_v38 }
  0x80   : > { %4744 = vmatmul.mubr.msk.f32.vlgmr.msra.gmra.mrb[42].mxu0 %vm368_vm1, %v4189_v2  ;;  %v6458_v2 = vpack.c.bf16 %v4309_v63, %v4306_v62  ;;  %v6526_v62 = vpack.c.bf16 %v4321_v50, %v4318_v49 }
  0x81   : > { %4746 = vmatprep.mubr.msk.f32.mxu0 %vm368_vm1, %v4190_v3  ;;  %4966 = vmatpush1.bf16.msra.mxu0 %v6374_v33  ;;  %v4305_v3 = vld [vmem:[%s8885_s3 + $0x480] sm:$0xff] }
  0x82   : > { %4968 = vmatprep.subr.bf16.mxu0 %v6376_v34  ;;  %8945 = vst [vmem:[#allocation5_spill] sm:$0xff] %v6458_v2  ;;  %5132 = vmatprep.subr.bf16.mxu1 %v6458_v2  ;;  %8951 = vst [vmem:[#allocation11_spill] sm:$0xff] %v6526_v62 }
  0x84   : > { %4747 = vmatmul.mubr.msk.f32.gmra.mrb[44].mxu0 %vm368_vm1, %v4191_v4  ;;  %v4308_v4 = vld [vmem:[%s8885_s3 + $0x498] sm:$0xff] }
  0x85   : > { %4749 = vmatprep.mubr.msk.f32.mxu0 %vm368_vm1, %v4192_v5  ;;  %4970 = vmatpush1.bf16.msra.mxu0 %v6397_v43 }
  0x86   : > { %4972 = vmatprep.subr.bf16.mxu0 %v6405_v46 }
  0x88   : > { %4750 = vmatmul.mubr.msk.f32.gmra.mrb[46].mxu0 %vm368_vm1, %v4193_v6  ;;  %v6467_v6 = vpack.c.bf16 %v1651_v58, %v1648_v57 }
  0x89   : > { %4974 = vmatpush1.bf16.msra.mxu0 %v6425_v53 }
  0x8a   : > { %4976 = vmatprep.subr.bf16.mxu0 %v6433_v56 }
  0x8d   : > { %4978 = vmatpush1.bf16.msra.mxu0 %v6467_v6 }
  0xf7   : > { %v463_v12 = vpop.f32.mrb[0].mxu0 }
  0xf8   : > { %v6333_v13 = vadd.f32 %v6330_v11, %v463_v12  ;;  %v465_v14 = vpop.f32.mrb[1].mxu0  ;;  %v6472_v12 = vpack.c.bf16 %v4308_v4, %v4305_v3  ;;  %v6535_v4 = vpack.c.bf16 %v1664_v31, %v1661_v25 }
  0xf9   : > { %v610_v0 = vadd.f32 %v6422_v51, %v465_v14  ;;  %v4312_v14 = vld [vmem:[%s8885_s3 + $0x4b8] sm:$0xff] }
  0xfa   : > { %8946 = vst [vmem:[#allocation6_spill] sm:$0xff] %v6472_v12  ;;  %5134 = vmatpush1.bf16.msra.mxu1 %v6472_v12  ;;  %v6496_v32 = vpack.c.bf16 %v4315_v26, %v4312_v14  ;;  %v627_v37 = vmax.f32 %v6333_v13, 0.0  ;;  %8952 = vst [vmem:[#allocation12_spill] sm:$0xff] %v6535_v4  ;;  %v4320_v14 = vld [vmem:[%s8885_s3 + $0x4f8] sm:$0xff] }
  0xfb   : > { %v469_v15 = vpop.f32.mrb[2].mxu0  ;;  %v628_v40 = vmax.f32 %v610_v0, 0.0  ;;  %v4324_v26 = vld [vmem:[%s8885_s3 + $0x518] sm:$0xff] }
  0xfc   : > { %v6336_v16 = vadd.f32 %v6330_v11, %v469_v15  ;;  %v6338_v17 = vpop.f32.mrb[3].mxu0  ;;  %8948 = vst [vmem:[#allocation8_spill] sm:$0xff] %v6496_v32  ;;  %5136 = vmatprep.subr.bf16.mxu1 %v6496_v32 }
  0xfd   : > { %v6340_v18 = vpop.f32.mrb[0].mxu1 }
  0xfe   : > { %v6342_v20 = vpop.f32.mrb[1].mxu1  ;;  %5138 = vmatpush1.bf16.msra.mxu1 %v6507_v48  ;;  %v630_v31 = vmax.f32 %v6336_v16, 0.0 }
  0xff   : > { %v475_v19 = vpop.f32.mrb[4].mxu0  ;;  %5140 = vmatprep.subr.bf16.mxu1 %v6526_v62 }
 0x100   : > { %v6345_v21 = vadd.f32 %v6330_v11, %v475_v19  ;;  %v6347_v22 = vpop.f32.mrb[5].mxu0 }
 0x101   : > { %v6388_v39 = vpop.f32.mrb[2].mxu1  ;;  %v616_v49 = vadd.f32 %v6422_v51, %v6347_v22  ;;  %v1669_v22 = vld [vmem:[%s8885_s3 + $0x138] sm:$0xff] }
 0x102   : > { %v6394_v42 = vpop.f32.mrb[3].mxu1 }
 0x103   : > { %v481_v23 = vpop.f32.mrb[6].mxu0 }
 0x104   : > { %v6359_v27 = vadd.f32 %v6330_v11, %v481_v23  ;;  %v6361_v28 = vpop.f32.mrb[7].mxu0  ;;  %v6479_v23 = vpack.c.bf16 %v1658_v61, %v1655_v59  ;;  %v6520_v59 = vpack.c.bf16 %v1657_v24, %v1654_v7  ;;  %v1660_v61 = vld [vmem:[%s8885_s3 + $0xf0] sm:$0xff]  ;;  %v1667_v7 = vld [vmem:[%s8885_s3 + $0x128] sm:$0xff]  ;;  %v1670_v24 = vld [vmem:[%s8885_s3 + $0x140] sm:$0xff] }
 0x105   : > { %v6444_v60 = vpop.f32.mrb[4].mxu1 }
 0x106   : > { %v6456_v1 = vpop.f32.mrb[5].mxu1  ;;  %8947 = vst [vmem:[#allocation7_spill] sm:$0xff] %v6479_v23  ;;  %8950 = vst [vmem:[#allocation10_spill] sm:$0xff] %v6520_v59  ;;  %4980 = vmatprep.subr.bf16.mxu0 %v6479_v23  ;;  %v1650_v23 = vld [vmem:[%s8885_s3 + $0xa0] sm:$0xff] }
 0x107   : > { %v487_v41 = vpop.f32.mrb[8].mxu0  ;;  %4982 = vmatpush1.bf16.msra.mxu0 %v6520_v59 }
 0x108   : > { %v6400_v44 = vadd.f32 %v6330_v11, %v487_v41  ;;  %v6402_v45 = vpop.f32.mrb[9].mxu0  ;;  %4984 = vmatprep.subr.bf16.mxu0 %v6535_v4 }
 0x10b   : > { %v493_v52 = vpop.f32.mrb[10].mxu0 }
 0x10c   : > { %v6428_v54 = vadd.f32 %v6330_v11, %v493_v52  ;;  %v6430_v55 = vpop.f32.mrb[11].mxu0  ;;  %v613_v52 = vadd.f32 %v6422_v51, %v6338_v17  ;;  %v4317_v17 = vld [vmem:[%s8885_s3 + $0x4e0] sm:$0xff] }
 0x10d   : > { %v6553_v25 = vpack.c.bf16 %v4320_v14, %v4317_v17 }
 0x10f   : > { %v736_v5 = vpop.f32.mrb[12].mxu0  ;;  %8953 = vst [vmem:[#allocation13_spill] sm:$0xff] %v6553_v25  ;;  %5142 = vmatpush1.bf16.msra.mxu1 %v6553_v25 }
 0x110   : > { %v866_v15 = vadd.f32 %v736_v5, %v6330_v11  ;;  %v738_v19 = vpop.f32.mrb[13].mxu0  ;;  %v1663_v5 = vld [vmem:[%s8885_s3 + $0x108] sm:$0xff] }
 0x111   : > { %v867_v30 = vadd.f32 %v738_v19, %v6422_v51  ;;  %v6505_v47 = vpop.f32.mrb[6].mxu1  ;;  %v6574_v16 = vpack.c.bf16 %v1663_v5, %v1660_v61  ;;  %v1673_v5 = vld [vmem:[%s8885_s3 + $0x158] sm:$0xff] }
 0x112   : > { %v884_v41 = vmax.f32 %v866_v15, 0.0  ;;  %v6517_v13 = vpop.f32.mrb[7].mxu1 }
 0x113   : > { %v885_v57 = vmax.f32 %v867_v30, 0.0  ;;  %v742_v58 = vpop.f32.mrb[14].mxu0  ;;  %v4327_v30 = vld [vmem:[%s8885_s3 + $0x530] sm:$0xff]  ;;  %8955 = vst [vmem:[#allocation15_spill] sm:$0xff] %v6574_v16  ;;  %4986 = vmatpush1.bf16.msra.mxu0 %v6574_v16  ;;  %v4344_v16 = vld [vmem:[%s8885_s3 + $0x5b8] sm:$0xff] }
 0x114   : > { %v6531_v63 = vmax.f32 %v627_v37, %v884_v41  ;;  %v869_v0 = vadd.f32 %v742_v58, %v6330_v11  ;;  %v744_v3 = vpop.f32.mrb[15].mxu0  ;;  %v6563_v36 = vpack.c.bf16 %v4327_v30, %v4324_v26  ;;  %v4323_v37 = vld [vmem:[%s8885_s3 + $0x510] sm:$0xff]  ;;  %v631_v41 = vmax.f32 %v613_v52, 0.0  ;;  %v1666_v52 = vld [vmem:[%s8885_s3 + $0x120] sm:$0xff] }
 0x115   : > { %v6546_v15 = vmax.f32 %v628_v40, %v885_v57  ;;  %v870_v19 = vadd.f32 %v744_v3, %v6422_v51  ;;  %v4326_v40 = vld [vmem:[%s8885_s3 + $0x528] sm:$0xff]  ;;  %v6580_v3 = vpack.c.bf16 %v1670_v24, %v1667_v7  ;;  %v1676_v7 = vld [vmem:[%s8885_s3 + $0x170] sm:$0xff]  ;;  %v633_v24 = vmax.f32 %v6345_v21, 0.0 }
 0x116   : > { %v887_v35 = vmax.f32 %v869_v0, 0.0  ;;  %8954 = vst [vmem:[#allocation14_spill] sm:$0xff] %v6563_v36  ;;  %v8897_v30 = vsub.s32 2, %v6319_v8  ;;  %5144 = vmatprep.subr.bf16.mxu1 %v6563_v36  ;;  %v6616_v38 = vpack.c.bf16 %v1676_v7, %v1673_v5  ;;  %v1682_v5 = vld [vmem:[%s8885_s3 + $0x1a0] sm:$0xff]  ;;  %v636_v7 = vmax.f32 %v6359_v27, 0.0 }
 0x117   : > { %v888_v50 = vmax.f32 %v870_v19, 0.0  ;;  %v748_v57 = vpop.f32.mrb[16].mxu0  ;;  %8956 = vst [vmem:[#allocation16_spill] sm:$0xff] %v6580_v3  ;;  %v6598_v19 = vpack.c.bf16 %v4326_v40, %v4323_v37  ;;  %v6610_v37 = vpack.c.bf16 %v1669_v22, %v1666_v52  ;;  %4988 = vmatprep.subr.bf16.mxu0 %v6580_v3  ;;  %v1679_v22 = vld [vmem:[%s8885_s3 + $0x188] sm:$0xff] }
 0x118   : > { %v6576_v58 = vmax.f32 %v630_v31, %v887_v35  ;;  %v872_v17 = vadd.f32 %v748_v57, %v6330_v11  ;;  %v750_v0 = vpop.f32.mrb[17].mxu0  ;;  %v6602_v31 = vpop.f32.mrb[8].mxu1  ;;  %v634_v35 = vmax.f32 %v616_v49, 0.0  ;;  %8959 = vst [vmem:[#allocation19_spill] sm:$0xff] %v6616_v38  ;;  %v1675_v49 = vld [vmem:[%s8885_s3 + $0x168] sm:$0xff]  ;;  %v6649_v8 = vpack.c.bf16 %v1682_v5, %v1679_v22  ;;  %v1688_v22 = vld [vmem:[%s8885_s3 + $0x1d0] sm:$0xff] }
 0x119   : > { %v6588_v14 = vmax.f32 %v631_v41, %v888_v50  ;;  %v873_v61 = vadd.f32 %v750_v0, %v6422_v51  ;;  %8957 = vst [vmem:[#allocation17_spill] sm:$0xff] %v6598_v19  ;;  %v619_v41 = vadd.f32 %v6422_v51, %v6361_v28  ;;  %v6607_v0 = vpop.f32.mrb[9].mxu1  ;;  %8958 = vst [vmem:[#allocation18_spill] sm:$0xff] %v6610_v37  ;;  %v1672_v28 = vld [vmem:[%s8885_s3 + $0x150] sm:$0xff]  ;;  %5146 = vmatpush1.bf16.msra.mxu1 %v6598_v19 }
 0x11a   : > { %v890_v26 = vmax.f32 %v872_v17, 0.0  ;;  %4990 = vmatpush1.bf16.msra.mxu0 %v6610_v37  ;;  %v6643_v9 = vpack.c.bf16 %v1675_v49, %v1672_v28  ;;  %8962 = vst [vmem:[#allocation22_spill] sm:$0xff] %v6649_v8  ;;  %v6660_v49 = vpop.f32.mrb[10].mxu1  ;;  %v639_v5 = vmax.f32 %v6400_v44, 0.0 }
 0x11b   : > { %v891_v50 = vmax.f32 %v873_v61, 0.0  ;;  %v754_v57 = vpop.f32.mrb[18].mxu0  ;;  %4992 = vmatprep.subr.bf16.mxu0 %v6616_v38  ;;  %v4338_v38 = vld [vmem:[%s8885_s3 + $0x588] sm:$0xff] }
 0x11c   : > { %v6612_v21 = vmax.f32 %v633_v24, %v890_v26  ;;  %v875_v40 = vadd.f32 %v754_v57, %v6330_v11  ;;  %v756_v17 = vpop.f32.mrb[19].mxu0  ;;  %v6638_v26 = vrot.slane %v6325_v10, %v8897_v30  ;;  %8960 = vst [vmem:[#allocation20_spill] sm:$0xff] %v6643_v9  ;;  %v1678_v10 = vld [vmem:[%s8885_s3 + $0x180] sm:$0xff] }
 0x11d   : > { %v6624_v61 = vmax.f32 %v634_v35, %v891_v50  ;;  %v876_v52 = vadd.f32 %v756_v17, %v6422_v51  ;;  %v637_v35 = vmax.f32 %v619_v41, 0.0  ;;  %v622_v50 = vadd.f32 %v6422_v51, %v6402_v45  ;;  %v1681_v45 = vld [vmem:[%s8885_s3 + $0x198] sm:$0xff] }
 0x11e   : > { %v893_v24 = vmax.f32 %v875_v40, 0.0  ;;  %4994 = vmatpush1.bf16.msra.mxu0 %v6643_v9  ;;  %v6676_v19 = vpack.c.bf16 %v1681_v45, %v1678_v10  ;;  %v1691_v45 = vld [vmem:[%s8885_s3 + $0x1e8] sm:$0xff] }
 0x11f   : > { %v894_v57 = vmax.f32 %v876_v52, 0.0  ;;  %v760_v17 = vpop.f32.mrb[20].mxu0  ;;  %v1685_v52 = vld [vmem:[%s8885_s3 + $0x1b8] sm:$0xff]  ;;  %4996 = vmatprep.subr.bf16.mxu0 %v6649_v8 }
 0x120   : > { %v6645_v36 = vmax.f32 %v636_v7, %v893_v24  ;;  %v878_v27 = vadd.f32 %v760_v17, %v6330_v11  ;;  %v762_v40 = vpop.f32.mrb[21].mxu0  ;;  %v614_v24 = vadd.f32 %v6340_v18, %v6638_v26  ;;  %v625_v17 = vadd.f32 %v6422_v51, %v6430_v55  ;;  %8963 = vst [vmem:[#allocation23_spill] sm:$0xff] %v6676_v19  ;;  %v1687_v55 = vld [vmem:[%s8885_s3 + $0x1c8] sm:$0xff] }
 0x121   : > { %v6657_v41 = vmax.f32 %v637_v35, %v894_v57  ;;  %v879_v28 = vadd.f32 %v762_v40, %v6422_v51  ;;  %v6671_v35 = vpop.f32.mrb[11].mxu1  ;;  %v640_v57 = vmax.f32 %v622_v50, 0.0  ;;  %v6682_v18 = vpack.c.bf16 %v1688_v22, %v1685_v52  ;;  %v1684_v50 = vld [vmem:[%s8885_s3 + $0x1b0] sm:$0xff]  ;;  %v1694_v52 = vld [vmem:[%s8885_s3 + $0x200] sm:$0xff] }
 0x122   : > { %8961 = vst [vmem:[#allocation21_spill] sm:$0xff] %v6645_v36  ;;  %v896_v7 = vmax.f32 %v878_v27, 0.0  ;;  %v642_v22 = vmax.f32 %v6428_v54, 0.0  ;;  %4998 = vmatpush1.bf16.msra.mxu0 %v6676_v19  ;;  %v6708_v32 = vpack.c.bf16 %v1687_v55, %v1684_v50 }
 0x123   : > { %v897_v40 = vmax.f32 %v879_v28, 0.0  ;;  %v766_v30 = vpop.f32.mrb[22].mxu0  ;;  %8965 = vst [vmem:[#allocation25_spill] sm:$0xff] %v6682_v18  ;;  %5000 = vmatprep.subr.bf16.mxu0 %v6682_v18 }
 0x124   : > { %v6678_v25 = vmax.f32 %v639_v5, %v896_v7  ;;  %v881_v44 = vadd.f32 %v766_v30, %v6330_v11  ;;  %v768_v27 = vpop.f32.mrb[23].mxu0  ;;  %v611_v30 = vadd.f32 %v6638_v26, %v6342_v20  ;;  %v632_v7 = vmax.f32 %v614_v24, 0.0  ;;  %8966 = vst [vmem:[#allocation26_spill] sm:$0xff] %v6708_v32 }
 0x125   : > { %v6690_v28 = vmax.f32 %v640_v57, %v897_v40  ;;  %v882_v10 = vadd.f32 %v768_v27, %v6422_v51  ;;  %v1335_v62 = vpop.f32.mrb[12].mxu1  ;;  %v643_v57 = vmax.f32 %v625_v17, 0.0  ;;  %v620_v24 = vadd.f32 %v6388_v39, %v6638_v26 }
 0x126   : > { %8964 = vst [vmem:[#allocation24_spill] sm:$0xff] %v6678_v25  ;;  %v899_v5 = vmax.f32 %v881_v44, 0.0  ;;  %v6703_v27 = vadd.f32 %v1335_v62, %v6330_v11  ;;  %v6705_v20 = vpop.f32.mrb[13].mxu1  ;;  %v6716_v17 = vpack.c.bf16 %v1694_v52, %v1691_v45  ;;  %v1690_v62 = vld [vmem:[%s8885_s3 + $0x1e0] sm:$0xff]  ;;  %v1693_v44 = vld [vmem:[%s8885_s3 + $0x1f8] sm:$0xff]  ;;  %v629_v55 = vmax.f32 %v611_v30, 0.0  ;;  %5002 = vmatpush1.bf16.msra.mxu0 %v6708_v32 }
 0x127   : > { %v900_v40 = vmax.f32 %v882_v10, 0.0  ;;  %v4687_v48 = vpop.f32.mrb[24].mxu0  ;;  %v617_v39 = vadd.f32 %v6638_v26, %v6394_v42  ;;  %v6735_v19 = vpack.c.bf16 %v1693_v44, %v1690_v62  ;;  %v638_v30 = vmax.f32 %v620_v24, 0.0  ;;  %v1638_v25 = vld [vmem:[%s8885_s3 + $0x40] sm:$0xff] }
 0x128   : > { %v6710_v12 = vmax.f32 %v642_v22, %v899_v5  ;;  %v871_v2 = vadd.f32 %v4687_v48, %v6638_v26  ;;  %v837_v54 = vpop.f32.mrb[25].mxu0  ;;  %8968 = vst [vmem:[#allocation28_spill] sm:$0xff] %v6716_v17  ;;  %5004 = vmatprep.subr.bf16.mxu0 %v6716_v17 }
 0x129   : > { %v6724_v50 = vmax.f32 %v643_v57, %v900_v40  ;;  %v868_v48 = vadd.f32 %v837_v54, %v6638_v26  ;;  %v1341_v22 = vpop.f32.mrb[14].mxu1  ;;  %8969 = vst [vmem:[#allocation29_spill] sm:$0xff] %v6735_v19  ;;  %v626_v40 = vadd.f32 %v6444_v60, %v6638_v26 }
 0x12a   : > { %8967 = vst [vmem:[#allocation27_spill] sm:$0xff] %v6710_v12  ;;  %v889_v10 = vmax.f32 %v871_v2, 0.0  ;;  %v6730_v5 = vadd.f32 %v1341_v22, %v6330_v11  ;;  %v6732_v18 = vpop.f32.mrb[15].mxu1  ;;  %v623_v22 = vadd.f32 %v6638_v26, %v6456_v1  ;;  %5006 = vmatpush1.bf16.msra.mxu0 %v6735_v19  ;;  %v4342_v12 = vld [vmem:[%s8885_s3 + $0x5a8] sm:$0xff] }
 0x12b   : > { %v886_v45 = vmax.f32 %v868_v48, 0.0  ;;  %v4690_v52 = vpop.f32.mrb[26].mxu0  ;;  %v635_v48 = vmax.f32 %v617_v39, 0.0 }
 0x12c   : > { %v6737_v57 = vmax.f32 %v632_v7, %v889_v10  ;;  %v877_v42 = vadd.f32 %v4690_v52, %v6638_v26  ;;  %v847_v2 = vpop.f32.mrb[27].mxu0  ;;  %v644_v52 = vmax.f32 %v626_v40, 0.0  ;;  %v641_v1 = vmax.f32 %v623_v22, 0.0  ;;  %v1697_v40 = vld [vmem:[%s8885_s3 + $0x218] sm:$0xff]  ;;  %v4330_v22 = vld [vmem:[%s8885_s3 + $0x548] sm:$0xff] }
 0x12d   : > { %v6743_v54 = vmax.f32 %v629_v55, %v886_v45  ;;  %v874_v62 = vadd.f32 %v847_v2, %v6638_v26  ;;  %v1347_v7 = vpop.f32.mrb[16].mxu1 }
 0x12e   : > { %v895_v44 = vmax.f32 %v877_v42, 0.0  ;;  %v6749_v32 = vadd.f32 %v1347_v7, %v6330_v11  ;;  %v6751_v60 = vpop.f32.mrb[17].mxu1 }
 0x12f   : > { %v892_v10 = vmax.f32 %v874_v62, 0.0  ;;  %v4693_v24 = vpop.f32.mrb[28].mxu0 }
 0x130   : > { %v6754_v55 = vmax.f32 %v638_v30, %v895_v44  ;;  %v883_v39 = vadd.f32 %v4693_v24, %v6638_v26  ;;  %v857_v45 = vpop.f32.mrb[29].mxu0  ;;  %v1696_v24 = vld [vmem:[%s8885_s3 + $0x210] sm:$0xff] }
 0x131   : > { %v6757_v17 = vmax.f32 %v635_v48, %v892_v10  ;;  %v880_v42 = vadd.f32 %v857_v45, %v6638_v26  ;;  %v1353_v62 = vpop.f32.mrb[18].mxu1  ;;  %v1700_v48 = vld [vmem:[%s8885_s3 + $0x230] sm:$0xff] }
 0x132   : > { %v901_v2 = vmax.f32 %v883_v39, 0.0  ;;  %v6761_v7 = vadd.f32 %v1353_v62, %v6330_v11  ;;  %v6763_v9 = vpop.f32.mrb[19].mxu1  ;;  %v6778_v10 = vpack.c.bf16 %v1700_v48, %v1697_v40  ;;  %v4332_v62 = vld [vmem:[%s8885_s3 + $0x558] sm:$0xff]  ;;  %v6806_v40 = vadd.f32 %v6705_v20, %v6422_v51 }
 0x133   : > { %v898_v8 = vmax.f32 %v880_v42, 0.0 }
 0x134   : > { %v6765_v19 = vmax.f32 %v644_v52, %v901_v2  ;;  %8970 = vst [vmem:[#allocation30_spill] sm:$0xff] %v6778_v10  ;;  %v1699_v52 = vld [vmem:[%s8885_s3 + $0x228] sm:$0xff]  ;;  %v4329_v2 = vld [vmem:[%s8885_s3 + $0x540] sm:$0xff]  ;;  %5008 = vmatprep.subr.bf16.mxu0 %v6778_v10  ;;  %v1484_v3 = vmax.f32 %v6806_v40, 0.0 }
 0x135   : > { %v6767_v30 = vmax.f32 %v641_v1, %v898_v8  ;;  %v1359_v44 = vpop.f32.mrb[20].mxu1  ;;  %v4333_v8 = vld [vmem:[%s8885_s3 + $0x560] sm:$0xff]  ;;  %v6796_v42 = vpack.c.bf16 %v1699_v52, %v1696_v24  ;;  %v6809_v48 = vpack.c.bf16 %v4332_v62, %v4329_v2  ;;  %v1632_v52 = vld [vmem:[%s8885_s3 + $0x10] sm:$0xff]  ;;  %v1635_v2 = vld [vmem:[%s8885_s3 + $0x28] sm:$0xff] }
 0x136   : > { %v6790_v39 = vadd.f32 %v1359_v44, %v6330_v11  ;;  %v6792_v45 = vpop.f32.mrb[21].mxu1  ;;  %v6794_v1 = vpack.c.bf16 %v4333_v8, %v4330_v22  ;;  %v6813_v22 = vld [vmem:[#allocation3 + $0x8] sm:$0xff]  ;;  %v4336_v44 = vld [vmem:[%s8885_s3 + $0x578] sm:$0xff]  ;;  %v4339_v8 = vld [vmem:[%s8885_s3 + $0x590] sm:$0xff]  ;;  %v6840_v10 = vpack.c.bf16 %v1635_v2, %v1632_v52 }
 0x137   : > { %8972 = vst [vmem:[#allocation32_spill] sm:$0xff] %v6796_v42  ;;  %8973 = vst [vmem:[#allocation33_spill] sm:$0xff] %v6809_v48  ;;  %5010 = vmatpush1.bf16.msra.mxu0 %v6796_v42  ;;  %4209 = vmatprep.mubr.msk.f32.mxu0 %vm956_vm0, %v6813_v22  ;;  %v6824_v24 = vpack.c.bf16 %v4339_v8, %v4336_v44  ;;  %v4335_v62 = vld [vmem:[%s8885_s3 + $0x570] sm:$0xff]  ;;  %v8919_v8 = vmov 0.0|0.0   ;;  %v6857_v2 = vld [vmem:[#allocation2] sm:$0xff] }
 0x138   : > { %8971 = vst [vmem:[#allocation31_spill] sm:$0xff] %v6794_v1  ;;  %5148 = vmatprep.subr.bf16.mxu1 %v6794_v1  ;;  %8974 = vst [vmem:[#allocation34_spill] sm:$0xff] %v6813_v22  ;;  %5011 = vmatprep.subr.bf16.mxu0 %v8919_v8  ;;  %v6860_v8 = vpack.c.bf16 %v4338_v38, %v4335_v62  ;;  %v4341_v40 = vld [vmem:[%s8885_s3 + $0x5a0] sm:$0xff]  ;;  %v1486_v22 = vmax.f32 %v6730_v5, 0.0 }
 0x139   : > { %v1365_v20 = vpop.f32.mrb[22].mxu1  ;;  %5150 = vmatpush1.bf16.msra.mxu1 %v6809_v48  ;;  %8975 = vst [vmem:[#allocation35_spill] sm:$0xff] %v6824_v24  ;;  %v1483_v48 = vmax.f32 %v6703_v27, 0.0  ;;  %8976 = vst [vmem:[#allocation36_spill] sm:$0xff] %v6840_v10  ;;  %v4345_v27 = vld [vmem:[%s8885_s3 + $0x5c0] sm:$0xff] }
 0x13a   : > { %v6837_v42 = vadd.f32 %v1365_v20, %v6330_v11  ;;  %v1367_v44 = vpop.f32.mrb[23].mxu1  ;;  %5152 = vmatprep.subr.bf16.mxu1 %v6824_v24  ;;  %8977 = vst [vmem:[#allocation37_spill] sm:$0xff] %v6857_v2  ;;  %1785 = vmatmul.mubr.f32.vlgmr.msra.gmra.mrb[48].mxu0 %v6857_v2  ;;  %8978 = vst [vmem:[#allocation38_spill] sm:$0xff] %v6860_v8  ;;  %v1469_v24 = vadd.f32 %v6732_v18, %v6422_v51  ;;  %v4348_v2 = vld [vmem:[%s8885_s3 + $0x5d8] sm:$0xff]  ;;  %v8981_v18 = vmov 0.0|0.0  }
 0x13b   : > { %v1078_v1 = vpop.f32.mrb[30].mxu0  ;;  %v6854_v52 = vadd.f32 %v1367_v44, %v6422_v51  ;;  %5013 = vmatpush1.bf16.msra.mxu0 %v6840_v10  ;;  %v6875_v38 = vpack.c.bf16 %v4345_v27, %v4342_v12  ;;  %v6890_v12 = vpack.c.bf16 %v4344_v16, %v4341_v40  ;;  %v1647_v27 = vld [vmem:[%s8885_s3 + $0x88] sm:$0xff] }
 0x13c   : > { %v1208_v20 = vadd.f32 %v1078_v1, %v6330_v11  ;;  %v1080_v37 = vpop.f32.mrb[31].mxu0  ;;  %v1641_v1 = vld [vmem:[%s8885_s3 + $0x58] sm:$0xff]  ;;  %5014 = vmatprep.subr.bf16.mxu0 %v8981_v18  ;;  %v4350_v16 = vld [vmem:[%s8885_s3 + $0x5e8] sm:$0xff] }
 0x13d   : > { %v1209_v44 = vadd.f32 %v1080_v37, %v6422_v51  ;;  %8979 = vst [vmem:[#allocation39_spill] sm:$0xff] %v6875_v38  ;;  %v6877_v62 = vpack.c.bf16 %v1641_v1, %v1638_v25  ;;  %v4351_v37 = vld [vmem:[%s8885_s3 + $0x5f0] sm:$0xff]  ;;  %5154 = vmatpush1.bf16.msra.mxu1 %v6860_v8  ;;  %8982 = vst [vmem:[#allocation41_spill] sm:$0xff] %v6890_v12 }
 0x13e   : > { %v1226_v4 = vmax.f32 %v1208_v20, 0.0  ;;  %v1644_v25 = vld [vmem:[%s8885_s3 + $0x70] sm:$0xff]  ;;  %5156 = vmatprep.subr.bf16.mxu1 %v6875_v38  ;;  %v6899_v36 = vpack.c.bf16 %v4351_v37, %v4348_v2  ;;  %v1472_v38 = vadd.f32 %v6751_v60, %v6422_v51  ;;  %v4354_v2 = vld [vmem:[%s8885_s3 + $0x608] sm:$0xff]  ;;  %v4357_v37 = vld [vmem:[%s8885_s3 + $0x620] sm:$0xff] }
 0x13f   : > { %8980 = vst [vmem:[#allocation40_spill] sm:$0xff] %v6877_v62  ;;  %v1227_v1 = vmax.f32 %v1209_v44, 0.0  ;;  %v1084_v10 = vpop.f32.mrb[32].mxu0  ;;  %v4347_v20 = vld [vmem:[%s8885_s3 + $0x5d0] sm:$0xff]  ;;  %5016 = vmatpush1.bf16.msra.mxu0 %v6877_v62  ;;  %v6923_v5 = vpack.c.bf16 %v1647_v27, %v1644_v25  ;;  %v6938_v25 = vpack.c.bf16 %v4357_v37, %v4354_v2  ;;  %v4353_v27 = vld [vmem:[%s8885_s3 + $0x600] sm:$0xff]  ;;  %v4360_v2 = vld [vmem:[%s8885_s3 + $0x638] sm:$0xff] }
 0x140   : > { %8983 = vst [vmem:[#allocation42_spill] sm:$0xff] %v6899_v36  ;;  %v6907_v40 = vmax.f32 %v1226_v4, %v1483_v48  ;;  %v1211_v8 = vadd.f32 %v1084_v10, %v6330_v11  ;;  %v1086_v44 = vpop.f32.mrb[33].mxu0  ;;  %v1487_v4 = vmax.f32 %v1469_v24, 0.0  ;;  %5017 = vmatprep.subr.bf16.mxu0 %v8981_v18  ;;  %v6927_v60 = vpack.c.bf16 %v4350_v16, %v4347_v20  ;;  %v4363_v37 = vld [vmem:[%s8885_s3 + $0x650] sm:$0xff] }
 0x141   : > { %v1212_v59 = vadd.f32 %v1086_v44, %v6422_v51  ;;  %v6920_v48 = vmax.f32 %v1227_v1, %v1484_v3  ;;  %8984 = vst [vmem:[#allocation43_spill] sm:$0xff] %v6923_v5  ;;  %5158 = vmatpush1.bf16.msra.mxu1 %v6890_v12  ;;  %v1653_v3 = vld [vmem:[%s8885_s3 + $0xb8] sm:$0xff]  ;;  %v1490_v62 = vmax.f32 %v1472_v38, 0.0 }
 0x142   : > { %v1229_v10 = vmax.f32 %v1211_v8, 0.0  ;;  %5160 = vmatprep.subr.bf16.mxu1 %v6899_v36  ;;  %v4356_v1 = vld [vmem:[%s8885_s3 + $0x618] sm:$0xff] }
 0x143   : > { %v1230_v24 = vmax.f32 %v1212_v59, 0.0  ;;  %1531 = vrot.lane.b32.xlu0 %v6920_v48, %s5890_s11  ;;  %v1090_v8 = vpop.f32.mrb[34].mxu0  ;;  %v1489_v59 = vmax.f32 %v6749_v32, 0.0  ;;  %5019 = vmatpush1.bf16.msra.mxu0 %v6923_v5  ;;  %v6962_v32 = vpack.c.bf16 %v1653_v3, %v1650_v23  ;;  %v1492_v23 = vmax.f32 %v6761_v7, 0.0  ;;  %v1656_v7 = vld [vmem:[%s8885_s3 + $0xd0] sm:$0xff] }
 0x144   : > { %v6946_v20 = vmax.f32 %v1229_v10, %v1486_v22  ;;  %v1214_v16 = vadd.f32 %v1090_v8, %v6330_v11  ;;  %v1092_v44 = vpop.f32.mrb[35].mxu0  ;;  %v1475_v22 = vadd.f32 %v6763_v9, %v6422_v51  ;;  %5020 = vmatprep.subr.bf16.mxu0 %v8981_v18  ;;  %v6966_v10 = vpack.c.bf16 %v4356_v1, %v4353_v27 }
 0x145   : > { %v1215_v36 = vadd.f32 %v1092_v44, %v6422_v51  ;;  %v6957_v12 = vmax.f32 %v1230_v24, %v1487_v4  ;;  %8985 = vst [vmem:[#allocation44_spill] sm:$0xff] %v6962_v32  ;;  %5162 = vmatpush1.bf16.msra.mxu1 %v6927_v60  ;;  %v6971_v24 = vpack.c.bf16 %v4363_v37, %v4360_v2 }
 0x146   : > { %v1232_v38 = vmax.f32 %v1214_v16, 0.0  ;;  %5164 = vmatprep.subr.bf16.mxu1 %v6938_v25  ;;  %v1478_v1 = vadd.f32 %v6792_v45, %v6422_v51 }
 0x147   : > { %v1233_v8 = vmax.f32 %v1215_v36, 0.0  ;;  %1535 = vrot.lane.b32.xlu1 %v6957_v12, %s5890_s11  ;;  %v1096_v4 = vpop.f32.mrb[36].mxu0  ;;  %8986 = vst [vmem:[#allocation45_spill] sm:$0xff] %v6971_v24  ;;  %v1493_v36 = vmax.f32 %v1475_v22, 0.0  ;;  %5022 = vmatpush1.bf16.msra.mxu0 %v6962_v32  ;;  %v4362_v22 = vld [vmem:[%s8885_s3 + $0x648] sm:$0xff] }
 0x148   : > { %v6973_v9 = vmax.f32 %v1232_v38, %v1489_v59  ;;  %v1217_v3 = vadd.f32 %v1096_v4, %v6330_v11  ;;  %v1098_v16 = vpop.f32.mrb[37].mxu0  ;;  %5023 = vmatprep.subr.bf16.mxu0 %v8981_v18  ;;  %v4359_v59 = vld [vmem:[%s8885_s3 + $0x630] sm:$0xff]  ;;  %v1495_v4 = vmax.f32 %v6790_v39, 0.0 }
 0x149   : > { %v6977_v44 = vmax.f32 %v1233_v8, %v1490_v62  ;;  %v1218_v27 = vadd.f32 %v1098_v16, %v6422_v51  ;;  %5166 = vmatpush1.bf16.msra.mxu1 %v6966_v10  ;;  %v1659_v62 = vld [vmem:[%s8885_s3 + $0xe8] sm:$0xff]  ;;  %v7004_v16 = vpack.c.bf16 %v4362_v22, %v4359_v59  ;;  %v4368_v22 = vld [vmem:[%s8885_s3 + $0x678] sm:$0xff] }
 0x14a   : > { %v1235_v5 = vmax.f32 %v1217_v3, 0.0  ;;  %5168 = vmatprep.subr.bf16.mxu1 %v6971_v24  ;;  %v6995_v37 = vpack.c.bf16 %v1659_v62, %v1656_v7  ;;  %v1496_v24 = vmax.f32 %v1478_v1, 0.0  ;;  %v4366_v7 = vld [vmem:[%s8885_s3 + $0x668] sm:$0xff]  ;;  %v1665_v1 = vld [vmem:[%s8885_s3 + $0x118] sm:$0xff]  ;;  %v4365_v62 = vld [vmem:[%s8885_s3 + $0x660] sm:$0xff] }
 0x14b   : > { %v1236_v45 = vmax.f32 %v1218_v27, 0.0  ;;  %v1102_v2 = vpop.f32.mrb[38].mxu0  ;;  %8988 = vst [vmem:[#allocation47_spill] sm:$0xff] %v7004_v16 }
 0x14c   : > { %8987 = vst [vmem:[#allocation46_spill] sm:$0xff] %v6995_v37  ;;  %v7000_v38 = vmax.f32 %v1235_v5, %v1492_v23  ;;  %v1220_v8 = vadd.f32 %v1102_v2, %v6330_v11  ;;  %v1104_v3 = vpop.f32.mrb[39].mxu0  ;;  %5025 = vmatpush1.bf16.msra.mxu0 %v6995_v37  ;;  %v4369_v5 = vld [vmem:[%s8885_s3 + $0x680] sm:$0xff]  ;;  %v7039_v37 = vpack.c.bf16 %v4368_v22, %v4365_v62  ;;  %v4374_v22 = vld [vmem:[%s8885_s3 + $0x6a8] sm:$0xff] }
 0x14d   : > { %v7006_v32 = vmax.f32 %v1236_v45, %v1493_v36  ;;  %v1221_v27 = vadd.f32 %v1104_v3, %v6422_v51  ;;  %5170 = vmatpush1.bf16.msra.mxu1 %v7004_v16  ;;  %5026 = vmatprep.subr.bf16.mxu0 %v8981_v18  ;;  %v7018_v39 = vpack.c.bf16 %v4369_v5, %v4366_v7  ;;  %v1662_v36 = vld [vmem:[%s8885_s3 + $0x100] sm:$0xff]  ;;  %v1498_v7 = vmax.f32 %v6837_v42, 0.0 }
 0x14e   : > { %v1238_v23 = vmax.f32 %v1220_v8, 0.0  ;;  %v7029_v2 = vpack.c.bf16 %v1665_v1, %v1662_v36  ;;  %v1499_v36 = vmax.f32 %v6854_v52, 0.0  ;;  %v1213_v42 = vadd.f32 %v6505_v47, %v6638_v26  ;;  %v1668_v52 = vld [vmem:[%s8885_s3 + $0x130] sm:$0xff] }
 0x14f   : > { %v1239_v59 = vmax.f32 %v1221_v27, 0.0  ;;  %v1108_v45 = vpop.f32.mrb[40].mxu0  ;;  %5172 = vmatprep.subr.bf16.mxu1 %v7018_v39  ;;  %v4371_v1 = vld [vmem:[%s8885_s3 + $0x690] sm:$0xff]  ;;  %v1210_v47 = vadd.f32 %v6517_v13, %v6638_v26 }
 0x150   : > { %8989 = vst [vmem:[#allocation48_spill] sm:$0xff] %v7029_v2  ;;  %v7034_v8 = vmax.f32 %v1238_v23, %v1495_v4  ;;  %v1223_v3 = vadd.f32 %v1108_v45, %v6330_v11  ;;  %v1110_v5 = vpop.f32.mrb[41].mxu0  ;;  %5028 = vmatpush1.bf16.msra.mxu0 %v7029_v2  ;;  %v4372_v4 = vld [vmem:[%s8885_s3 + $0x698] sm:$0xff]  ;;  %v4375_v11 = vld [vmem:[%s8885_s3 + $0x6b0] sm:$0xff] }
 0x151   : > { %v7041_v16 = vmax.f32 %v1239_v59, %v1496_v24  ;;  %v1224_v27 = vadd.f32 %v1110_v5, %v6422_v51  ;;  %5174 = vmatpush1.bf16.msra.mxu1 %v7039_v37  ;;  %5029 = vmatprep.subr.bf16.mxu0 %v8981_v18  ;;  %v7056_v51 = vpack.c.bf16 %v4375_v11, %v4372_v4  ;;  %v1671_v24 = vld [vmem:[%s8885_s3 + $0x148] sm:$0xff] }
 0x152   : > { %v1241_v23 = vmax.f32 %v1223_v3, 0.0  ;;  %v7069_v45 = vpack.c.bf16 %v1671_v24, %v1668_v52  ;;  %v7078_v11 = vpack.c.bf16 %v4374_v22, %v4371_v1  ;;  %v1219_v52 = vadd.f32 %v6602_v31, %v6638_v26 }
 0x153   : > { %v1242_v62 = vmax.f32 %v1224_v27, 0.0  ;;  %v4745_v59 = vpop.f32.mrb[42].mxu0  ;;  %5176 = vmatprep.subr.bf16.mxu1 %v7056_v51  ;;  %v1231_v27 = vmax.f32 %v1213_v42, 0.0  ;;  %v1216_v42 = vadd.f32 %v6607_v0, %v6638_v26 }
 0x154   : > { %8990 = vst [vmem:[#allocation49_spill] sm:$0xff] %v7069_v45  ;;  %v7074_v3 = vmax.f32 %v1241_v23, %v1498_v7  ;;  %v1470_v5 = vadd.f32 %v4745_v59, %v6638_v26  ;;  %v1436_v4 = vpop.f32.mrb[43].mxu0  ;;  %8991 = vst [vmem:[#allocation50_spill] sm:$0xff] %v7078_v11  ;;  %5031 = vmatpush1.bf16.msra.mxu0 %v7069_v45  ;;  %v1674_v7 = vld [vmem:[%s8885_s3 + $0x160] sm:$0xff]  ;;  %v1228_v23 = vmax.f32 %v1210_v47, 0.0 }
 0x155   : > { %v7080_v2 = vmax.f32 %v1242_v62, %v1499_v36  ;;  %v1467_v13 = vadd.f32 %v1436_v4, %v6638_v26  ;;  %5178 = vmatpush1.bf16.msra.mxu1 %v7078_v11  ;;  %5032 = vmatprep.subr.bf16.mxu0 %v8981_v18  ;;  %v1677_v36 = vld [vmem:[%s8885_s3 + $0x178] sm:$0xff]  ;;  %v1237_v11 = vmax.f32 %v1219_v52, 0.0  ;;  %v1225_v47 = vadd.f32 %v6660_v49, %v6638_v26  ;;  %v1680_v52 = vld [vmem:[%s8885_s3 + $0x190] sm:$0xff]  ;;  %v1683_v49 = vld [vmem:[%s8885_s3 + $0x1a8] sm:$0xff] }
 0x156   : > { %v1488_v24 = vmax.f32 %v1470_v5, 0.0  ;;  %5216 = vmatprep.subr.bf16.mxu1 %v6363_v29  ;;  %v7097_v31 = vpack.c.bf16 %v1677_v36, %v1674_v7  ;;  %v1234_v29 = vmax.f32 %v1216_v42, 0.0  ;;  %v7116_v42 = vpack.c.bf16 %v1683_v49, %v1680_v52  ;;  %v4222_v49 = vld [vmem:[%s8885_s3 + $0x248] sm:$0xff] }
 0x157   : > { %v1485_v1 = vmax.f32 %v1467_v13, 0.0  ;;  %v4748_v62 = vpop.f32.mrb[44].mxu0  ;;  %v1222_v13 = vadd.f32 %v6671_v35, %v6638_v26 }
 0x158   : > { %v1506_v59 = vmax.f32 %v1231_v27, %v1488_v24  ;;  %v1476_v22 = vadd.f32 %v4748_v62, %v6638_v26  ;;  %v1446_v5 = vpop.f32.mrb[45].mxu0  ;;  %5034 = vmatpush1.bf16.msra.mxu0 %v7097_v31 }
 0x159   : > { %v1503_v4 = vmax.f32 %v1228_v23, %v1485_v1  ;;  %v1473_v45 = vadd.f32 %v1446_v5, %v6638_v26  ;;  %5035 = vmatprep.subr.bf16.mxu0 %v8981_v18  ;;  %v1689_v5 = vld [vmem:[%s8885_s3 + $0x1d8] sm:$0xff] }
 0x15a   : > { %v1494_v0 = vmax.f32 %v1476_v22, 0.0  ;;  %1537 = vrot.lane.b32.xlu1 %v1506_v59, %s5890_s11  ;;  %v1240_v59 = vmax.f32 %v1222_v13, 0.0 }
 0x15b   : > { %v1491_v27 = vmax.f32 %v1473_v45, 0.0  ;;  %1533 = vrot.lane.b32.xlu0 %v1503_v4, %s5890_s11  ;;  %v4751_v24 = vpop.f32.mrb[46].mxu0  ;;  %v1243_v45 = vmax.f32 %v1225_v47, 0.0 }
 0x15c   : > { %v1512_v7 = vmax.f32 %v1237_v11, %v1494_v0  ;;  %v1482_v36 = vadd.f32 %v4751_v24, %v6638_v26  ;;  %v1456_v23 = vpop.f32.mrb[47].mxu0  ;;  %5037 = vmatpush1.bf16.msra.mxu0 %v7116_v42  ;;  %v1686_v11 = vld [vmem:[%s8885_s3 + $0x1c0] sm:$0xff]  ;;  %v1692_v0 = vld [vmem:[%s8885_s3 + $0x1f0] sm:$0xff]  ;;  %v1701_v24 = vld [vmem:[%s8885_s3 + $0x238] sm:$0xff] }
 0x15d   : > { %v1509_v1 = vmax.f32 %v1234_v29, %v1491_v27  ;;  %v1479_v35 = vadd.f32 %v1456_v23, %v6638_v26  ;;  %5038 = vmatprep.subr.bf16.mxu0 %v8981_v18  ;;  %v7130_v4 = vpack.c.bf16 %v1689_v5, %v1686_v11  ;;  %v1695_v29 = vld [vmem:[%s8885_s3 + $0x208] sm:$0xff]  ;;  %v1698_v27 = vld [vmem:[%s8885_s3 + $0x220] sm:$0xff] }
 0x15e   : > { %v1500_v62 = vmax.f32 %v1482_v36, 0.0  ;;  %v7143_v13 = vpack.c.bf16 %v1695_v29, %v1692_v0  ;;  %v7156_v52 = vpack.c.bf16 %v1701_v24, %v1698_v27 }
 0x15f   : > { %v1497_v22 = vmax.f32 %v1479_v35, 0.0  ;;  %1539 = vrot.lane.b32.xlu0 %v6977_v44, %s5890_s11  ;;  %1541 = vrot.lane.b32.xlu1 %v1509_v1, %s5890_s11 }
 0x160   : > { %v1518_v26 = vmax.f32 %v1243_v45, %v1500_v62  ;;  %5040 = vmatpush1.bf16.msra.mxu0 %v7130_v4 }
 0x161   : > { %v1515_v47 = vmax.f32 %v1240_v59, %v1497_v22  ;;  %5041 = vmatprep.subr.bf16.mxu0 %v8981_v18 }
 0x163   : > { %1543 = vrot.lane.b32.xlu0 %v7006_v32, %s5890_s11  ;;  %1545 = vrot.lane.b32.xlu1 %v1512_v7, %s5890_s11  ;;  %v4225_v7 = vld [vmem:[%s8885_s3 + $0x260] sm:$0xff] }
 0x164   : > { %5043 = vmatpush1.bf16.msra.mxu0 %v7143_v13  ;;  %v7169_v36 = vpack.c.bf16 %v4225_v7, %v4222_v49 }
 0x165   : > { %5044 = vmatprep.subr.bf16.mxu0 %v8981_v18 }
 0x167   : > { %1547 = vrot.lane.b32.xlu0 %v7041_v16, %s5890_s11  ;;  %1549 = vrot.lane.b32.xlu1 %v1515_v47, %s5890_s11 }
 0x168   : > { %5046 = vmatpush1.bf16.msra.mxu0 %v7156_v52 }
 0x169   : > { %5048 = vmatprep.subr.bf16.mxu0 %v7169_v36 }
 0x16b   : > { %932 = vrot.lane.b32.xlu0 %v6546_v15, %s5890_s11  ;;  %934 = vrot.lane.b32.xlu1 %v6743_v54, %s5890_s11 }
 0x16f   : > { %936 = vrot.lane.b32.xlu0 %v6588_v14, %s5890_s11  ;;  %938 = vrot.lane.b32.xlu1 %v6737_v57, %s5890_s11 }
 0x173   : > { %940 = vrot.lane.b32.xlu0 %v6624_v61, %s5890_s11  ;;  %942 = vrot.lane.b32.xlu1 %v6757_v17, %s5890_s11 }
 0x177   : > { %944 = vrot.lane.b32.xlu0 %v6657_v41, %s5890_s11  ;;  %946 = vrot.lane.b32.xlu1 %v6754_v55, %s5890_s11 }
 0x17b   : > { %948 = vrot.lane.b32.xlu0 %v6690_v28, %s5890_s11  ;;  %950 = vrot.lane.b32.xlu1 %v6767_v30, %s5890_s11 }
 0x17f   : > { %954 = vrot.lane.b32.xlu1 %v6765_v19, %s5890_s11  ;;  %952 = vrot.lane.b32.xlu0 %v6724_v50, %s5890_s11 }
 0x183   : > { %1553 = vrot.lane.b32.xlu1 %v1518_v26, %s5890_s11  ;;  %1551 = vrot.lane.b32.xlu0 %v7080_v2, %s5890_s11 }
 0x1b5   : > { %v1532_v57 = vpop.permute.xlu0 %1531 }
 0x1b9   : > { %v1536_v17 = vpop.permute.xlu1 %1535 }
 0x1cc   : > { %v1538_v54 = vpop.permute.xlu1 %1537 }
 0x1cd   : > { %v1556_v55 = vsel %vm956_vm0, %v1536_v17, %v1538_v54  ;;  %v1576_v23 = vmax.f32 %v6957_v12, %v1538_v54  ;;  %v1534_v1 = vpop.permute.xlu0 %1533  ;;  %v8992_v54 = vld [vmem:[#allocation7_spill] sm:$0xff] }
 0x1ce   : > { %v7198_v30 = vmax.f32 %v6946_v20, %v1556_v55  ;;  %v1555_v19 = vsel %vm956_vm0, %v1532_v57, %v1534_v1  ;;  %v1574_v35 = vmax.f32 %v6920_v48, %v1534_v1  ;;  %v4221_v55 = vld [vmem:[%s8885_s3 + $0x240] sm:$0xff] }
 0x1cf   : > { %1608 = vst.msk [vmem:[#allocation3 + $0x28] sm:$0xff] %vm956_vm0, %v1576_v23  ;;  %v7204_v45 = vmax.f32 %v6907_v40, %v1555_v19  ;;  %v8993_v19 = vld [vmem:[#allocation10_spill] sm:$0xff] }
 0x1d0   : > { %1607 = vst [vmem:[#allocation3 + $0x20] sm:$0xff] %v7198_v30  ;;  %1606 = vst.msk [vmem:[#allocation3 + $0x18] sm:$0xff] %vm956_vm0, %v1574_v35 }
 0x1d1   : > { %1605 = vst [vmem:[#allocation3 + $0x10] sm:$0xff] %v7204_v45  ;;  %v1540_v12 = vpop.permute.xlu0 %1539  ;;  %v1542_v62 = vpop.permute.xlu1 %1541 }
 0x1d2   : > { %v1557_v20 = vsel %vm956_vm0, %v1540_v12, %v1542_v62  ;;  %v1578_v59 = vmax.f32 %v6977_v44, %v1542_v62  ;;  %v8994_v62 = vld [vmem:[#allocation34_spill] sm:$0xff] }
 0x1d3   : > { %v7212_v22 = vmax.f32 %v6973_v9, %v1557_v20 }
 0x1d4   : > { %1610 = vst.msk [vmem:[#allocation3 + $0x38] sm:$0xff] %vm956_vm0, %v1578_v59  ;;  %v8995_v59 = vld [vmem:[#allocation21_spill] sm:$0xff] }
 0x1d5   : > { %1609 = vst [vmem:[#allocation3 + $0x30] sm:$0xff] %v7212_v22  ;;  %v1544_v40 = vpop.permute.xlu0 %1543  ;;  %v1546_v48 = vpop.permute.xlu1 %1545 }
 0x1d6   : > { %v1558_v11 = vsel %vm956_vm0, %v1544_v40, %v1546_v48  ;;  %v1580_v5 = vmax.f32 %v7006_v32, %v1546_v48  ;;  %v7231_v44 = vld [vmem:[#allocation3 + $0x28] sm:$0xff]  ;;  %v8996_v48 = vld [vmem:[#allocation12_spill] sm:$0xff] }
 0x1d7   : > { %v7219_v26 = vmax.f32 %v7000_v38, %v1558_v11  ;;  %v7221_v47 = vld [vmem:[#allocation3 + $0x18] sm:$0xff] }
 0x1d8   : > { %1612 = vst.msk [vmem:[#allocation3 + $0x48] sm:$0xff] %vm956_vm0, %v1580_v5  ;;  %4210 = vmatprep.mubr.msk.f32.mxu0 %vm956_vm0, %v7221_v47  ;;  %4377 = vmatprep.mubr.msk.f32.mxu1 %vm956_vm0, %v7221_v47  ;;  %v4227_v5 = vld [vmem:[%s8885_s3 + $0x270] sm:$0xff] }
 0x1d9   : > { %1611 = vst [vmem:[#allocation3 + $0x40] sm:$0xff] %v7219_v26  ;;  %1791 = vmatmul.mubr.f32.gmra.mrb[50].mxu0 %v7204_v45  ;;  %2435 = vmatmul.mubr.f32.vlgmr.msra.gmra.mrb[24].mxu1 %v7204_v45  ;;  %v1548_v32 = vpop.permute.xlu0 %1547  ;;  %v1550_v9 = vpop.permute.xlu1 %1549 }
 0x1da   : > { %5218 = vmatpush1.bf16.msra.mxu1 %v6374_v33  ;;  %v1559_v38 = vsel %vm956_vm0, %v1548_v32, %v1550_v9  ;;  %v1582_v0 = vmax.f32 %v7041_v16, %v1550_v9  ;;  %4211 = vmatprep.mubr.msk.f32.mxu0 %vm956_vm0, %v7231_v44  ;;  %v4234_v32 = vld [vmem:[%s8885_s3 + $0x2a8] sm:$0xff]  ;;  %v4237_v9 = vld [vmem:[%s8885_s3 + $0x2c0] sm:$0xff] }
 0x1db   : > { %v7239_v29 = vmax.f32 %v7034_v8, %v1559_v38  ;;  %4378 = vmatprep.mubr.msk.f32.mxu1 %vm956_vm0, %v7231_v44  ;;  %5220 = vmatprep.subr.bf16.mxu1 %v6376_v34  ;;  %v7248_v27 = vld [vmem:[#allocation3 + $0x38] sm:$0xff] }
 0x1dc   : > { %1614 = vst.msk [vmem:[#allocation3 + $0x58] sm:$0xff] %vm956_vm0, %v1582_v0  ;;  %v8997_v0 = vld [vmem:[#allocation37_spill] sm:$0xff] }
 0x1dd   : > { %1613 = vst [vmem:[#allocation3 + $0x50] sm:$0xff] %v7239_v29  ;;  %1797 = vmatmul.mubr.f32.gmra.mrb[52].mxu0 %v7198_v30  ;;  %2441 = vmatmul.mubr.f32.gmra.mrb[26].mxu1 %v7198_v30  ;;  %v933_v33 = vpop.permute.xlu0 %932  ;;  %v935_v16 = vpop.permute.xlu1 %934 }
 0x1de   : > { %5222 = vmatpush1.bf16.msra.mxu1 %v6397_v43  ;;  %v957_v8 = vsel %vm956_vm0, %v933_v33, %v935_v16  ;;  %v976_v24 = vmax.f32 %v6546_v15, %v935_v16  ;;  %4212 = vmatprep.mubr.msk.f32.mxu0 %vm956_vm0, %v7248_v27  ;;  %v8998_v16 = vld [vmem:[#allocation15_spill] sm:$0xff] }
 0x1df   : > { %v7256_v34 = vmax.f32 %v6531_v63, %v957_v8  ;;  %4379 = vmatprep.mubr.msk.f32.mxu1 %vm956_vm0, %v7248_v27  ;;  %5224 = vmatprep.subr.bf16.mxu1 %v6405_v46  ;;  %v7264_v15 = vld [vmem:[#allocation3 + $0x48] sm:$0xff] }
 0x1e0   : > { %1594 = vst.msk [vmem:[#allocation2 + $0x18] sm:$0xff] %vm956_vm0, %v976_v24 }
 0x1e1   : > { %v937_v49 = vpop.permute.xlu0 %936  ;;  %1803 = vmatmul.mubr.f32.gmra.mrb[54].mxu0 %v7212_v22  ;;  %2447 = vmatmul.mubr.f32.gmra.mrb[28].mxu1 %v7212_v22  ;;  %v939_v43 = vpop.permute.xlu1 %938 }
 0x1e2   : > { %5226 = vmatpush1.bf16.msra.mxu1 %v6425_v53  ;;  %v958_v63 = vsel %vm956_vm0, %v937_v49, %v939_v43  ;;  %v978_v7 = vmax.f32 %v6588_v14, %v939_v43  ;;  %4213 = vmatprep.mubr.msk.f32.mxu0 %vm956_vm0, %v7264_v15  ;;  %v8999_v43 = vld [vmem:[#allocation24_spill] sm:$0xff] }
 0x1e3   : > { %v7272_v46 = vmax.f32 %v6576_v58, %v958_v63  ;;  %4380 = vmatprep.mubr.msk.f32.mxu1 %vm956_vm0, %v7264_v15  ;;  %5228 = vmatprep.subr.bf16.mxu1 %v6433_v56  ;;  %v7281_v17 = vld [vmem:[#allocation3 + $0x58] sm:$0xff] }
 0x1e4   : > { %1596 = vst.msk [vmem:[#allocation2 + $0x28] sm:$0xff] %vm956_vm0, %v978_v7  ;;  %v7350_v7 = vpack.c.bf16 %v4237_v9, %v4234_v32  ;;  %v9004_v32 = vld [vmem:[#allocation20_spill] sm:$0xff] }
 0x1e5   : > { %1595 = vst [vmem:[#allocation2 + $0x20] sm:$0xff] %v7272_v46  ;;  %v941_v53 = vpop.permute.xlu0 %940  ;;  %1809 = vmatmul.mubr.f32.gmra.mrb[56].mxu0 %v7219_v26  ;;  %2453 = vmatmul.mubr.f32.gmra.mrb[30].mxu1 %v7219_v26  ;;  %v943_v14 = vpop.permute.xlu1 %942 }
 0x1e6   : > { %5230 = vmatpush1.bf16.msra.mxu1 %v6467_v6  ;;  %v959_v58 = vsel %vm956_vm0, %v941_v53, %v943_v14  ;;  %v980_v57 = vmax.f32 %v6624_v61, %v943_v14  ;;  %4214 = vmatprep.mubr.msk.f32.mxu0 %vm956_vm0, %v7281_v17  ;;  %v4224_v6 = vld [vmem:[%s8885_s3 + $0x258] sm:$0xff]  ;;  %v4231_v61 = vld [vmem:[%s8885_s3 + $0x290] sm:$0xff]  ;;  %v4233_v53 = vld [vmem:[%s8885_s3 + $0x2a0] sm:$0xff] }
 0x1e7   : > { %v7289_v56 = vmax.f32 %v6612_v21, %v959_v58  ;;  %4381 = vmatprep.mubr.msk.f32.mxu1 %vm956_vm0, %v7281_v17  ;;  %5232 = vmatprep.subr.bf16.mxu1 %v8992_v54  ;;  %v4228_v21 = vld [vmem:[%s8885_s3 + $0x278] sm:$0xff]  ;;  %v7315_v20 = vpack.c.bf16 %v4224_v6, %v4221_v55  ;;  %v9000_v14 = vld [vmem:[#allocation16_spill] sm:$0xff]  ;;  %v9001_v6 = vld [vmem:[#allocation18_spill] sm:$0xff] }
 0x1e8   : > { %1598 = vst.msk [vmem:[#allocation2 + $0x38] sm:$0xff] %vm956_vm0, %v980_v57  ;;  %v7321_v11 = vpack.c.bf16 %v4231_v61, %v4228_v21  ;;  %v4240_v58 = vld [vmem:[%s8885_s3 + $0x2d8] sm:$0xff]  ;;  %v4243_v57 = vld [vmem:[%s8885_s3 + $0x2f0] sm:$0xff] }
 0x1e9   : > { %1597 = vst [vmem:[#allocation2 + $0x30] sm:$0xff] %v7289_v56  ;;  %v945_v23 = vpop.permute.xlu0 %944  ;;  %1815 = vmatmul.mubr.f32.gmra.mrb[58].mxu0 %v7239_v29  ;;  %2459 = vmatmul.mubr.f32.gmra.mrb[32].mxu1 %v7239_v29  ;;  %v947_v1 = vpop.permute.xlu1 %946 }
 0x1ea   : > { %5234 = vmatpush1.bf16.msra.mxu1 %v8993_v19  ;;  %v960_v35 = vsel %vm956_vm0, %v945_v23, %v947_v1  ;;  %v982_v12 = vmax.f32 %v6657_v41, %v947_v1  ;;  %4215 = vmatprep.mubr.msk.f32.mxu0 %vm956_vm0, %v8994_v62  ;;  %v4230_v41 = vld [vmem:[%s8885_s3 + $0x288] sm:$0xff]  ;;  %v9002_v1 = vld [vmem:[#allocation27_spill] sm:$0xff] }
 0x1eb   : > { %v7318_v40 = vmax.f32 %v8995_v59, %v960_v35  ;;  %5236 = vmatprep.subr.bf16.mxu1 %v8996_v48  ;;  %v7342_v49 = vpack.c.bf16 %v4230_v41, %v4227_v5  ;;  %v7380_v35 = vpack.c.bf16 %v4243_v57, %v4240_v58  ;;  %v9003_v62 = vld [vmem:[#allocation19_spill] sm:$0xff]  ;;  %v4246_v59 = vld [vmem:[%s8885_s3 + $0x308] sm:$0xff]  ;;  %v4249_v48 = vld [vmem:[%s8885_s3 + $0x320] sm:$0xff] }
 0x1ec   : > { %1600 = vst.msk [vmem:[#allocation2 + $0x48] sm:$0xff] %vm956_vm0, %v982_v12  ;;  %v4239_v12 = vld [vmem:[%s8885_s3 + $0x2d0] sm:$0xff]  ;;  %v4254_v57 = vld [vmem:[%s8885_s3 + $0x348] sm:$0xff] }
 0x1ed   : > { %1599 = vst [vmem:[#allocation2 + $0x40] sm:$0xff] %v7318_v40  ;;  %v949_v38 = vpop.permute.xlu0 %948  ;;  %1886 = vmatmul.mubr.f32.vlgmr.msra.gmra.mrb[60].mxu0 %v8997_v0  ;;  %v951_v33 = vpop.permute.xlu1 %950  ;;  %v4251_v58 = vld [vmem:[%s8885_s3 + $0x330] sm:$0xff] }
 0x1ee   : > { %5238 = vmatpush1.bf16.msra.mxu1 %v8998_v16  ;;  %5050 = vmatpush1.bf16.msra.mxu0 %v7315_v20  ;;  %v961_v8 = vsel %vm956_vm0, %v949_v38, %v951_v33  ;;  %v984_v24 = vmax.f32 %v6690_v28, %v951_v33  ;;  %v4236_v28 = vld [vmem:[%s8885_s3 + $0x2b8] sm:$0xff]  ;;  %v7409_v16 = vpack.c.bf16 %v4249_v48, %v4246_v59 }
 0x1ef   : > { %v7345_v63 = vmax.f32 %v8999_v43, %v961_v8  ;;  %4216 = vmatprep.mubr.msk.f32.mxu0 %vm956_vm0, %v7221_v47  ;;  %5052 = vmatprep.subr.bf16.mxu0 %v7321_v11  ;;  %v7372_v23 = vpack.c.bf16 %v4236_v28, %v4233_v53  ;;  %v4245_v8 = vld [vmem:[%s8885_s3 + $0x300] sm:$0xff]  ;;  %v4255_v43 = vld [vmem:[%s8885_s3 + $0x350] sm:$0xff]  ;;  %v9006_v53 = vld [vmem:[#allocation23_spill] sm:$0xff] }
 0x1f0   : > { %1602 = vst.msk [vmem:[#allocation2 + $0x58] sm:$0xff] %vm956_vm0, %v984_v24  ;;  %5240 = vmatprep.subr.bf16.mxu1 %v9000_v14  ;;  %v9005_v24 = vld [vmem:[#allocation22_spill] sm:$0xff]  ;;  %v4264_v48 = vld [vmem:[%s8885_s3 + $0x398] sm:$0xff] }
 0x1f1   : > { %1601 = vst [vmem:[#allocation2 + $0x50] sm:$0xff] %v7345_v63  ;;  %1891 = vmatmul.mubr.f32.gmra.mrb[62].mxu0 %v7204_v45  ;;  %v955_v54 = vpop.permute.xlu1 %954  ;;  %v953_v55 = vpop.permute.xlu0 %952 }
 0x1f2   : > { %5054 = vmatpush1.bf16.msra.mxu0 %v7342_v49  ;;  %5242 = vmatpush1.bf16.msra.mxu1 %v9001_v6  ;;  %v986_v21 = vmax.f32 %v6724_v50, %v955_v54  ;;  %v962_v61 = vsel %vm956_vm0, %v953_v55, %v955_v54  ;;  %v4242_v50 = vld [vmem:[%s8885_s3 + $0x2e8] sm:$0xff]  ;;  %v4261_v6 = vld [vmem:[%s8885_s3 + $0x380] sm:$0xff] }
 0x1f3   : > { %v7375_v19 = vmax.f32 %v9002_v1, %v962_v61  ;;  %4217 = vmatprep.mubr.msk.f32.mxu0 %vm956_vm0, %v7231_v44  ;;  %5056 = vmatprep.subr.bf16.mxu0 %v7350_v7  ;;  %v7401_v0 = vpack.c.bf16 %v4242_v50, %v4239_v12  ;;  %v9007_v54 = vld [vmem:[#allocation25_spill] sm:$0xff]  ;;  %v7451_v61 = vpack.c.bf16 %v4254_v57, %v4251_v58  ;;  %v4257_v12 = vld [vmem:[%s8885_s3 + $0x360] sm:$0xff]  ;;  %v4260_v50 = vld [vmem:[%s8885_s3 + $0x378] sm:$0xff] }
 0x1f4   : > { %1604 = vst.msk [vmem:[#allocation2 + $0x68] sm:$0xff] %vm956_vm0, %v986_v21  ;;  %5244 = vmatprep.subr.bf16.mxu1 %v9003_v62  ;;  %v4258_v55 = vld [vmem:[%s8885_s3 + $0x368] sm:$0xff]  ;;  %v9008_v21 = vld [vmem:[#allocation26_spill] sm:$0xff]  ;;  %v9009_v62 = vld [vmem:[#allocation28_spill] sm:$0xff] }
 0x1f5   : > { %1896 = vmatmul.mubr.f32.gmra.mrb[64].mxu0 %v7198_v30  ;;  %v1554_v5 = vpop.permute.xlu1 %1553  ;;  %v1552_v41 = vpop.permute.xlu0 %1551  ;;  %v7467_v59 = vpack.c.bf16 %v4261_v6, %v4258_v55  ;;  %v4272_v55 = vld [vmem:[%s8885_s3 + $0x3d8] sm:$0xff] }
 0x1f6   : > { %5058 = vmatpush1.bf16.msra.mxu0 %v7372_v23  ;;  %5246 = vmatpush1.bf16.msra.mxu1 %v9004_v32  ;;  %v1584_v9 = vmax.f32 %v7080_v2, %v1554_v5  ;;  %v1560_v38 = vsel %vm956_vm0, %v1552_v41, %v1554_v5  ;;  %v4248_v2 = vld [vmem:[%s8885_s3 + $0x318] sm:$0xff]  ;;  %v4267_v5 = vld [vmem:[%s8885_s3 + $0x3b0] sm:$0xff]  ;;  %v9010_v41 = vld [vmem:[#allocation29_spill] sm:$0xff] }
 0x1f7   : > { %v7404_v33 = vmax.f32 %v7074_v3, %v1560_v38  ;;  %4218 = vmatprep.mubr.msk.f32.mxu0 %vm956_vm0, %v7248_v27  ;;  %5060 = vmatprep.subr.bf16.mxu0 %v7380_v35  ;;  %v4252_v3 = vld [vmem:[%s8885_s3 + $0x338] sm:$0xff]  ;;  %v7428_v28 = vpack.c.bf16 %v4248_v2, %v4245_v8  ;;  %v7487_v38 = vpack.c.bf16 %v4267_v5, %v4264_v48  ;;  %v4263_v8 = vld [vmem:[%s8885_s3 + $0x390] sm:$0xff]  ;;  %v4266_v2 = vld [vmem:[%s8885_s3 + $0x3a8] sm:$0xff] }
 0x1f8   : > { %1616 = vst.msk [vmem:[#allocation3 + $0x68] sm:$0xff] %vm956_vm0, %v1584_v9  ;;  %5248 = vmatprep.subr.bf16.mxu1 %v9005_v24  ;;  %v7433_v14 = vpack.c.bf16 %v4255_v43, %v4252_v3  ;;  %v7479_v32 = vld [vmem:[#allocation2 + $0x18] sm:$0xff]  ;;  %v7481_v9 = vpack.c.bf16 %v4260_v50, %v4257_v12  ;;  %v9011_v24 = vld [vmem:[#allocation30_spill] sm:$0xff]  ;;  %v4270_v3 = vld [vmem:[%s8885_s3 + $0x3c8] sm:$0xff]  ;;  %v7505_v58 = vpack.c.bf16 %v4266_v2, %v4263_v8 }
 0x1f9   : > { %1901 = vmatmul.mubr.f32.gmra.mrb[66].mxu0 %v7212_v22  ;;  %v4273_v43 = vld [vmem:[%s8885_s3 + $0x3e0] sm:$0xff]  ;;  %v4276_v6 = vld [vmem:[%s8885_s3 + $0x3f8] sm:$0xff]  ;;  %v4278_v48 = vld [vmem:[%s8885_s3 + $0x408] sm:$0xff] }
 0x1fa   : > { %5062 = vmatpush1.bf16.msra.mxu0 %v7401_v0  ;;  %5250 = vmatpush1.bf16.msra.mxu1 %v9006_v53  ;;  %v9012_v53 = vld [vmem:[#allocation32_spill] sm:$0xff]  ;;  %v7509_v57 = vpack.c.bf16 %v4273_v43, %v4270_v3  ;;  %v4282_v5 = vld [vmem:[%s8885_s3 + $0x428] sm:$0xff]  ;;  %v4288_v3 = vld [vmem:[%s8885_s3 + $0x458] sm:$0xff] }
 0x1fb   : > { %4219 = vmatprep.mubr.msk.f32.mxu0 %vm956_vm0, %v7264_v15  ;;  %5064 = vmatprep.subr.bf16.mxu0 %v7409_v16  ;;  %v4281_v2 = vld [vmem:[%s8885_s3 + $0x420] sm:$0xff]  ;;  %v7574_v43 = vld [vmem:[#allocation2 + $0x48] sm:$0xff] }
 0x1fc   : > { %5252 = vmatprep.subr.bf16.mxu1 %v9007_v54  ;;  %v4269_v54 = vld [vmem:[%s8885_s3 + $0x3c0] sm:$0xff] }
 0x1fd   : > { %1906 = vmatmul.mubr.f32.gmra.mrb[68].mxu0 %v7219_v26  ;;  %v7529_v12 = vpack.c.bf16 %v4272_v55, %v4269_v54  ;;  %v4287_v54 = vld [vmem:[%s8885_s3 + $0x450] sm:$0xff]  ;;  %v4290_v55 = vld [vmem:[%s8885_s3 + $0x468] sm:$0xff] }
 0x1fe   : > { %5066 = vmatpush1.bf16.msra.mxu0 %v7428_v28  ;;  %5254 = vmatpush1.bf16.msra.mxu1 %v9008_v21  ;;  %v4279_v21 = vld [vmem:[%s8885_s3 + $0x410] sm:$0xff] }
 0x1ff   : > { %4220 = vmatprep.mubr.msk.f32.mxu0 %vm956_vm0, %v7281_v17  ;;  %5068 = vmatprep.subr.bf16.mxu0 %v7433_v14  ;;  %v7456_v1 = vld [vmem:[#allocation3 + $0x68] sm:$0xff]  ;;  %v7533_v50 = vpack.c.bf16 %v4279_v21, %v4276_v6  ;;  %v7593_v6 = vld [vmem:[#allocation2 + $0x58] sm:$0xff]  ;;  %v4223_v21 = vld [vmem:[%s8885_s3 + $0x250] sm:$0xff] }
 0x200   : > { %4382 = vmatprep.mubr.msk.f32.mxu1 %vm956_vm0, %v7456_v1  ;;  %5256 = vmatprep.subr.bf16.mxu1 %v9009_v62  ;;  %v4275_v62 = vld [vmem:[%s8885_s3 + $0x3f0] sm:$0xff] }
 0x201   : > { %1911 = vmatmul.mubr.f32.gmra.mrb[70].mxu0 %v7239_v29  ;;  %2465 = vmatmul.mubr.f32.gmra.mrb[34].mxu1 %v7404_v33  ;;  %v7554_v8 = vpack.c.bf16 %v4278_v48, %v4275_v62  ;;  %v7610_v62 = vld [vmem:[#allocation2 + $0x68] sm:$0xff]  ;;  %v4229_v48 = vld [vmem:[%s8885_s3 + $0x280] sm:$0xff] }
 0x202   : > { %5070 = vmatpush1.bf16.msra.mxu0 %v7451_v61  ;;  %5258 = vmatpush1.bf16.msra.mxu1 %v9010_v41  ;;  %v7549_v41 = vld [vmem:[#allocation2 + $0x38] sm:$0xff] }
 0x203   : > { %4293 = vmatprep.mubr.msk.f32.mxu0 %vm956_vm0, %v7479_v32  ;;  %4389 = vmatprep.mubr.msk.f32.mxu1 %vm956_vm0, %v7479_v32 }
 0x204   : > { %5072 = vmatprep.subr.bf16.mxu0 %v7467_v59  ;;  %5260 = vmatprep.subr.bf16.mxu1 %v9011_v24  ;;  %v4284_v24 = vld [vmem:[%s8885_s3 + $0x438] sm:$0xff] }
 0x206   : > { %5074 = vmatpush1.bf16.msra.mxu0 %v7481_v9  ;;  %5262 = vmatpush1.bf16.msra.mxu1 %v9012_v53  ;;  %v7579_v53 = vpack.c.bf16 %v4284_v24, %v4281_v2  ;;  %v4247_v2 = vld [vmem:[%s8885_s3 + $0x310] sm:$0xff]  ;;  %v4253_v24 = vld [vmem:[%s8885_s3 + $0x340] sm:$0xff] }
 0x207   : > { %5076 = vmatprep.subr.bf16.mxu0 %v7487_v38  ;;  %5300 = vmatprep.subr.bf16.mxu1 %v7169_v36  ;;  %v7524_v36 = vld [vmem:[#allocation2 + $0x28] sm:$0xff] }
 0x209   : > { %2667 = vmatmul.mubr.f32.vlgmr.msra.gmra.mrb[36].mxu1 %v7256_v34 }
 0x20a   : > { %5078 = vmatpush1.bf16.msra.mxu0 %v7505_v58  ;;  %4390 = vmatprep.mubr.msk.f32.mxu1 %vm956_vm0, %v7524_v36 }
 0x20b   : > { %5302 = vmatpush1.bf16.msra.mxu1 %v7315_v20  ;;  %5080 = vmatprep.subr.bf16.mxu0 %v7509_v57  ;;  %v4285_v20 = vld [vmem:[%s8885_s3 + $0x440] sm:$0xff] }
 0x20c   : > { %5304 = vmatprep.subr.bf16.mxu1 %v7321_v11  ;;  %v7558_v11 = vpack.c.bf16 %v4285_v20, %v4282_v5  ;;  %v4238_v5 = vld [vmem:[%s8885_s3 + $0x2c8] sm:$0xff]  ;;  %v4241_v20 = vld [vmem:[%s8885_s3 + $0x2e0] sm:$0xff] }
 0x20d   : > { %2673 = vmatmul.mubr.f32.gmra.mrb[38].mxu1 %v7272_v46 }
 0x20e   : > { %5082 = vmatpush1.bf16.msra.mxu0 %v7529_v12  ;;  %4391 = vmatprep.mubr.msk.f32.mxu1 %vm956_vm0, %v7549_v41 }
 0x20f   : > { %5306 = vmatpush1.bf16.msra.mxu1 %v7342_v49  ;;  %5084 = vmatprep.subr.bf16.mxu0 %v7533_v50  ;;  %v4291_v49 = vld [vmem:[%s8885_s3 + $0x470] sm:$0xff] }
 0x210   : > { %5308 = vmatprep.subr.bf16.mxu1 %v7350_v7  ;;  %v7583_v7 = vpack.c.bf16 %v4291_v49, %v4288_v3  ;;  %v4259_v3 = vld [vmem:[%s8885_s3 + $0x370] sm:$0xff]  ;;  %v4265_v49 = vld [vmem:[%s8885_s3 + $0x3a0] sm:$0xff] }
 0x211   : > { %2679 = vmatmul.mubr.f32.gmra.mrb[40].mxu1 %v7289_v56 }
 0x212   : > { %5086 = vmatpush1.bf16.msra.mxu0 %v7554_v8  ;;  %4392 = vmatprep.mubr.msk.f32.mxu1 %vm956_vm0, %v7574_v43 }
 0x213   : > { %5310 = vmatpush1.bf16.msra.mxu1 %v7372_v23  ;;  %5088 = vmatprep.subr.bf16.mxu0 %v7558_v11  ;;  %v7598_v23 = vpack.c.bf16 %v4290_v55, %v4287_v54  ;;  %v4274_v55 = vld [vmem:[%s8885_s3 + $0x3e8] sm:$0xff] }
 0x214   : > { %5312 = vmatprep.subr.bf16.mxu1 %v7380_v35  ;;  %v4226_v35 = vld [vmem:[%s8885_s3 + $0x268] sm:$0xff] }
 0x215   : > { %2685 = vmatmul.mubr.f32.gmra.mrb[42].mxu1 %v7318_v40 }
 0x216   : > { %5090 = vmatpush1.bf16.msra.mxu0 %v7579_v53  ;;  %4393 = vmatprep.mubr.msk.f32.mxu1 %vm956_vm0, %v7593_v6 }
 0x217   : > { %5314 = vmatpush1.bf16.msra.mxu1 %v7401_v0  ;;  %5092 = vmatprep.subr.bf16.mxu0 %v7583_v7  ;;  %v7615_v0 = vpack.c.bf16 %v4226_v35, %v4223_v21  ;;  %v9013_v21 = vld [vmem:[#allocation5_spill] sm:$0xff]  ;;  %v4277_v35 = vld [vmem:[%s8885_s3 + $0x400] sm:$0xff] }
 0x218   : > { %5316 = vmatprep.subr.bf16.mxu1 %v7409_v16  ;;  %v4232_v16 = vld [vmem:[%s8885_s3 + $0x298] sm:$0xff] }
 0x219   : > { %2691 = vmatmul.mubr.f32.gmra.mrb[44].mxu1 %v7345_v63 }
 0x21a   : > { %5094 = vmatpush1.bf16.msra.mxu0 %v7598_v23  ;;  %4394 = vmatprep.mubr.msk.f32.mxu1 %vm956_vm0, %v7610_v62 }
 0x21b   : > { %5318 = vmatpush1.bf16.msra.mxu1 %v7428_v28  ;;  %5095 = vmatprep.subr.bf16.mxu0 %v8981_v18  ;;  %v7631_v28 = vpack.c.bf16 %v4232_v16, %v4229_v48  ;;  %v4280_v48 = vld [vmem:[%s8885_s3 + $0x418] sm:$0xff]  ;;  %v9015_v16 = vld [vmem:[#allocation8_spill] sm:$0xff] }
 0x21c   : > { %5320 = vmatprep.subr.bf16.mxu1 %v7433_v14  ;;  %v4235_v14 = vld [vmem:[%s8885_s3 + $0x2b0] sm:$0xff] }
 0x21d   : > { %2118 = vmatmul.mubr.f32.vlgmr.msra.gmra.mrb[48].mxu0 %v7256_v34  ;;  %2697 = vmatmul.mubr.f32.gmra.mrb[46].mxu1 %v7375_v19 }
 0x21e   : > { %4294 = vmatprep.mubr.msk.f32.mxu0 %vm956_vm0, %v7524_v36  ;;  %5097 = vmatpush1.bf16.msra.mxu0 %v7615_v0 }
 0x21f   : > { %5322 = vmatpush1.bf16.msra.mxu1 %v7451_v61  ;;  %4401 = vmatprep.mubr.msk.f32.mxu1 %vm956_vm0, %v7221_v47  ;;  %v7648_v61 = vpack.c.bf16 %v4238_v5, %v4235_v14  ;;  %v7748_v14 = vpack.c.bf16 %v4280_v48, %v4277_v35  ;;  %v9016_v5 = vld [vmem:[#allocation9_spill] sm:$0xff]  ;;  %v9023_v48 = vld [vmem:[#allocation35_spill] sm:$0xff] }
 0x220   : > { %5098 = vmatprep.subr.bf16.mxu0 %v8981_v18  ;;  %5324 = vmatprep.subr.bf16.mxu1 %v7467_v59  ;;  %v4244_v59 = vld [vmem:[%s8885_s3 + $0x2f8] sm:$0xff] }
 0x221   : > { %2124 = vmatmul.mubr.f32.gmra.mrb[50].mxu0 %v7272_v46 }
 0x222   : > { %4295 = vmatprep.mubr.msk.f32.mxu0 %vm956_vm0, %v7549_v41  ;;  %5100 = vmatpush1.bf16.msra.mxu0 %v7631_v28 }
 0x223   : > { %5326 = vmatpush1.bf16.msra.mxu1 %v7481_v9  ;;  %5101 = vmatprep.subr.bf16.mxu0 %v8981_v18  ;;  %v7663_v9 = vpack.c.bf16 %v4244_v59, %v4241_v20  ;;  %v4283_v20 = vld [vmem:[%s8885_s3 + $0x430] sm:$0xff]  ;;  %v4286_v59 = vld [vmem:[%s8885_s3 + $0x448] sm:$0xff] }
 0x224   : > { %5328 = vmatprep.subr.bf16.mxu1 %v7487_v38  ;;  %v4250_v38 = vld [vmem:[%s8885_s3 + $0x328] sm:$0xff] }
 0x225   : > { %2130 = vmatmul.mubr.f32.gmra.mrb[52].mxu0 %v7289_v56 }
 0x226   : > { %4296 = vmatprep.mubr.msk.f32.mxu0 %vm956_vm0, %v7574_v43  ;;  %5103 = vmatpush1.bf16.msra.mxu0 %v7648_v61 }
 0x227   : > { %5330 = vmatpush1.bf16.msra.mxu1 %v7505_v58  ;;  %5104 = vmatprep.subr.bf16.mxu0 %v8981_v18  ;;  %v7678_v58 = vpack.c.bf16 %v4250_v38, %v4247_v2  ;;  %v9017_v2 = vld [vmem:[#allocation11_spill] sm:$0xff]  ;;  %v7763_v38 = vpack.c.bf16 %v4286_v59, %v4283_v20  ;;  %v9024_v20 = vld [vmem:[#allocation38_spill] sm:$0xff] }
 0x228   : > { %5332 = vmatprep.subr.bf16.mxu1 %v7509_v57  ;;  %v4256_v57 = vld [vmem:[%s8885_s3 + $0x358] sm:$0xff] }
 0x229   : > { %2136 = vmatmul.mubr.f32.gmra.mrb[54].mxu0 %v7318_v40 }
 0x22a   : > { %4297 = vmatprep.mubr.msk.f32.mxu0 %vm956_vm0, %v7593_v6  ;;  %5106 = vmatpush1.bf16.msra.mxu0 %v7663_v9 }
 0x22b   : > { %5334 = vmatpush1.bf16.msra.mxu1 %v7529_v12  ;;  %5107 = vmatprep.subr.bf16.mxu0 %v8981_v18  ;;  %v7693_v12 = vpack.c.bf16 %v4256_v57, %v4253_v24  ;;  %v9018_v24 = vld [vmem:[#allocation13_spill] sm:$0xff]  ;;  %v4289_v57 = vld [vmem:[%s8885_s3 + $0x460] sm:$0xff] }
 0x22c   : > { %5336 = vmatprep.subr.bf16.mxu1 %v7533_v50  ;;  %v4262_v50 = vld [vmem:[%s8885_s3 + $0x388] sm:$0xff] }
 0x22d   : > { %2142 = vmatmul.mubr.f32.gmra.mrb[56].mxu0 %v7345_v63 }
 0x22e   : > { %4298 = vmatprep.mubr.msk.f32.mxu0 %vm956_vm0, %v7610_v62  ;;  %5109 = vmatpush1.bf16.msra.mxu0 %v7678_v58 }
 0x22f   : > { %5338 = vmatpush1.bf16.msra.mxu1 %v7554_v8  ;;  %5110 = vmatprep.subr.bf16.mxu0 %v8981_v18  ;;  %v7708_v8 = vpack.c.bf16 %v4262_v50, %v4259_v3  ;;  %v4292_v3 = vld [vmem:[%s8885_s3 + $0x478] sm:$0xff]  ;;  %v9019_v50 = vld [vmem:[#allocation14_spill] sm:$0xff] }
 0x230   : > { %5340 = vmatprep.subr.bf16.mxu1 %v7558_v11  ;;  %v4268_v11 = vld [vmem:[%s8885_s3 + $0x3b8] sm:$0xff] }
 0x231   : > { %2148 = vmatmul.mubr.f32.gmra.mrb[58].mxu0 %v7375_v19  ;;  %v7720_v54 = vpack.c.bf16 %v4268_v11, %v4265_v49  ;;  %v7778_v49 = vpack.c.bf16 %v4292_v3, %v4289_v57  ;;  %v9020_v11 = vld [vmem:[#allocation17_spill] sm:$0xff]  ;;  %v9025_v57 = vld [vmem:[#allocation39_spill] sm:$0xff] }
 0x232   : > { %5112 = vmatpush1.bf16.msra.mxu0 %v7693_v12  ;;  %4299 = vmatprep.mubr.msk.f32.mxu0 %vm956_vm0, %v7479_v32  ;;  %v9026_v3 = vld [vmem:[#allocation41_spill] sm:$0xff] }
 0x233   : > { %5342 = vmatpush1.bf16.msra.mxu1 %v7579_v53  ;;  %5113 = vmatprep.subr.bf16.mxu0 %v8981_v18  ;;  %v4271_v53 = vld [vmem:[%s8885_s3 + $0x3d0] sm:$0xff] }
 0x234   : > { %5344 = vmatprep.subr.bf16.mxu1 %v7583_v7  ;;  %v7733_v7 = vpack.c.bf16 %v4274_v55, %v4271_v53  ;;  %v9021_v53 = vld [vmem:[#allocation31_spill] sm:$0xff]  ;;  %v4307_v55 = vld [vmem:[%s8885_s3 + $0x490] sm:$0xff] }
 0x236   : > { %5115 = vmatpush1.bf16.msra.mxu0 %v7708_v8 }
 0x237   : > { %5346 = vmatpush1.bf16.msra.mxu1 %v7598_v23  ;;  %5116 = vmatprep.subr.bf16.mxu0 %v8981_v18  ;;  %v9014_v23 = vld [vmem:[#allocation6_spill] sm:$0xff] }
 0x238   : > { %5384 = vmatprep.subr.bf16.mxu1 %v9013_v21  ;;  %v4310_v21 = vld [vmem:[%s8885_s3 + $0x4a8] sm:$0xff] }
 0x239   : > { %v7796_v35 = vpack.c.bf16 %v4310_v21, %v4307_v55  ;;  %v4328_v55 = vld [vmem:[%s8885_s3 + $0x538] sm:$0xff] }
 0x23a   : > { %2881 = vmatmul.mubr.f32.vlgmr.msra.gmra.mrb[36].mxu1 %v7204_v45  ;;  %5118 = vmatpush1.bf16.msra.mxu0 %v7720_v54 }
 0x23b   : > { %4402 = vmatprep.mubr.msk.f32.mxu1 %vm956_vm0, %v7231_v44  ;;  %5386 = vmatpush1.bf16.msra.mxu1 %v9014_v23  ;;  %v9022_v23 = vld [vmem:[#allocation33_spill] sm:$0xff] }
 0x23c   : > { %5119 = vmatprep.subr.bf16.mxu0 %v8981_v18  ;;  %5388 = vmatprep.subr.bf16.mxu1 %v9015_v16  ;;  %v4313_v16 = vld [vmem:[%s8885_s3 + $0x4c0] sm:$0xff] }
 0x23e   : > { %2887 = vmatmul.mubr.f32.gmra.mrb[38].mxu1 %v7198_v30  ;;  %5121 = vmatpush1.bf16.msra.mxu0 %v7733_v7 }
 0x23f   : > { %4403 = vmatprep.mubr.msk.f32.mxu1 %vm956_vm0, %v7248_v27  ;;  %5390 = vmatpush1.bf16.msra.mxu1 %v9016_v5  ;;  %v4316_v5 = vld [vmem:[%s8885_s3 + $0x4d8] sm:$0xff] }
 0x240   : > { %5122 = vmatprep.subr.bf16.mxu0 %v8981_v18  ;;  %5392 = vmatprep.subr.bf16.mxu1 %v9017_v2  ;;  %v7812_v59 = vpack.c.bf16 %v4316_v5, %v4313_v16  ;;  %v4319_v2 = vld [vmem:[%s8885_s3 + $0x4f0] sm:$0xff]  ;;  %v4337_v16 = vld [vmem:[%s8885_s3 + $0x580] sm:$0xff]  ;;  %v4340_v5 = vld [vmem:[%s8885_s3 + $0x598] sm:$0xff] }
 0x242   : > { %2893 = vmatmul.mubr.f32.gmra.mrb[40].mxu1 %v7212_v22  ;;  %5124 = vmatpush1.bf16.msra.mxu0 %v7748_v14 }
 0x243   : > { %4404 = vmatprep.mubr.msk.f32.mxu1 %vm956_vm0, %v7264_v15  ;;  %5394 = vmatpush1.bf16.msra.mxu1 %v9018_v24  ;;  %v4322_v24 = vld [vmem:[%s8885_s3 + $0x508] sm:$0xff] }
 0x244   : > { %5125 = vmatprep.subr.bf16.mxu0 %v8981_v18  ;;  %5396 = vmatprep.subr.bf16.mxu1 %v9019_v50  ;;  %v7829_v50 = vpack.c.bf16 %v4322_v24, %v4319_v2  ;;  %v4343_v2 = vld [vmem:[%s8885_s3 + $0x5b0] sm:$0xff]  ;;  %v4346_v24 = vld [vmem:[%s8885_s3 + $0x5c8] sm:$0xff] }
 0x246   : > { %2899 = vmatmul.mubr.f32.gmra.mrb[42].mxu1 %v7219_v26  ;;  %5127 = vmatpush1.bf16.msra.mxu0 %v7763_v38 }
 0x247   : > { %4405 = vmatprep.mubr.msk.f32.mxu1 %vm956_vm0, %v7281_v17  ;;  %5398 = vmatpush1.bf16.msra.mxu1 %v9020_v11  ;;  %v9027_v11 = vld [vmem:[#allocation42_spill] sm:$0xff] }
 0x248   : > { %5128 = vmatprep.subr.bf16.mxu0 %v8981_v18  ;;  %5400 = vmatprep.subr.bf16.mxu1 %v9021_v53  ;;  %v4325_v53 = vld [vmem:[%s8885_s3 + $0x520] sm:$0xff] }
 0x249   : > { %v7844_v21 = vpack.c.bf16 %v4328_v55, %v4325_v53  ;;  %v4361_v55 = vld [vmem:[%s8885_s3 + $0x640] sm:$0xff] }
 0x24a   : > { %2905 = vmatmul.mubr.f32.gmra.mrb[44].mxu1 %v7239_v29  ;;  %5130 = vmatpush1.bf16.msra.mxu0 %v7778_v49 }
 0x24b   : > { %4406 = vmatprep.mubr.msk.f32.mxu1 %vm956_vm0, %v7456_v1  ;;  %5402 = vmatpush1.bf16.msra.mxu1 %v9022_v23  ;;  %v4331_v23 = vld [vmem:[%s8885_s3 + $0x550] sm:$0xff] }
 0x24c   : > { %5179 = vmatprep.subr.bf16.mxu0 %v8981_v18  ;;  %5404 = vmatprep.subr.bf16.mxu1 %v9023_v48  ;;  %v4334_v48 = vld [vmem:[%s8885_s3 + $0x568] sm:$0xff] }
 0x24d   : > { %2219 = vmatmul.mubr.f32.vlgmr.msra.gmra.mrb[60].mxu0 %v7256_v34 }
 0x24e   : > { %2911 = vmatmul.mubr.f32.gmra.mrb[46].mxu1 %v7404_v33  ;;  %4300 = vmatprep.mubr.msk.f32.mxu0 %vm956_vm0, %v7524_v36 }
 0x24f   : > { %5181 = vmatpush1.bf16.msra.mxu0 %v7796_v35  ;;  %5406 = vmatpush1.bf16.msra.mxu1 %v9024_v20  ;;  %v7874_v20 = vpack.c.bf16 %v4340_v5, %v4337_v16  ;;  %v4370_v16 = vld [vmem:[%s8885_s3 + $0x688] sm:$0xff] }
 0x250   : > { %4413 = vmatprep.mubr.msk.f32.mxu1 %vm956_vm0, %v7524_v36  ;;  %5182 = vmatprep.subr.bf16.mxu0 %v8981_v18 }
 0x251   : > { %2224 = vmatmul.mubr.f32.gmra.mrb[62].mxu0 %v7272_v46  ;;  %5408 = vmatprep.subr.bf16.mxu1 %v9025_v57  ;;  %v7889_v57 = vpack.c.bf16 %v4346_v24, %v4343_v2  ;;  %v4376_v2 = vld [vmem:[%s8885_s3 + $0x6b8] sm:$0xff] }
 0x252   : > { %4301 = vmatprep.mubr.msk.f32.mxu0 %vm956_vm0, %v7549_v41 }
 0x253   : > { %5184 = vmatpush1.bf16.msra.mxu0 %v7812_v59  ;;  %5410 = vmatpush1.bf16.msra.mxu1 %v9026_v3  ;;  %v4352_v3 = vld [vmem:[%s8885_s3 + $0x5f8] sm:$0xff] }
 0x254   : > { %5185 = vmatprep.subr.bf16.mxu0 %v8981_v18  ;;  %5412 = vmatprep.subr.bf16.mxu1 %v9027_v11 }
 0x255   : > { %2229 = vmatmul.mubr.f32.gmra.mrb[64].mxu0 %v7289_v56 }
 0x256   : > { %4302 = vmatprep.mubr.msk.f32.mxu0 %vm956_vm0, %v7574_v43 }
 0x257   : > { %5187 = vmatpush1.bf16.msra.mxu0 %v7829_v50  ;;  %5414 = vmatpush1.bf16.msra.mxu1 %v6927_v60  ;;  %v7859_v60 = vpack.c.bf16 %v4334_v48, %v4331_v23  ;;  %v4364_v23 = vld [vmem:[%s8885_s3 + $0x658] sm:$0xff] }
 0x258   : > { %5188 = vmatprep.subr.bf16.mxu0 %v8981_v18  ;;  %5416 = vmatprep.subr.bf16.mxu1 %v6938_v25  ;;  %v9028_v25 = vld [vmem:[#allocation45_spill] sm:$0xff]  ;;  %v7928_v48 = vpack.c.bf16 %v4364_v23, %v4361_v55 }
 0x259   : > { %2234 = vmatmul.mubr.f32.gmra.mrb[66].mxu0 %v7318_v40 }
 0x25a   : > { %4303 = vmatprep.mubr.msk.f32.mxu0 %vm956_vm0, %v7593_v6 }
 0x25b   : > { %5190 = vmatpush1.bf16.msra.mxu0 %v7844_v21  ;;  %5418 = vmatpush1.bf16.msra.mxu1 %v6966_v10  ;;  %v9029_v10 = vld [vmem:[#allocation47_spill] sm:$0xff] }
 0x25c   : > { %5191 = vmatprep.subr.bf16.mxu0 %v8981_v18  ;;  %5420 = vmatprep.subr.bf16.mxu1 %v9028_v25  ;;  %v4367_v25 = vld [vmem:[%s8885_s3 + $0x670] sm:$0xff] }
 0x25d   : > { %2239 = vmatmul.mubr.f32.gmra.mrb[68].mxu0 %v7345_v63  ;;  %v7941_v5 = vpack.c.bf16 %v4370_v16, %v4367_v25 }
 0x25e   : > { %4304 = vmatprep.mubr.msk.f32.mxu0 %vm956_vm0, %v7610_v62 }
 0x25f   : > { %5193 = vmatpush1.bf16.msra.mxu0 %v7859_v60  ;;  %5422 = vmatpush1.bf16.msra.mxu1 %v9029_v10  ;;  %v4373_v10 = vld [vmem:[%s8885_s3 + $0x6a0] sm:$0xff] }
 0x260   : > { %5194 = vmatprep.subr.bf16.mxu0 %v8981_v18  ;;  %5424 = vmatprep.subr.bf16.mxu1 %v7018_v39  ;;  %v4349_v39 = vld [vmem:[%s8885_s3 + $0x5e0] sm:$0xff]  ;;  %v7954_v24 = vpack.c.bf16 %v4376_v2, %v4373_v10 }
 0x261   : > { %2244 = vmatmul.mubr.f32.gmra.mrb[70].mxu0 %v7375_v19  ;;  %v7901_v11 = vpack.c.bf16 %v4352_v3, %v4349_v39  ;;  %v7957_v39 = vld [vmem:[#allocation2 + $0x78] sm:$0xff]  ;;  %v7965_v3 = vld [vmem:[#allocation2] sm:$0xff] }
 0x262   : > { %4383 = vmatprep.mubr.msk.f32.mxu0 %vm956_vm0, %v7221_v47  ;;  %v9030_v47 = vld [vmem:[#allocation50_spill] sm:$0xff] }
 0x263   : > { %5196 = vmatpush1.bf16.msra.mxu0 %v7874_v20  ;;  %5426 = vmatpush1.bf16.msra.mxu1 %v7039_v37  ;;  %v4355_v37 = vld [vmem:[%s8885_s3 + $0x610] sm:$0xff] }
 0x264   : > { %5197 = vmatprep.subr.bf16.mxu0 %v8981_v18  ;;  %5428 = vmatprep.subr.bf16.mxu1 %v7056_v51  ;;  %v4358_v51 = vld [vmem:[%s8885_s3 + $0x628] sm:$0xff] }
 0x265   : > { %v7915_v53 = vpack.c.bf16 %v4358_v51, %v4355_v37  ;;  %v9032_v37 = vld [vmem:[#allocation40_spill] sm:$0xff] }
 0x267   : > { %5199 = vmatpush1.bf16.msra.mxu0 %v7889_v57  ;;  %5430 = vmatpush1.bf16.msra.mxu1 %v9030_v47  ;;  %v9031_v47 = vld [vmem:[#allocation36_spill] sm:$0xff] }
 0x268   : > { %5200 = vmatprep.subr.bf16.mxu0 %v8981_v18  ;;  %5467 = vmatprep.subr.bf16.mxu1 %v8981_v18 }
 0x26a   : > { %3125 = vmatmul.mubr.f32.vlgmr.msra.gmra.mrb[36].mxu1 %v7272_v46 }
 0x26b   : > { %5202 = vmatpush1.bf16.msra.mxu0 %v7901_v11  ;;  %4414 = vmatprep.mubr.msk.f32.mxu1 %vm956_vm0, %v7549_v41 }
 0x26c   : > { %5203 = vmatprep.subr.bf16.mxu0 %v8981_v18 }
 0x26e   : > { %3131 = vmatmul.mubr.f32.gmra.mrb[38].mxu1 %v7289_v56 }
 0x26f   : > { %5205 = vmatpush1.bf16.msra.mxu0 %v7915_v53  ;;  %4415 = vmatprep.mubr.msk.f32.mxu1 %vm956_vm0, %v7574_v43 }
 0x270   : > { %5206 = vmatprep.subr.bf16.mxu0 %v8981_v18 }
 0x272   : > { %3137 = vmatmul.mubr.f32.gmra.mrb[40].mxu1 %v7318_v40 }
 0x273   : > { %5208 = vmatpush1.bf16.msra.mxu0 %v7928_v48  ;;  %4416 = vmatprep.mubr.msk.f32.mxu1 %vm956_vm0, %v7593_v6 }
 0x274   : > { %5209 = vmatprep.subr.bf16.mxu0 %v8981_v18 }
 0x276   : > { %3143 = vmatmul.mubr.f32.gmra.mrb[42].mxu1 %v7345_v63 }
 0x277   : > { %5211 = vmatpush1.bf16.msra.mxu0 %v7941_v5  ;;  %4417 = vmatprep.mubr.msk.f32.mxu1 %vm956_vm0, %v7610_v62 }
 0x278   : > { %5212 = vmatprep.subr.bf16.mxu0 %v8981_v18 }
 0x27a   : > { %3149 = vmatmul.mubr.f32.gmra.mrb[44].mxu1 %v7375_v19 }
 0x27b   : > { %5214 = vmatpush1.bf16.msra.mxu0 %v7954_v24  ;;  %4418 = vmatprep.mubr.msk.f32.mxu1 %vm956_vm0, %v7957_v39 }
 0x27c   : > { %5263 = vmatprep.subr.bf16.mxu0 %v8981_v18 }
 0x27e   : > { %2536 = vmatmul.mubr.f32.vlgmr.msra.gmra.mrb[60].mxu0 %v7204_v45  ;;  %3155 = vmatmul.mubr.f32.gmra.mrb[46].mxu1 %v7965_v3  ;;  %v9033_v45 = vld [vmem:[#allocation43_spill] sm:$0xff] }
 0x27f   : > { %4384 = vmatprep.mubr.msk.f32.mxu0 %vm956_vm0, %v7231_v44  ;;  %5265 = vmatpush1.bf16.msra.mxu0 %v9031_v47  ;;  %v9036_v44 = vld [vmem:[#allocation48_spill] sm:$0xff] }
 0x280   : > { %5266 = vmatprep.subr.bf16.mxu0 %v8981_v18 }
 0x282   : > { %2541 = vmatmul.mubr.f32.gmra.mrb[62].mxu0 %v7198_v30  ;;  %v9034_v30 = vld [vmem:[#allocation44_spill] sm:$0xff] }
 0x283   : > { %4385 = vmatprep.mubr.msk.f32.mxu0 %vm956_vm0, %v7248_v27  ;;  %5268 = vmatpush1.bf16.msra.mxu0 %v9032_v37 }
 0x284   : > { %5269 = vmatprep.subr.bf16.mxu0 %v8981_v18 }
 0x286   : > { %2546 = vmatmul.mubr.f32.gmra.mrb[64].mxu0 %v7212_v22  ;;  %v9035_v22 = vld [vmem:[#allocation46_spill] sm:$0xff] }
 0x287   : > { %4386 = vmatprep.mubr.msk.f32.mxu0 %vm956_vm0, %v7264_v15  ;;  %5271 = vmatpush1.bf16.msra.mxu0 %v9033_v45 }
 0x288   : > { %5272 = vmatprep.subr.bf16.mxu0 %v8981_v18 }
 0x28a   : > { %2551 = vmatmul.mubr.f32.gmra.mrb[66].mxu0 %v7219_v26  ;;  %v9037_v26 = vld [vmem:[#allocation49_spill] sm:$0xff] }
 0x28b   : > { %4387 = vmatprep.mubr.msk.f32.mxu0 %vm956_vm0, %v7281_v17  ;;  %5274 = vmatpush1.bf16.msra.mxu0 %v9034_v30 }
 0x28c   : > { %5275 = vmatprep.subr.bf16.mxu0 %v8981_v18 }
 0x28e   : > { %2556 = vmatmul.mubr.f32.gmra.mrb[68].mxu0 %v7239_v29 }
 0x28f   : > { %4388 = vmatprep.mubr.msk.f32.mxu0 %vm956_vm0, %v7456_v1  ;;  %5277 = vmatpush1.bf16.msra.mxu0 %v9035_v22 }
 0x290   : > { %5278 = vmatprep.subr.bf16.mxu0 %v8981_v18 }
 0x292   : > { %2561 = vmatmul.mubr.f32.gmra.mrb[70].mxu0 %v7404_v33 }
 0x293   : > { %5280 = vmatpush1.bf16.msra.mxu0 %v9036_v44  ;;  %4395 = vmatprep.mubr.msk.f32.mxu0 %vm956_vm0, %v7479_v32 }
 0x294   : > { %5281 = vmatprep.subr.bf16.mxu0 %v8981_v18 }
 0x297   : > { %5283 = vmatpush1.bf16.msra.mxu0 %v9037_v26 }
 0x298   : > { %5284 = vmatprep.subr.bf16.mxu0 %v8981_v18 }
 0x29b   : > { %5286 = vmatpush1.bf16.msra.mxu0 %v7097_v31 }
 0x29c   : > { %5287 = vmatprep.subr.bf16.mxu0 %v8981_v18 }
 0x29f   : > { %5289 = vmatpush1.bf16.msra.mxu0 %v7116_v42 }
 0x2a0   : > { %5290 = vmatprep.subr.bf16.mxu0 %v8981_v18 }
 0x2a3   : > { %5292 = vmatpush1.bf16.msra.mxu0 %v7130_v4 }
 0x2a4   : > { %5293 = vmatprep.subr.bf16.mxu0 %v8981_v18 }
 0x2a7   : > { %5295 = vmatpush1.bf16.msra.mxu0 %v7143_v13 }
 0x2a8   : > { %5296 = vmatprep.subr.bf16.mxu0 %v8981_v18 }
 0x2ab   : > { %5298 = vmatpush1.bf16.msra.mxu0 %v7156_v52 }
 0x2ac   : > { %v8008_v29 = vpop.f32.mrb[24].mxu1  ;;  %5347 = vmatprep.subr.bf16.mxu0 %v8981_v18 }
 0x2ad   : > { %v8011_v31 = vpop.f32.mrb[25].mxu1 }
 0x2ae   : > { %2768 = vmatmul.mubr.f32.vlgmr.msra.gmra.mrb[72].mxu0 %v7256_v34 }
 0x2af   : > { %4396 = vmatprep.mubr.msk.f32.mxu0 %vm956_vm0, %v7524_v36  ;;  %5349 = vmatpush1.bf16.msra.mxu0 %v7615_v0  ;;  %v5867_v0 = vld [vmem:[#allocation3 + $0x10] sm:$0xff] }
 0x2b0   : > { %v8017_v42 = vpop.f32.mrb[26].mxu1  ;;  %5350 = vmatprep.subr.bf16.mxu0 %v8981_v18 }
 0x2b1   : > { %v8020_v4 = vpop.f32.mrb[27].mxu1 }
 0x2b2   : > { %2773 = vmatmul.mubr.f32.gmra.mrb[74].mxu0 %v7272_v46 }
 0x2b3   : > { %4397 = vmatprep.mubr.msk.f32.mxu0 %vm956_vm0, %v7549_v41  ;;  %5352 = vmatpush1.bf16.msra.mxu0 %v7631_v28  ;;  %v5868_v28 = vld [vmem:[#allocation3 + $0x28] sm:$0xff] }
 0x2b4   : > { %v8026_v13 = vpop.f32.mrb[28].mxu1  ;;  %5353 = vmatprep.subr.bf16.mxu0 %v8981_v18 }
 0x2b5   : > { %v8029_v52 = vpop.f32.mrb[29].mxu1 }
 0x2b6   : > { %2778 = vmatmul.mubr.f32.gmra.mrb[76].mxu0 %v7289_v56 }
 0x2b7   : > { %4398 = vmatprep.mubr.msk.f32.mxu0 %vm956_vm0, %v7574_v43  ;;  %5355 = vmatpush1.bf16.msra.mxu0 %v7648_v61  ;;  %v5869_v61 = vld [vmem:[#allocation3 + $0x20] sm:$0xff] }
 0x2b8   : > { %v8035_v27 = vpop.f32.mrb[30].mxu1  ;;  %5356 = vmatprep.subr.bf16.mxu0 %v8981_v18 }
 0x2b9   : > { %v8038_v34 = vpop.f32.mrb[31].mxu1 }
 0x2ba   : > { %2783 = vmatmul.mubr.f32.gmra.mrb[78].mxu0 %v7318_v40  ;;  %v5866_v40 = vld [vmem:[#allocation3 + $0x18] sm:$0xff] }
 0x2bb   : > { %4399 = vmatprep.mubr.msk.f32.mxu0 %vm956_vm0, %v7593_v6  ;;  %5358 = vmatpush1.bf16.msra.mxu0 %v7663_v9  ;;  %v5870_v9 = vld [vmem:[#allocation3 + $0x38] sm:$0xff] }
 0x2bc   : > { %v8044_v46 = vpop.f32.mrb[32].mxu1  ;;  %5359 = vmatprep.subr.bf16.mxu0 %v8981_v18 }
 0x2bd   : > { %v8047_v56 = vpop.f32.mrb[33].mxu1 }
 0x2be   : > { %2788 = vmatmul.mubr.f32.gmra.mrb[80].mxu0 %v7345_v63 }
 0x2bf   : > { %4400 = vmatprep.mubr.msk.f32.mxu0 %vm956_vm0, %v7610_v62  ;;  %5361 = vmatpush1.bf16.msra.mxu0 %v7678_v58  ;;  %v5871_v58 = vld [vmem:[#allocation3 + $0x30] sm:$0xff] }
 0x2c0   : > { %5362 = vmatprep.subr.bf16.mxu0 %v8981_v18 }
 0x2c2   : > { %2793 = vmatmul.mubr.f32.gmra.mrb[82].mxu0 %v7375_v19 }
 0x2c3   : > { %5364 = vmatpush1.bf16.msra.mxu0 %v7693_v12  ;;  %4407 = vmatprep.mubr.msk.f32.mxu0 %vm956_vm0, %v5866_v40  ;;  %v5872_v12 = vld [vmem:[#allocation3 + $0x40] sm:$0xff]  ;;  %v5877_v40 = vld [vmem:[#allocation2 + $0x50] sm:$0xff] }
 0x2c4   : > { %5365 = vmatprep.subr.bf16.mxu0 %v8981_v18 }
 0x2c7   : > { %5367 = vmatpush1.bf16.msra.mxu0 %v7708_v8  ;;  %v8087_v8 = vld [vmem:[%s8886_s4] sm:$0x7] }
 0x2c8   : > { %5368 = vmatprep.subr.bf16.mxu0 %v8981_v18 }
 0x2cb   : > { %5370 = vmatpush1.bf16.msra.mxu0 %v7720_v54  ;;  %v9038_v54 = vld [vmem:[#allocation4_spill] sm:$0xff] }
 0x2cc   : > { %5371 = vmatprep.subr.bf16.mxu0 %v8981_v18 }
 0x2cf   : > { %5373 = vmatpush1.bf16.msra.mxu0 %v7733_v7 }
 0x2d0   : > { %5374 = vmatprep.subr.bf16.mxu0 %v8981_v18 }
 0x2d3   : > { %5376 = vmatpush1.bf16.msra.mxu0 %v7748_v14  ;;  %v5873_v14 = vld [vmem:[#allocation3 + $0x50] sm:$0xff] }
 0x2d4   : > { %v8065_v63 = vpop.f32.mrb[34].mxu1  ;;  %5377 = vmatprep.subr.bf16.mxu0 %v8981_v18 }
 0x2d5   : > { %v8068_v32 = vpop.f32.mrb[35].mxu1 }
 0x2d7   : > { %5379 = vmatpush1.bf16.msra.mxu0 %v7763_v38  ;;  %v9040_v38 = vsub.s32 1, %v9038_v54 }
 0x2d8   : > { %5380 = vmatprep.subr.bf16.mxu0 %v8981_v18 }
 0x2db   : > { %5382 = vmatpush1.bf16.msra.mxu0 %v7778_v49  ;;  %v8101_v49 = vrot.slane %v8087_v8, %v9040_v38 }
 0x2dc   : > { %5431 = vmatprep.subr.bf16.mxu0 %v8981_v18 }
 0x2de   : > { %2982 = vmatmul.mubr.f32.vlgmr.msra.gmra.mrb[72].mxu0 %v5867_v0 }
 0x2df   : > { %4408 = vmatprep.mubr.msk.f32.mxu0 %vm956_vm0, %v5868_v28  ;;  %5433 = vmatpush1.bf16.msra.mxu0 %v7796_v35 }
 0x2e0   : > { %5434 = vmatprep.subr.bf16.mxu0 %v8981_v18 }
 0x2e2   : > { %2987 = vmatmul.mubr.f32.gmra.mrb[74].mxu0 %v5869_v61 }
 0x2e3   : > { %4409 = vmatprep.mubr.msk.f32.mxu0 %vm956_vm0, %v5870_v9  ;;  %5436 = vmatpush1.bf16.msra.mxu0 %v7812_v59 }
 0x2e4   : > { %5437 = vmatprep.subr.bf16.mxu0 %v8981_v18 }
 0x2e6   : > { %2992 = vmatmul.mubr.f32.gmra.mrb[76].mxu0 %v5871_v58 }
 0x2e7   : > { %4410 = vmatprep.mubr.msk.f32.mxu0 %vm956_vm0, %v7264_v15  ;;  %5439 = vmatpush1.bf16.msra.mxu0 %v7829_v50  ;;  %v9039_v15 = vsub.s32 0, %v9038_v54 }
 0x2e8   : > { %5440 = vmatprep.subr.bf16.mxu0 %v8981_v18 }
 0x2e9   : > { %v8096_v7 = vrot.slane %v8087_v8, %v9039_v15 }
 0x2ea   : > { %2997 = vmatmul.mubr.f32.gmra.mrb[78].mxu0 %v5872_v12 }
 0x2eb   : > { %4411 = vmatprep.mubr.msk.f32.mxu0 %vm956_vm0, %v7281_v17  ;;  %5442 = vmatpush1.bf16.msra.mxu0 %v7844_v21 }
 0x2ec   : > { %5443 = vmatprep.subr.bf16.mxu0 %v8981_v18 }
 0x2ee   : > { %3002 = vmatmul.mubr.f32.gmra.mrb[80].mxu0 %v5873_v14 }
 0x2ef   : > { %4412 = vmatprep.mubr.msk.f32.mxu0 %vm956_vm0, %v7456_v1  ;;  %5445 = vmatpush1.bf16.msra.mxu0 %v7859_v60 }
 0x2f0   : > { %v2119_v17 = vpop.f32.mrb[48].mxu0  ;;  %5446 = vmatprep.subr.bf16.mxu0 %v8981_v18 }
 0x2f1   : > { %v5707_v35 = vadd.f32 %v2119_v17, %v8096_v7  ;;  %v2121_v59 = vpop.f32.mrb[49].mxu0 }
 0x2f2   : > { %v5709_v50 = vadd.f32 %v2121_v59, %v8101_v49  ;;  %3007 = vmatmul.mubr.f32.gmra.mrb[82].mxu0 %v7404_v33 }
 0x2f3   : > { %v8111_v21 = vadd.f32 %v5707_v35, %v8008_v29  ;;  %5448 = vmatpush1.bf16.msra.mxu0 %v7874_v20  ;;  %4419 = vmatprep.mubr.msk.f32.mxu0 %vm956_vm0, %v7524_v36 }
 0x2f4   : > { %v8117_v1 = vadd.f32 %v5709_v50, %v8011_v31  ;;  %v2125_v60 = vpop.f32.mrb[50].mxu0  ;;  %5449 = vmatprep.subr.bf16.mxu0 %v8981_v18 }
 0x2f5   : > { %v5711_v51 = vadd.f32 %v2125_v60, %v8096_v7  ;;  %v2127_v55 = vpop.f32.mrb[51].mxu0 }
 0x2f6   : > { %v5713_v23 = vadd.f32 %v2127_v55, %v8101_v49  ;;  %v2585_v0 = vmax.f32 %v8117_v1, 0.0 }
 0x2f7   : > { %v8123_v33 = vadd.f32 %v5711_v51, %v8017_v42  ;;  %5451 = vmatpush1.bf16.msra.mxu0 %v7889_v57 }
 0x2f8   : > { %v8127_v20 = vadd.f32 %v5713_v23, %v8020_v4  ;;  %v2131_v36 = vpop.f32.mrb[52].mxu0  ;;  %5452 = vmatprep.subr.bf16.mxu0 %v8981_v18 }
 0x2f9   : > { %v5715_v25 = vadd.f32 %v2131_v36, %v8096_v7  ;;  %v2133_v16 = vpop.f32.mrb[53].mxu0  ;;  %v2587_v58 = vmax.f32 %v8123_v33, 0.0 }
 0x2fa   : > { %v5717_v10 = vadd.f32 %v2133_v16, %v8101_v49  ;;  %v2588_v15 = vmax.f32 %v8127_v20, 0.0 }
 0x2fb   : > { %v8133_v2 = vadd.f32 %v5715_v25, %v8026_v13  ;;  %5454 = vmatpush1.bf16.msra.mxu0 %v7901_v11 }
 0x2fc   : > { %v8137_v47 = vadd.f32 %v5717_v10, %v8029_v52  ;;  %v2137_v57 = vpop.f32.mrb[54].mxu0  ;;  %5455 = vmatprep.subr.bf16.mxu0 %v8981_v18 }
 0x2fd   : > { %v5719_v37 = vadd.f32 %v2137_v57, %v8096_v7  ;;  %v2139_v45 = vpop.f32.mrb[55].mxu0  ;;  %v2590_v1 = vmax.f32 %v8133_v2, 0.0 }
 0x2fe   : > { %v5721_v30 = vadd.f32 %v2139_v45, %v8101_v49  ;;  %v2591_v51 = vmax.f32 %v8137_v47, 0.0 }
 0x2ff   : > { %v8143_v22 = vadd.f32 %v5719_v37, %v8035_v27  ;;  %5457 = vmatpush1.bf16.msra.mxu0 %v7915_v53 }
 0x300   : > { %v8147_v44 = vadd.f32 %v5721_v30, %v8038_v34  ;;  %v2143_v11 = vpop.f32.mrb[56].mxu0  ;;  %5458 = vmatprep.subr.bf16.mxu0 %v8981_v18 }
 0x301   : > { %v5723_v26 = vadd.f32 %v2143_v11, %v8096_v7  ;;  %v2145_v29 = vpop.f32.mrb[57].mxu0  ;;  %v2593_v10 = vmax.f32 %v8143_v22, 0.0 }
 0x302   : > { %v5725_v31 = vadd.f32 %v2145_v29, %v8101_v49  ;;  %v2594_v57 = vmax.f32 %v8147_v44, 0.0 }
 0x303   : > { %v8153_v42 = vadd.f32 %v5723_v26, %v8044_v46  ;;  %5460 = vmatpush1.bf16.msra.mxu0 %v7928_v48  ;;  %v5874_v48 = vld [vmem:[#allocation2 + $0x20] sm:$0xff] }
 0x304   : > { %v8157_v4 = vadd.f32 %v5725_v31, %v8047_v56  ;;  %v2149_v53 = vpop.f32.mrb[58].mxu0  ;;  %5461 = vmatprep.subr.bf16.mxu0 %v8981_v18  ;;  %v5875_v56 = vld [vmem:[#allocation2 + $0x30] sm:$0xff] }
 0x305   : > { %v5727_v13 = vadd.f32 %v2149_v53, %v8096_v7  ;;  %v2151_v52 = vpop.f32.mrb[59].mxu0  ;;  %v2596_v31 = vmax.f32 %v8153_v42, 0.0 }
 0x306   : > { %v5729_v27 = vadd.f32 %v2151_v52, %v8101_v49  ;;  %v2597_v53 = vmax.f32 %v8157_v4, 0.0 }
 0x307   : > { %v8163_v34 = vadd.f32 %v5727_v13, %v8065_v63  ;;  %5463 = vmatpush1.bf16.msra.mxu0 %v7941_v5  ;;  %v5876_v5 = vld [vmem:[#allocation2 + $0x40] sm:$0xff] }
 0x308   : > { %v8167_v46 = vadd.f32 %v5729_v27, %v8068_v32  ;;  %5464 = vmatprep.subr.bf16.mxu0 %v8981_v18 }
 0x30b   : > { %5466 = vmatpush1.bf16.msra.mxu0 %v7954_v24 }
 0x30c   : > { %5683 = vmatprep.subr.bf16.mxu0 %v8981_v18 }
 0x30e   : > { %3226 = vmatmul.mubr.f32.vlgmr.msra.gmra.mrb[72].mxu0 %v5874_v48 }
 0x30f   : > { %4420 = vmatprep.mubr.msk.f32.mxu0 %vm956_vm0, %v7549_v41 }
 0x312   : > { %3231 = vmatmul.mubr.f32.gmra.mrb[74].mxu0 %v5875_v56 }
 0x313   : > { %4421 = vmatprep.mubr.msk.f32.mxu0 %vm956_vm0, %v7574_v43 }
 0x316   : > { %3236 = vmatmul.mubr.f32.gmra.mrb[76].mxu0 %v5876_v5 }
 0x317   : > { %4422 = vmatprep.mubr.msk.f32.mxu0 %vm956_vm0, %v7593_v6  ;;  %v2584_v6 = vmax.f32 %v8111_v21, 0.0 }
 0x31a   : > { %3241 = vmatmul.mubr.f32.gmra.mrb[78].mxu0 %v5877_v40 }
 0x31b   : > { %4423 = vmatprep.mubr.msk.f32.mxu0 %vm956_vm0, %v7610_v62 }
 0x31e   : > { %3246 = vmatmul.mubr.f32.gmra.mrb[80].mxu0 %v7375_v19 }
 0x31f   : > { %4424 = vmatprep.mubr.msk.f32.mxu0 %vm956_vm0, %v7957_v39 }
 0x322   : > { %3251 = vmatmul.mubr.f32.gmra.mrb[82].mxu0 %v7965_v3 }
 0x33d   : > { %v3126_v41 = vpop.f32.mrb[36].mxu1 }
 0x33e   : > { %v5737_v43 = vadd.f32 %v3126_v41, %v8096_v7  ;;  %v3128_v24 = vpop.f32.mrb[37].mxu1  ;;  %v2599_v41 = vmax.f32 %v8163_v34, 0.0 }
 0x33f   : > { %v5738_v63 = vadd.f32 %v3128_v24, %v8101_v49 }
 0x340   : > { %v3274_v32 = vmax.f32 %v5737_v43, 0.0  ;;  %v2600_v43 = vmax.f32 %v8167_v46, 0.0 }
 0x341   : > { %v3275_v28 = vmax.f32 %v5738_v63, 0.0  ;;  %v3132_v62 = vpop.f32.mrb[38].mxu1 }
 0x342   : > { %v8188_v61 = vmax.f32 %v2584_v6, %v3274_v32  ;;  %v5739_v19 = vadd.f32 %v3132_v62, %v8096_v7  ;;  %v3134_v39 = vpop.f32.mrb[39].mxu1 }
 0x343   : > { %v8191_v9 = vmax.f32 %v2585_v0, %v3275_v28  ;;  %v5740_v3 = vadd.f32 %v3134_v39, %v8101_v49 }
 0x344   : > { %v3277_v12 = vmax.f32 %v5739_v19, 0.0 }
 0x345   : > { %v3278_v14 = vmax.f32 %v5740_v3, 0.0  ;;  %3322 = vrot.lane.b32.xlu0 %v8191_v9, %s5890_s11  ;;  %v3138_v38 = vpop.f32.mrb[40].mxu1  ;;  %v3377_v3 = vld [vmem:[%s8887_s5] sm:$0xff] }
 0x346   : > { %v8198_v17 = vmax.f32 %v2587_v58, %v3277_v12  ;;  %v5741_v35 = vadd.f32 %v3138_v38, %v8096_v7  ;;  %v3140_v59 = vpop.f32.mrb[41].mxu1  ;;  %v3378_v58 = vld [vmem:[%s8887_s5 + $0x8] sm:$0xff]  ;;  %v3379_v12 = vld [vmem:[%s8887_s5 + $0x10] sm:$0xff] }
 0x347   : > { %v8201_v50 = vmax.f32 %v2588_v15, %v3278_v14  ;;  %v5742_v21 = vadd.f32 %v3140_v59, %v8101_v49  ;;  %v5468_v15 = vpack.c.bf16 %v3378_v58, %v3377_v3  ;;  %v3380_v14 = vld [vmem:[%s8887_s5 + $0x18] sm:$0xff]  ;;  %v3382_v59 = vld [vmem:[%s8887_s5 + $0x28] sm:$0xff] }
 0x348   : > { %v3280_v60 = vmax.f32 %v5741_v35, 0.0  ;;  %v5471_v38 = vpack.c.bf16 %v3380_v14, %v3379_v12  ;;  %v3381_v35 = vld [vmem:[%s8887_s5 + $0x20] sm:$0xff] }
 0x349   : > { %v3281_v55 = vmax.f32 %v5742_v21, 0.0  ;;  %3326 = vrot.lane.b32.xlu0 %v8201_v50, %s5890_s11  ;;  %v3144_v23 = vpop.f32.mrb[42].mxu1  ;;  %5469 = vmatpush1.bf16.msra.mxu1 %v5468_v15  ;;  %v5474_v21 = vpack.c.bf16 %v3382_v59, %v3381_v35 }
 0x34a   : > { %v8208_v33 = vmax.f32 %v2590_v1, %v3280_v60  ;;  %v5743_v20 = vadd.f32 %v3144_v23, %v8096_v7  ;;  %v3146_v36 = vpop.f32.mrb[43].mxu1  ;;  %5470 = vmatprep.subr.bf16.mxu1 %v8981_v18  ;;  %v3383_v1 = vld [vmem:[%s8887_s5 + $0x30] sm:$0xff]  ;;  %v3384_v60 = vld [vmem:[%s8887_s5 + $0x38] sm:$0xff]  ;;  %v3386_v23 = vld [vmem:[%s8887_s5 + $0x48] sm:$0xff] }
 0x34b   : > { %v8211_v25 = vmax.f32 %v2591_v51, %v3281_v55  ;;  %v5744_v16 = vadd.f32 %v3146_v36, %v8101_v49  ;;  %v5477_v51 = vpack.c.bf16 %v3384_v60, %v3383_v1  ;;  %v3385_v55 = vld [vmem:[%s8887_s5 + $0x40] sm:$0xff]  ;;  %v3387_v36 = vld [vmem:[%s8887_s5 + $0x50] sm:$0xff] }
 0x34c   : > { %v3283_v2 = vmax.f32 %v5743_v20, 0.0  ;;  %v5480_v20 = vpack.c.bf16 %v3386_v23, %v3385_v55 }
 0x34d   : > { %v3284_v47 = vmax.f32 %v5744_v16, 0.0  ;;  %3330 = vrot.lane.b32.xlu0 %v8211_v25, %s5890_s11  ;;  %v3150_v37 = vpop.f32.mrb[44].mxu1  ;;  %5472 = vmatpush1.bf16.msra.mxu1 %v5471_v38  ;;  %v3388_v16 = vld [vmem:[%s8887_s5 + $0x58] sm:$0xff] }
 0x34e   : > { %v8218_v45 = vmax.f32 %v2593_v10, %v3283_v2  ;;  %v5745_v30 = vadd.f32 %v3150_v37, %v8096_v7  ;;  %v3152_v11 = vpop.f32.mrb[45].mxu1  ;;  %5473 = vmatprep.subr.bf16.mxu1 %v8981_v18  ;;  %v5483_v10 = vpack.c.bf16 %v3388_v16, %v3387_v36  ;;  %v3389_v2 = vld [vmem:[%s8887_s5 + $0x60] sm:$0xff]  ;;  %v3391_v37 = vld [vmem:[%s8887_s5 + $0x70] sm:$0xff] }
 0x34f   : > { %v8221_v26 = vmax.f32 %v2594_v57, %v3284_v47  ;;  %v5746_v29 = vadd.f32 %v3152_v11, %v8101_v49  ;;  %v3390_v57 = vld [vmem:[%s8887_s5 + $0x68] sm:$0xff] }
 0x350   : > { %v3286_v22 = vmax.f32 %v5745_v30, 0.0  ;;  %v5486_v47 = vpack.c.bf16 %v3390_v57, %v3389_v2  ;;  %v3392_v30 = vld [vmem:[%s8887_s5 + $0x78] sm:$0xff] }
 0x351   : > { %v3287_v44 = vmax.f32 %v5746_v29, 0.0  ;;  %3334 = vrot.lane.b32.xlu0 %v8221_v26, %s5890_s11  ;;  %v8228_v13 = vpop.f32.mrb[60].mxu0  ;;  %v3156_v52 = vpop.f32.mrb[46].mxu1  ;;  %5475 = vmatpush1.bf16.msra.mxu1 %v5474_v21  ;;  %v5489_v11 = vpack.c.bf16 %v3392_v30, %v3391_v37  ;;  %v3393_v29 = vld [vmem:[%s8887_s5 + $0x80] sm:$0xff] }
 0x352   : > { %v8230_v27 = vmax.f32 %v2596_v31, %v3286_v22  ;;  %v5747_v48 = vadd.f32 %v3156_v52, %v8096_v7  ;;  %v2539_v56 = vpop.f32.mrb[61].mxu0  ;;  %v3158_v5 = vpop.f32.mrb[47].mxu1  ;;  %5476 = vmatprep.subr.bf16.mxu1 %v8981_v18  ;;  %v3394_v31 = vld [vmem:[%s8887_s5 + $0x88] sm:$0xff] }
 0x353   : > { %v8233_v40 = vmax.f32 %v2597_v53, %v3287_v44  ;;  %v5748_v42 = vadd.f32 %v3158_v5, %v8101_v49  ;;  %v5492_v22 = vpack.c.bf16 %v3394_v31, %v3393_v29  ;;  %v3395_v53 = vld [vmem:[%s8887_s5 + $0x90] sm:$0xff]  ;;  %v3396_v44 = vld [vmem:[%s8887_s5 + $0x98] sm:$0xff]  ;;  %v3398_v56 = vld [vmem:[%s8887_s5 + $0xa8] sm:$0xff] }
 0x354   : > { %v3289_v4 = vmax.f32 %v5747_v48, 0.0  ;;  %v5495_v52 = vpack.c.bf16 %v3396_v44, %v3395_v53  ;;  %v3397_v48 = vld [vmem:[%s8887_s5 + $0xa0] sm:$0xff] }
 0x355   : > { %v3290_v24 = vmax.f32 %v5748_v42, 0.0  ;;  %3338 = vrot.lane.b32.xlu0 %v8233_v40, %s5890_s11  ;;  %v8240_v63 = vpop.f32.mrb[62].mxu0  ;;  %5478 = vmatpush1.bf16.msra.mxu1 %v5477_v51  ;;  %v5498_v5 = vpack.c.bf16 %v3398_v56, %v3397_v48  ;;  %v3399_v42 = vld [vmem:[%s8887_s5 + $0xb0] sm:$0xff]  ;;  %v4427_v48 = vld [vmem:[%s8887_s5 + $0xc0] sm:$0xff] }
 0x356   : > { %v8242_v6 = vmax.f32 %v2599_v41, %v3289_v4  ;;  %v2544_v7 = vpop.f32.mrb[63].mxu0  ;;  %5479 = vmatprep.subr.bf16.mxu1 %v8981_v18  ;;  %v3400_v41 = vld [vmem:[%s8887_s5 + $0xb8] sm:$0xff] }
 0x357   : > { %v8244_v32 = vmax.f32 %v2600_v43, %v3290_v24  ;;  %v5501_v4 = vpack.c.bf16 %v3400_v41, %v3399_v42  ;;  %v9041_v43 = vsub.s32 2, %v9038_v54 }
 0x359   : > { %3342 = vrot.lane.b32.xlu0 %v8244_v32, %s5890_s11  ;;  %v8248_v49 = vpop.f32.mrb[64].mxu0  ;;  %5481 = vmatpush1.bf16.msra.mxu1 %v5480_v20  ;;  %v1928_v24 = vrot.slane %v8087_v8, %v9041_v43 }
 0x35a   : > { %v2549_v34 = vpop.f32.mrb[65].mxu0  ;;  %5482 = vmatprep.subr.bf16.mxu1 %v8981_v18 }
 0x35b   : > { %v5731_v7 = vadd.f32 %v8228_v13, %v1928_v24  ;;  %v5732_v3 = vadd.f32 %v8240_v63, %v1928_v24  ;;  %v5733_v59 = vadd.f32 %v8248_v49, %v1928_v24 }
 0x35d   : > { %v8250_v0 = vpop.f32.mrb[66].mxu0  ;;  %5484 = vmatpush1.bf16.msra.mxu1 %v5483_v10  ;;  %v2589_v35 = vmax.f32 %v5732_v3, 0.0  ;;  %v2592_v60 = vmax.f32 %v5733_v59, 0.0  ;;  %v4434_v3 = vld [vmem:[%s8887_s5 + $0xf8] sm:$0xff] }
 0x35e   : > { %v2554_v46 = vpop.f32.mrb[67].mxu0  ;;  %5485 = vmatprep.subr.bf16.mxu1 %v8981_v18  ;;  %v5734_v51 = vadd.f32 %v8250_v0, %v1928_v24 }
 0x360   : > { %v2595_v16 = vmax.f32 %v5734_v51, 0.0  ;;  %v4443_v51 = vld [vmem:[%s8887_s5 + $0x140] sm:$0xff] }
 0x361   : > { %v8252_v28 = vpop.f32.mrb[68].mxu0  ;;  %5487 = vmatpush1.bf16.msra.mxu1 %v5486_v47 }
 0x362   : > { %v2559_v62 = vpop.f32.mrb[69].mxu0  ;;  %5488 = vmatprep.subr.bf16.mxu1 %v8981_v18  ;;  %v5735_v49 = vadd.f32 %v8252_v28, %v1928_v24 }
 0x364   : > { %v2598_v30 = vmax.f32 %v5735_v49, 0.0  ;;  %v4448_v49 = vld [vmem:[%s8887_s5 + $0x168] sm:$0xff] }
 0x365   : > { %v8254_v19 = vpop.f32.mrb[70].mxu0  ;;  %5490 = vmatpush1.bf16.msra.mxu1 %v5489_v11 }
 0x366   : > { %v2564_v39 = vpop.f32.mrb[71].mxu0  ;;  %5491 = vmatprep.subr.bf16.mxu1 %v8981_v18  ;;  %v5736_v0 = vadd.f32 %v8254_v19, %v1928_v24  ;;  %v4428_v19 = vld [vmem:[%s8887_s5 + $0xc8] sm:$0xff] }
 0x367   : > { %v2586_v39 = vmax.f32 %v5731_v7, 0.0  ;;  %v4430_v7 = vld [vmem:[%s8887_s5 + $0xd8] sm:$0xff] }
 0x368   : > { %v2601_v44 = vmax.f32 %v5736_v0, 0.0  ;;  %v4453_v0 = vld [vmem:[%s8887_s5 + $0x188] sm:$0xff] }
 0x369   : > { %5493 = vmatpush1.bf16.msra.mxu1 %v5492_v22 }
 0x36a   : > { %5494 = vmatprep.subr.bf16.mxu1 %v8981_v18 }
 0x36d   : > { %5496 = vmatpush1.bf16.msra.mxu1 %v5495_v52 }
 0x36e   : > { %5497 = vmatprep.subr.bf16.mxu1 %v8981_v18 }
 0x371   : > { %5499 = vmatpush1.bf16.msra.mxu1 %v5498_v5 }
 0x372   : > { %5500 = vmatprep.subr.bf16.mxu1 %v8981_v18 }
 0x375   : > { %5502 = vmatpush1.bf16.msra.mxu1 %v5501_v4  ;;  %v5504_v4 = vpack.c.bf16 %v4428_v19, %v4427_v48  ;;  %v4457_v48 = vld [vmem:[%s8887_s5 + $0x1a8] sm:$0xff] }
 0x376   : > { %5503 = vmatprep.subr.bf16.mxu1 %v8981_v18 }
 0x3b7   : > { %v3323_v56 = vpop.permute.xlu0 %3322 }
 0x3e1   : > { %v3227_v34 = vpop.f32.mrb[72].mxu0 }
 0x3e2   : > { %v5749_v46 = vadd.f32 %v3227_v34, %v1928_v24  ;;  %v3229_v62 = vpop.f32.mrb[73].mxu0 }
 0x3e4   : > { %v3276_v58 = vmax.f32 %v5749_v46, 0.0 }
 0x3e5   : > { %v3232_v12 = vpop.f32.mrb[74].mxu0 }
 0x3e6   : > { %v3294_v15 = vmax.f32 %v2586_v39, %v3276_v58  ;;  %v5750_v14 = vadd.f32 %v3232_v12, %v1928_v24  ;;  %v3234_v38 = vpop.f32.mrb[75].mxu0  ;;  %v4435_v12 = vld [vmem:[%s8887_s5 + $0x100] sm:$0xff] }
 0x3e7   : > { %v4437_v38 = vld [vmem:[%s8887_s5 + $0x110] sm:$0xff] }
 0x3e8   : > { %v3279_v21 = vmax.f32 %v5750_v14, 0.0  ;;  %3324 = vrot.lane.b32.xlu1 %v3294_v15, %s5890_s11  ;;  %v4436_v15 = vld [vmem:[%s8887_s5 + $0x108] sm:$0xff] }
 0x3e9   : > { %v3237_v8 = vpop.f32.mrb[76].mxu0  ;;  %v5516_v14 = vpack.c.bf16 %v4436_v15, %v4435_v12  ;;  %v4470_v12 = vld [vmem:[%s8887_s5 + $0x210] sm:$0xff]  ;;  %v4471_v15 = vld [vmem:[%s8887_s5 + $0x218] sm:$0xff] }
 0x3ea   : > { %v3297_v54 = vmax.f32 %v2589_v35, %v3279_v21  ;;  %v5751_v13 = vadd.f32 %v3237_v8, %v1928_v24  ;;  %v3239_v1 = vpop.f32.mrb[77].mxu0  ;;  %v4438_v35 = vld [vmem:[%s8887_s5 + $0x118] sm:$0xff]  ;;  %v4439_v21 = vld [vmem:[%s8887_s5 + $0x120] sm:$0xff]  ;;  %v4440_v8 = vld [vmem:[%s8887_s5 + $0x128] sm:$0xff] }
 0x3eb   : > { %v5519_v59 = vpack.c.bf16 %v4438_v35, %v4437_v38  ;;  %v4442_v1 = vld [vmem:[%s8887_s5 + $0x138] sm:$0xff]  ;;  %v4472_v38 = vld [vmem:[%s8887_s5 + $0x220] sm:$0xff]  ;;  %v4473_v35 = vld [vmem:[%s8887_s5 + $0x228] sm:$0xff] }
 0x3ec   : > { %v3282_v55 = vmax.f32 %v5751_v13, 0.0  ;;  %3328 = vrot.lane.b32.xlu1 %v3297_v54, %s5890_s11  ;;  %v5522_v54 = vpack.c.bf16 %v4440_v8, %v4439_v21  ;;  %v4441_v13 = vld [vmem:[%s8887_s5 + $0x130] sm:$0xff]  ;;  %v4475_v8 = vld [vmem:[%s8887_s5 + $0x238] sm:$0xff] }
 0x3ed   : > { %v3242_v63 = vpop.f32.mrb[78].mxu0  ;;  %v4474_v21 = vld [vmem:[%s8887_s5 + $0x230] sm:$0xff] }
 0x3ee   : > { %v3300_v23 = vmax.f32 %v2592_v60, %v3282_v55  ;;  %v5752_v20 = vadd.f32 %v3242_v63, %v1928_v24  ;;  %v3244_v36 = vpop.f32.mrb[79].mxu0  ;;  %v5525_v60 = vpack.c.bf16 %v4442_v1, %v4441_v13  ;;  %v4444_v55 = vld [vmem:[%s8887_s5 + $0x148] sm:$0xff]  ;;  %v4477_v1 = vld [vmem:[%s8887_s5 + $0x240] sm:$0xff] }
 0x3ef   : > { %v5528_v63 = vpack.c.bf16 %v4444_v55, %v4443_v51 }
 0x3f0   : > { %v3285_v10 = vmax.f32 %v5752_v20, 0.0  ;;  %3332 = vrot.lane.b32.xlu1 %v3300_v23, %s5890_s11  ;;  %v4445_v23 = vld [vmem:[%s8887_s5 + $0x150] sm:$0xff]  ;;  %v4446_v20 = vld [vmem:[%s8887_s5 + $0x158] sm:$0xff] }
 0x3f1   : > { %v3247_v2 = vpop.f32.mrb[80].mxu0  ;;  %v5531_v36 = vpack.c.bf16 %v4446_v20, %v4445_v23  ;;  %v4479_v20 = vld [vmem:[%s8887_s5 + $0x250] sm:$0xff] }
 0x3f2   : > { %v3303_v57 = vmax.f32 %v2595_v16, %v3285_v10  ;;  %v5753_v47 = vadd.f32 %v3247_v2, %v1928_v24  ;;  %v3249_v37 = vpop.f32.mrb[81].mxu0  ;;  %v4447_v16 = vld [vmem:[%s8887_s5 + $0x160] sm:$0xff]  ;;  %v4449_v2 = vld [vmem:[%s8887_s5 + $0x170] sm:$0xff] }
 0x3f3   : > { %v5534_v10 = vpack.c.bf16 %v4448_v49, %v4447_v16  ;;  %v3327_v37 = vpop.permute.xlu0 %3326 }
 0x3f4   : > { %v3288_v11 = vmax.f32 %v5753_v47, 0.0  ;;  %3336 = vrot.lane.b32.xlu1 %v3303_v57, %s5890_s11  ;;  %v4450_v57 = vld [vmem:[%s8887_s5 + $0x178] sm:$0xff] }
 0x3f5   : > { %v3252_v29 = vpop.f32.mrb[82].mxu0  ;;  %v5537_v47 = vpack.c.bf16 %v4450_v57, %v4449_v2  ;;  %v4484_v57 = vld [vmem:[%s8887_s5 + $0x278] sm:$0xff] }
 0x3f6   : > { %v3306_v31 = vmax.f32 %v2598_v30, %v3288_v11  ;;  %v5754_v22 = vadd.f32 %v3252_v29, %v1928_v24  ;;  %v3254_v53 = vpop.f32.mrb[83].mxu0  ;;  %v4429_v24 = vld [vmem:[%s8887_s5 + $0xd0] sm:$0xff]  ;;  %v4452_v30 = vld [vmem:[%s8887_s5 + $0x180] sm:$0xff] }
 0x3f7   : > { %v5507_v62 = vpack.c.bf16 %v4430_v7, %v4429_v24  ;;  %v4454_v53 = vld [vmem:[%s8887_s5 + $0x190] sm:$0xff]  ;;  %v4463_v24 = vld [vmem:[%s8887_s5 + $0x1d8] sm:$0xff]  ;;  %v3331_v13 = vpop.permute.xlu0 %3330 }
 0x3f8   : > { %v3291_v52 = vmax.f32 %v5754_v22, 0.0  ;;  %3340 = vrot.lane.b32.xlu1 %v3306_v31, %s5890_s11  ;;  %v5540_v31 = vpack.c.bf16 %v4453_v0, %v4452_v30  ;;  %v4486_v30 = vld [vmem:[%s8887_s5 + $0x288] sm:$0xff] }
 0x3fa   : > { %v3309_v28 = vmax.f32 %v2601_v44, %v3291_v52  ;;  %v4455_v44 = vld [vmem:[%s8887_s5 + $0x198] sm:$0xff] }
 0x3fc   : > { %3344 = vrot.lane.b32.xlu1 %v3309_v28, %s5890_s11  ;;  %v5543_v28 = vpack.c.bf16 %v4455_v44, %v4454_v53  ;;  %v3979_v53 = vld [vmem:[%s8889_s7 + $0x10] sm:$0xff] }
 0x45a   : > { %v3325_v5 = vpop.permute.xlu1 %3324 }
 0x45b   : > { %v3346_v42 = vsel %vm956_vm0, %v3323_v56, %v3325_v5  ;;  %v3365_v41 = vmax.f32 %v8191_v9, %v3325_v5  ;;  %v4432_v9 = vld [vmem:[%s8887_s5 + $0xe8] sm:$0xff]  ;;  %v4459_v56 = vld [vmem:[%s8887_s5 + $0x1b8] sm:$0xff] }
 0x45c   : > { %v3364_v43 = vmax.f32 %v8188_v61, %v3346_v42  ;;  %v4431_v61 = vld [vmem:[%s8887_s5 + $0xe0] sm:$0xff] }
 0x45d   : > { %4425 = vmatprep.mubr.msk.f32.mxu1 %vm956_vm0, %v3365_v41  ;;  %v5510_v39 = vpack.c.bf16 %v4432_v9, %v4431_v61  ;;  %v4460_v42 = vld [vmem:[%s8887_s5 + $0x1c0] sm:$0xff]  ;;  %v4461_v41 = vld [vmem:[%s8887_s5 + $0x1c8] sm:$0xff]  ;;  %v4466_v61 = vld [vmem:[%s8887_s5 + $0x1f0] sm:$0xff] }
 0x45e   : > { %3469 = vmatmul.mubr.f32.vlgmr.msra.gmra.mrb[48].mxu1 %v3364_v43  ;;  %v3329_v34 = vpop.permute.xlu1 %3328  ;;  %v4462_v43 = vld [vmem:[%s8887_s5 + $0x1d0] sm:$0xff]  ;;  %v4467_v9 = vld [vmem:[%s8887_s5 + $0x1f8] sm:$0xff] }
 0x45f   : > { %5505 = vmatpush1.bf16.msra.mxu1 %v5504_v4  ;;  %v3367_v46 = vmax.f32 %v8201_v50, %v3329_v34  ;;  %v4433_v50 = vld [vmem:[%s8887_s5 + $0xf0] sm:$0xff]  ;;  %v3347_v11 = vsel %vm956_vm0, %v3327_v37, %v3329_v34  ;;  %v5552_v4 = vpack.c.bf16 %v4461_v41, %v4460_v42  ;;  %v5555_v7 = vpack.c.bf16 %v4463_v24, %v4462_v43  ;;  %v4464_v34 = vld [vmem:[%s8887_s5 + $0x1e0] sm:$0xff]  ;;  %v4492_v41 = vld [vmem:[%s8887_s5 + $0x2b8] sm:$0xff] }
 0x460   : > { %5506 = vmatprep.subr.bf16.mxu1 %v8981_v18  ;;  %v5513_v58 = vpack.c.bf16 %v4434_v3, %v4433_v50  ;;  %v3366_v22 = vmax.f32 %v8198_v17, %v3347_v11  ;;  %v4456_v17 = vld [vmem:[%s8887_s5 + $0x1a0] sm:$0xff]  ;;  %v4469_v3 = vld [vmem:[%s8887_s5 + $0x208] sm:$0xff]  ;;  %v4487_v11 = vld [vmem:[%s8887_s5 + $0x290] sm:$0xff] }
 0x461   : > { %4451 = vmatprep.mubr.msk.f32.mxu1 %vm956_vm0, %v3367_v46  ;;  %v5546_v19 = vpack.c.bf16 %v4457_v48, %v4456_v17  ;;  %v4465_v46 = vld [vmem:[%s8887_s5 + $0x1e8] sm:$0xff]  ;;  %v4468_v50 = vld [vmem:[%s8887_s5 + $0x200] sm:$0xff]  ;;  %v4491_v42 = vld [vmem:[%s8887_s5 + $0x2b0] sm:$0xff] }
 0x462   : > { %v8451_v29 = vpop.permute.xlu1 %3332  ;;  %v4485_v37 = vld [vmem:[%s8887_s5 + $0x280] sm:$0xff]  ;;  %v4490_v48 = vld [vmem:[%s8887_s5 + $0x2a8] sm:$0xff]  ;;  %v3983_v43 = vld [vmem:[%s8889_s7 + $0x30] sm:$0xff] }
 0x463   : > { %5508 = vmatpush1.bf16.msra.mxu1 %v5507_v62  ;;  %v3369_v52 = vmax.f32 %v8211_v25, %v8451_v29  ;;  %v4458_v25 = vld [vmem:[%s8887_s5 + $0x1b0] sm:$0xff]  ;;  %v5558_v62 = vpack.c.bf16 %v4465_v46, %v4464_v34  ;;  %v3348_v51 = vsel %vm956_vm0, %v3331_v13, %v8451_v29  ;;  %v5588_v0 = vpack.c.bf16 %v4486_v30, %v4485_v37  ;;  %v4488_v29 = vld [vmem:[%s8887_s5 + $0x298] sm:$0xff]  ;;  %v4489_v17 = vld [vmem:[%s8887_s5 + $0x2a0] sm:$0xff] }
 0x464   : > { %5509 = vmatprep.subr.bf16.mxu1 %v8981_v18  ;;  %v5549_v5 = vpack.c.bf16 %v4459_v56, %v4458_v25  ;;  %v3368_v23 = vmax.f32 %v8208_v33, %v3348_v51  ;;  %v4481_v33 = vld [vmem:[%s8887_s5 + $0x260] sm:$0xff]  ;;  %v5591_v44 = vpack.c.bf16 %v4488_v29, %v4487_v11  ;;  %v3982_v56 = vld [vmem:[%s8889_s7 + $0x28] sm:$0xff]  ;;  %v3984_v24 = vld [vmem:[%s8889_s7 + $0x38] sm:$0xff] }
 0x465   : > { %v3981_v25 = vld [vmem:[%s8889_s7 + $0x20] sm:$0xff]  ;;  %v4494_v46 = vld [vmem:[%s8887_s5 + $0x2c8] sm:$0xff]  ;;  %v4499_v13 = vld [vmem:[%s8887_s5 + $0x2f0] sm:$0xff] }
 0x466   : > { %v8543_v55 = vpop.permute.xlu1 %3336  ;;  %v4493_v34 = vld [vmem:[%s8887_s5 + $0x2c0] sm:$0xff]  ;;  %v4509_v37 = vld [vmem:[%s8887_s5 + $0x338] sm:$0xff]  ;;  %v4511_v11 = vld [vmem:[%s8887_s5 + $0x348] sm:$0xff] }
 0x467   : > { %5511 = vmatpush1.bf16.msra.mxu1 %v5510_v39  ;;  %v5561_v39 = vpack.c.bf16 %v4467_v9, %v4466_v61  ;;  %v3371_v16 = vmax.f32 %v8221_v26, %v8543_v55  ;;  %v4483_v26 = vld [vmem:[%s8887_s5 + $0x270] sm:$0xff]  ;;  %v3985_v61 = vld [vmem:[%s8889_s7 + $0x40] sm:$0xff]  ;;  %v3986_v9 = vld [vmem:[%s8889_s7 + $0x48] sm:$0xff] }
 0x468   : > { %5512 = vmatprep.subr.bf16.mxu1 %v8981_v18 }
 0x46b   : > { %5514 = vmatpush1.bf16.msra.mxu1 %v5513_v58  ;;  %v5564_v58 = vpack.c.bf16 %v4469_v3, %v4468_v50  ;;  %v4495_v50 = vld [vmem:[%s8887_s5 + $0x2d0] sm:$0xff]  ;;  %v4496_v3 = vld [vmem:[%s8887_s5 + $0x2d8] sm:$0xff] }
 0x46c   : > { %5515 = vmatprep.subr.bf16.mxu1 %v8981_v18 }
 0x46f   : > { %5517 = vmatpush1.bf16.msra.mxu1 %v5516_v14  ;;  %v5567_v14 = vpack.c.bf16 %v4471_v15, %v4470_v12  ;;  %v3987_v12 = vld [vmem:[%s8889_s7 + $0x50] sm:$0xff]  ;;  %v3988_v15 = vld [vmem:[%s8889_s7 + $0x58] sm:$0xff] }
 0x470   : > { %5518 = vmatprep.subr.bf16.mxu1 %v8981_v18 }
 0x473   : > { %5520 = vmatpush1.bf16.msra.mxu1 %v5519_v59  ;;  %v5570_v59 = vpack.c.bf16 %v4473_v35, %v4472_v38  ;;  %v4497_v38 = vld [vmem:[%s8887_s5 + $0x2e0] sm:$0xff]  ;;  %v4498_v35 = vld [vmem:[%s8887_s5 + $0x2e8] sm:$0xff] }
 0x474   : > { %5521 = vmatprep.subr.bf16.mxu1 %v8981_v18 }
 0x477   : > { %5523 = vmatpush1.bf16.msra.mxu1 %v5522_v54  ;;  %v5573_v54 = vpack.c.bf16 %v4475_v8, %v4474_v21  ;;  %v3989_v21 = vld [vmem:[%s8889_s7 + $0x60] sm:$0xff]  ;;  %v3990_v8 = vld [vmem:[%s8889_s7 + $0x68] sm:$0xff] }
 0x478   : > { %5524 = vmatprep.subr.bf16.mxu1 %v8981_v18 }
 0x47b   : > { %5526 = vmatpush1.bf16.msra.mxu1 %v5525_v60  ;;  %v4478_v60 = vld [vmem:[%s8887_s5 + $0x248] sm:$0xff] }
 0x47c   : > { %5527 = vmatprep.subr.bf16.mxu1 %v8981_v18 }
 0x47f   : > { %5529 = vmatpush1.bf16.msra.mxu1 %v5528_v63  ;;  %v5576_v63 = vpack.c.bf16 %v4478_v60, %v4477_v1  ;;  %v4500_v1 = vld [vmem:[%s8887_s5 + $0x2f8] sm:$0xff]  ;;  %v5702_v60 = vpack.c.bf16 %v3990_v8, %v3989_v21 }
 0x480   : > { %5530 = vmatprep.subr.bf16.mxu1 %v8981_v18  ;;  %v5609_v51 = vpack.c.bf16 %v4500_v1, %v4499_v13  ;;  %v4534_v8 = vld [vmem:[%s8887_s5 + $0x3f8] sm:$0xff]  ;;  %v4535_v13 = vld [vmem:[%s8887_s5 + $0x400] sm:$0xff]  ;;  %v4536_v1 = vld [vmem:[%s8887_s5 + $0x408] sm:$0xff] }
 0x483   : > { %5532 = vmatpush1.bf16.msra.mxu1 %v5531_v36  ;;  %v4480_v36 = vld [vmem:[%s8887_s5 + $0x258] sm:$0xff] }
 0x484   : > { %5533 = vmatprep.subr.bf16.mxu1 %v8981_v18  ;;  %v5579_v49 = vpack.c.bf16 %v4480_v36, %v4479_v20  ;;  %v4503_v20 = vld [vmem:[%s8887_s5 + $0x308] sm:$0xff] }
 0x487   : > { %5535 = vmatpush1.bf16.msra.mxu1 %v5534_v10  ;;  %v4482_v10 = vld [vmem:[%s8887_s5 + $0x268] sm:$0xff] }
 0x488   : > { %5536 = vmatprep.subr.bf16.mxu1 %v8981_v18  ;;  %v5582_v2 = vpack.c.bf16 %v4482_v10, %v4481_v33  ;;  %v4504_v10 = vld [vmem:[%s8887_s5 + $0x310] sm:$0xff] }
 0x48b   : > { %5538 = vmatpush1.bf16.msra.mxu1 %v5537_v47  ;;  %v5585_v47 = vpack.c.bf16 %v4484_v57, %v4483_v26  ;;  %v4507_v57 = vld [vmem:[%s8887_s5 + $0x328] sm:$0xff] }
 0x48c   : > { %5539 = vmatprep.subr.bf16.mxu1 %v8981_v18 }
 0x48e   : > { %3574 = vmatmul.mubr.f32.vlgmr.msra.gmra.mrb[48].mxu1 %v3366_v22  ;;  %v3978_v22 = vld [vmem:[%s8889_s7 + $0x8] sm:$0xff] }
 0x48f   : > { %5541 = vmatpush1.bf16.msra.mxu1 %v5540_v31  ;;  %4476 = vmatprep.mubr.msk.f32.mxu1 %vm956_vm0, %v3369_v52  ;;  %v3977_v31 = vld [vmem:[%s8889_s7] sm:$0xff] }
 0x490   : > { %5542 = vmatprep.subr.bf16.mxu1 %v8981_v18  ;;  %v5684_v52 = vpack.c.bf16 %v3978_v22, %v3977_v31  ;;  %v4512_v31 = vld [vmem:[%s8887_s5 + $0x350] sm:$0xff]  ;;  %v4513_v22 = vld [vmem:[%s8887_s5 + $0x358] sm:$0xff] }
 0x492   : > { %5685 = vmatpush3.bf16.msra.mxu0 %v5684_v52  ;;  %v4515_v52 = vld [vmem:[%s8887_s5 + $0x368] sm:$0xff] }
 0x493   : > { %5544 = vmatpush1.bf16.msra.mxu1 %v5543_v28  ;;  %v3980_v28 = vld [vmem:[%s8889_s7 + $0x18] sm:$0xff]  ;;  %5686 = vmatprep.subr.bf16.mxu0 %v8981_v18 }
 0x494   : > { %5545 = vmatprep.subr.bf16.mxu1 %v8981_v18 }
 0x497   : > { %5547 = vmatpush1.bf16.msra.mxu1 %v5546_v19  ;;  %v5687_v19 = vpack.c.bf16 %v3980_v28, %v3979_v53  ;;  %v5627_v53 = vpack.c.bf16 %v4513_v22, %v4512_v31 }
 0x498   : > { %5548 = vmatprep.subr.bf16.mxu1 %v8981_v18 }
 0x499   : > { %5688 = vmatpush3.bf16.msra.mxu0 %v5687_v19 }
 0x49a   : > { %5689 = vmatprep.subr.bf16.mxu0 %v8981_v18 }
 0x49b   : > { %5550 = vmatpush1.bf16.msra.mxu1 %v5549_v5  ;;  %v5594_v5 = vpack.c.bf16 %v4490_v48, %v4489_v17  ;;  %v4516_v17 = vld [vmem:[%s8887_s5 + $0x370] sm:$0xff]  ;;  %v4517_v48 = vld [vmem:[%s8887_s5 + $0x378] sm:$0xff] }
 0x49c   : > { %5551 = vmatprep.subr.bf16.mxu1 %v8981_v18  ;;  %v5633_v19 = vpack.c.bf16 %v4517_v48, %v4516_v17  ;;  %v5878_v17 = vld [vmem:[#allocation2] sm:$0xff] }
 0x49d   : > { %4784 = vmatprep.mubr.msk.f32.mxu0 %vm5891_vm5, %v5878_v17 }
 0x49f   : > { %5553 = vmatpush1.bf16.msra.mxu1 %v5552_v4  ;;  %v5690_v4 = vpack.c.bf16 %v3982_v56, %v3981_v25  ;;  %v4518_v25 = vld [vmem:[%s8887_s5 + $0x380] sm:$0xff]  ;;  %v4519_v56 = vld [vmem:[%s8887_s5 + $0x388] sm:$0xff] }
 0x4a0   : > { %5554 = vmatprep.subr.bf16.mxu1 %v8981_v18 }
 0x4a1   : > { %5691 = vmatpush3.bf16.msra.mxu0 %v5690_v4 }
 0x4a2   : > { %5692 = vmatprep.subr.bf16.mxu0 %v8981_v18 }
 0x4a3   : > { %5556 = vmatpush1.bf16.msra.mxu1 %v5555_v7  ;;  %v5597_v7 = vpack.c.bf16 %v4492_v41, %v4491_v42  ;;  %v4520_v42 = vld [vmem:[%s8887_s5 + $0x390] sm:$0xff]  ;;  %v4521_v41 = vld [vmem:[%s8887_s5 + $0x398] sm:$0xff] }
 0x4a4   : > { %5557 = vmatprep.subr.bf16.mxu1 %v8981_v18  ;;  %v5639_v4 = vpack.c.bf16 %v4521_v41, %v4520_v42 }
 0x4a7   : > { %5559 = vmatpush1.bf16.msra.mxu1 %v5558_v62  ;;  %v5693_v62 = vpack.c.bf16 %v3984_v24, %v3983_v43  ;;  %v4522_v43 = vld [vmem:[%s8887_s5 + $0x3a0] sm:$0xff]  ;;  %v4523_v24 = vld [vmem:[%s8887_s5 + $0x3a8] sm:$0xff] }
 0x4a8   : > { %5560 = vmatprep.subr.bf16.mxu1 %v8981_v18 }
 0x4a9   : > { %5694 = vmatpush3.bf16.msra.mxu0 %v5693_v62 }
 0x4aa   : > { %5695 = vmatprep.subr.bf16.mxu0 %v8981_v18 }
 0x4ab   : > { %5562 = vmatpush1.bf16.msra.mxu1 %v5561_v39  ;;  %v5600_v39 = vpack.c.bf16 %v4494_v46, %v4493_v34  ;;  %v4524_v34 = vld [vmem:[%s8887_s5 + $0x3b0] sm:$0xff]  ;;  %v4525_v46 = vld [vmem:[%s8887_s5 + $0x3b8] sm:$0xff] }
 0x4ac   : > { %5563 = vmatprep.subr.bf16.mxu1 %v8981_v18  ;;  %v5645_v62 = vpack.c.bf16 %v4525_v46, %v4524_v34 }
 0x4af   : > { %5565 = vmatpush1.bf16.msra.mxu1 %v5564_v58  ;;  %v5696_v58 = vpack.c.bf16 %v3986_v9, %v3985_v61  ;;  %v4527_v9 = vld [vmem:[%s8887_s5 + $0x3c0] sm:$0xff] }
 0x4b0   : > { %5566 = vmatprep.subr.bf16.mxu1 %v8981_v18 }
 0x4b1   : > { %5697 = vmatpush3.bf16.msra.mxu0 %v5696_v58 }
 0x4b2   : > { %5698 = vmatprep.subr.bf16.mxu0 %v8981_v18 }
 0x4b3   : > { %5568 = vmatpush1.bf16.msra.mxu1 %v5567_v14  ;;  %v5603_v14 = vpack.c.bf16 %v4496_v3, %v4495_v50 }
 0x4b4   : > { %5569 = vmatprep.subr.bf16.mxu1 %v8981_v18 }
 0x4b7   : > { %5571 = vmatpush1.bf16.msra.mxu1 %v5570_v59  ;;  %v5699_v59 = vpack.c.bf16 %v3988_v15, %v3987_v12  ;;  %v4529_v15 = vld [vmem:[%s8887_s5 + $0x3d0] sm:$0xff] }
 0x4b8   : > { %5572 = vmatprep.subr.bf16.mxu1 %v8981_v18 }
 0x4b9   : > { %5700 = vmatpush3.bf16.msra.mxu0 %v5699_v59  ;;  %v4532_v59 = vld [vmem:[%s8887_s5 + $0x3e8] sm:$0xff] }
 0x4ba   : > { %5701 = vmatprep.subr.bf16.mxu0 %v8981_v18 }
 0x4bb   : > { %5574 = vmatpush1.bf16.msra.mxu1 %v5573_v54  ;;  %v5606_v54 = vpack.c.bf16 %v4498_v35, %v4497_v38 }
 0x4bc   : > { %5575 = vmatprep.subr.bf16.mxu1 %v8981_v18 }
 0x4bd   : > { %5703 = vmatpush3.bf16.msra.mxu0 %v5702_v60  ;;  %v5660_v60 = vpack.c.bf16 %v4536_v1, %v4535_v13 }
 0x4be   : > { %3673 = vmatmul.mubr.f32.vlgmr.msra.gmra.mrb[48].mxu1 %v3368_v23  ;;  %v4502_v23 = vld [vmem:[%s8887_s5 + $0x300] sm:$0xff]  ;;  %5704 = vmatprep.subr.bf16.mxu0 %v8981_v18 }
 0x4bf   : > { %5577 = vmatpush1.bf16.msra.mxu1 %v5576_v63  ;;  %4501 = vmatprep.mubr.msk.f32.mxu1 %vm956_vm0, %v3371_v16  ;;  %v3335_v63 = vpop.permute.xlu0 %3334  ;;  %v8683_v16 = vpop.permute.xlu1 %3340 }
 0x4c0   : > { %5578 = vmatprep.subr.bf16.mxu1 %v8981_v18  ;;  %v3349_v36 = vsel %vm956_vm0, %v3335_v63, %v8543_v55  ;;  %v3373_v55 = vmax.f32 %v8233_v40, %v8683_v16  ;;  %v4508_v40 = vld [vmem:[%s8887_s5 + $0x330] sm:$0xff]  ;;  %v4538_v63 = vld [vmem:[%s8887_s5 + $0x418] sm:$0xff] }
 0x4c1   : > { %v3370_v33 = vmax.f32 %v8218_v45, %v3349_v36  ;;  %v4506_v45 = vld [vmem:[%s8887_s5 + $0x320] sm:$0xff]  ;;  %v5621_v30 = vpack.c.bf16 %v4509_v37, %v4508_v40  ;;  %v4540_v36 = vld [vmem:[%s8887_s5 + $0x428] sm:$0xff] }
 0x4c2   : > { %v4547_v40 = vld [vmem:[%s8887_s5 + $0x460] sm:$0xff]  ;;  %v4548_v37 = vld [vmem:[%s8887_s5 + $0x468] sm:$0xff] }
 0x4c3   : > { %5580 = vmatpush1.bf16.msra.mxu1 %v5579_v49  ;;  %v5612_v49 = vpack.c.bf16 %v4503_v20, %v4502_v23  ;;  %v3339_v61 = vpop.permute.xlu0 %3338  ;;  %v8776_v3 = vpop.permute.xlu1 %3344  ;;  %v4539_v20 = vld [vmem:[%s8887_s5 + $0x420] sm:$0xff] }
 0x4c4   : > { %5581 = vmatprep.subr.bf16.mxu1 %v8981_v18  ;;  %v3350_v50 = vsel %vm956_vm0, %v3339_v61, %v8683_v16  ;;  %v3375_v38 = vmax.f32 %v8244_v32, %v8776_v3  ;;  %v4533_v32 = vld [vmem:[%s8887_s5 + $0x3f0] sm:$0xff]  ;;  %v5666_v16 = vpack.c.bf16 %v4540_v36, %v4539_v20 }
 0x4c5   : > { %v3372_v12 = vmax.f32 %v8230_v27, %v3350_v50  ;;  %v4531_v27 = vld [vmem:[%s8887_s5 + $0x3e0] sm:$0xff] }
 0x4c6   : > { %v5654_v21 = vpack.c.bf16 %v4532_v59, %v4531_v27 }
 0x4c7   : > { %5583 = vmatpush1.bf16.msra.mxu1 %v5582_v2  ;;  %v4505_v2 = vld [vmem:[%s8887_s5 + $0x318] sm:$0xff]  ;;  %v3343_v31 = vpop.permute.xlu0 %3342 }
 0x4c8   : > { %5584 = vmatprep.subr.bf16.mxu1 %v8981_v18  ;;  %v5615_v26 = vpack.c.bf16 %v4505_v2, %v4504_v10  ;;  %v4543_v2 = vld [vmem:[%s8887_s5 + $0x440] sm:$0xff]  ;;  %v3351_v22 = vsel %vm956_vm0, %v3343_v31, %v8776_v3 }
 0x4cb   : > { %5586 = vmatpush1.bf16.msra.mxu1 %v5585_v47  ;;  %v5618_v47 = vpack.c.bf16 %v4507_v57, %v4506_v45  ;;  %v4545_v45 = vld [vmem:[%s8887_s5 + $0x450] sm:$0xff]  ;;  %v4546_v57 = vld [vmem:[%s8887_s5 + $0x458] sm:$0xff] }
 0x4cc   : > { %5587 = vmatprep.subr.bf16.mxu1 %v8981_v18 }
 0x4cf   : > { %5589 = vmatpush1.bf16.msra.mxu1 %v5588_v0  ;;  %v4510_v0 = vld [vmem:[%s8887_s5 + $0x340] sm:$0xff] }
 0x4d0   : > { %5590 = vmatprep.subr.bf16.mxu1 %v8981_v18  ;;  %v5624_v29 = vpack.c.bf16 %v4511_v11, %v4510_v0  ;;  %v4549_v0 = vld [vmem:[%s8887_s5 + $0x470] sm:$0xff]  ;;  %v4550_v11 = vld [vmem:[%s8887_s5 + $0x478] sm:$0xff] }
 0x4d3   : > { %5592 = vmatpush1.bf16.msra.mxu1 %v5591_v44  ;;  %v4514_v44 = vld [vmem:[%s8887_s5 + $0x360] sm:$0xff] }
 0x4d4   : > { %5593 = vmatprep.subr.bf16.mxu1 %v8981_v18  ;;  %v5630_v28 = vpack.c.bf16 %v4515_v52, %v4514_v44  ;;  %v3991_v44 = vld [vmem:[%s8889_s7 + $0x70] sm:$0xff]  ;;  %v3992_v52 = vld [vmem:[%s8889_s7 + $0x78] sm:$0xff] }
 0x4d7   : > { %5595 = vmatpush1.bf16.msra.mxu1 %v5594_v5  ;;  %v5636_v5 = vpack.c.bf16 %v4519_v56, %v4518_v25  ;;  %v4552_v56 = vld [vmem:[%s8890_s8] ss:$0 sm:$0xff] }
 0x4d8   : > { %5596 = vmatprep.subr.bf16.mxu1 %v8981_v18 }
 0x4db   : > { %5598 = vmatpush1.bf16.msra.mxu1 %v5597_v7  ;;  %v5642_v7 = vpack.c.bf16 %v4523_v24, %v4522_v43 }
 0x4dc   : > { %5599 = vmatprep.subr.bf16.mxu1 %v8981_v18 }
 0x4df   : > { %5601 = vmatpush1.bf16.msra.mxu1 %v5600_v39  ;;  %v4528_v39 = vld [vmem:[%s8887_s5 + $0x3c8] sm:$0xff] }
 0x4e0   : > { %5602 = vmatprep.subr.bf16.mxu1 %v8981_v18  ;;  %v5648_v58 = vpack.c.bf16 %v4528_v39, %v4527_v9 }
 0x4e3   : > { %5604 = vmatpush1.bf16.msra.mxu1 %v5603_v14  ;;  %v4530_v14 = vld [vmem:[%s8887_s5 + $0x3d8] sm:$0xff] }
 0x4e4   : > { %5605 = vmatprep.subr.bf16.mxu1 %v8981_v18  ;;  %v5651_v35 = vpack.c.bf16 %v4530_v14, %v4529_v15 }
 0x4e7   : > { %5607 = vmatpush1.bf16.msra.mxu1 %v5606_v54  ;;  %v5657_v54 = vpack.c.bf16 %v4534_v8, %v4533_v32 }
 0x4e8   : > { %5608 = vmatprep.subr.bf16.mxu1 %v8981_v18 }
 0x4eb   : > { %5610 = vmatpush1.bf16.msra.mxu1 %v5609_v51  ;;  %v4537_v51 = vld [vmem:[%s8887_s5 + $0x410] sm:$0xff] }
 0x4ec   : > { %5611 = vmatprep.subr.bf16.mxu1 %v8981_v18  ;;  %v5663_v23 = vpack.c.bf16 %v4538_v63, %v4537_v51 }
 0x4ee   : > { %3772 = vmatmul.mubr.f32.vlgmr.msra.gmra.mrb[48].mxu1 %v3370_v33  ;;  %v4542_v33 = vld [vmem:[%s8887_s5 + $0x438] sm:$0xff] }
 0x4ef   : > { %5613 = vmatpush1.bf16.msra.mxu1 %v5612_v49  ;;  %4526 = vmatprep.mubr.msk.f32.mxu1 %vm956_vm0, %v3373_v55  ;;  %v4541_v49 = vld [vmem:[%s8887_s5 + $0x430] sm:$0xff]  ;;  %v4544_v55 = vld [vmem:[%s8887_s5 + $0x448] sm:$0xff] }
 0x4f0   : > { %5614 = vmatprep.subr.bf16.mxu1 %v8981_v18  ;;  %v5669_v10 = vpack.c.bf16 %v4542_v33, %v4541_v49 }
 0x4f3   : > { %5616 = vmatpush1.bf16.msra.mxu1 %v5615_v26  ;;  %v5672_v26 = vpack.c.bf16 %v4544_v55, %v4543_v2 }
 0x4f4   : > { %5617 = vmatprep.subr.bf16.mxu1 %v8981_v18 }
 0x4f7   : > { %5619 = vmatpush1.bf16.msra.mxu1 %v5618_v47  ;;  %v5675_v47 = vpack.c.bf16 %v4546_v57, %v4545_v45 }
 0x4f8   : > { %5620 = vmatprep.subr.bf16.mxu1 %v8981_v18 }
 0x4fb   : > { %5622 = vmatpush1.bf16.msra.mxu1 %v5621_v30  ;;  %v5678_v30 = vpack.c.bf16 %v4548_v37, %v4547_v40 }
 0x4fc   : > { %5623 = vmatprep.subr.bf16.mxu1 %v8981_v18 }
 0x4ff   : > { %5625 = vmatpush1.bf16.msra.mxu1 %v5624_v29  ;;  %v5681_v29 = vpack.c.bf16 %v4550_v11, %v4549_v0 }
 0x500   : > { %5626 = vmatprep.subr.bf16.mxu1 %v8981_v18 }
 0x503   : > { %5628 = vmatpush1.bf16.msra.mxu1 %v5627_v53  ;;  %v3374_v53 = vmax.f32 %v8242_v6, %v3351_v22 }
 0x504   : > { %5629 = vmatprep.subr.bf16.mxu1 %v8981_v18 }
 0x507   : > { %5631 = vmatpush1.bf16.msra.mxu1 %v5630_v28  ;;  %v5705_v28 = vpack.c.bf16 %v3992_v52, %v3991_v44 }
 0x508   : > { %5632 = vmatprep.subr.bf16.mxu1 %v8981_v18 }
 0x509   : > { %5706 = vmatpush3.bf16.msra.mxu0 %v5705_v28 }
 0x50b   : > { %5634 = vmatpush1.bf16.msra.mxu1 %v5633_v19 }
 0x50c   : > { %5635 = vmatprep.subr.bf16.mxu1 %v8981_v18 }
 0x50f   : > { %5637 = vmatpush1.bf16.msra.mxu1 %v5636_v5 }
 0x510   : > { %5638 = vmatprep.subr.bf16.mxu1 %v8981_v18 }
 0x513   : > { %5640 = vmatpush1.bf16.msra.mxu1 %v5639_v4 }
 0x514   : > { %5641 = vmatprep.subr.bf16.mxu1 %v8981_v18 }
 0x517   : > { %5643 = vmatpush1.bf16.msra.mxu1 %v5642_v7 }
 0x518   : > { %5644 = vmatprep.subr.bf16.mxu1 %v8981_v18 }
 0x51b   : > { %5646 = vmatpush1.bf16.msra.mxu1 %v5645_v62 }
 0x51c   : > { %5647 = vmatprep.subr.bf16.mxu1 %v8981_v18 }
 0x51e   : > { %3871 = vmatmul.mubr.f32.vlgmr.msra.gmra.mrb[48].mxu1 %v3372_v12 }
 0x51f   : > { %5649 = vmatpush1.bf16.msra.mxu1 %v5648_v58  ;;  %4551 = vmatprep.mubr.msk.f32.mxu1 %vm956_vm0, %v3375_v38 }
 0x520   : > { %5650 = vmatprep.subr.bf16.mxu1 %v8981_v18 }
 0x523   : > { %5652 = vmatpush1.bf16.msra.mxu1 %v5651_v35 }
 0x524   : > { %5653 = vmatprep.subr.bf16.mxu1 %v8981_v18 }
 0x527   : > { %5655 = vmatpush1.bf16.msra.mxu1 %v5654_v21 }
 0x528   : > { %5656 = vmatprep.subr.bf16.mxu1 %v8981_v18 }
 0x52b   : > { %5658 = vmatpush1.bf16.msra.mxu1 %v5657_v54 }
 0x52c   : > { %5659 = vmatprep.subr.bf16.mxu1 %v8981_v18 }
 0x52f   : > { %5661 = vmatpush1.bf16.msra.mxu1 %v5660_v60 }
 0x530   : > { %5662 = vmatprep.subr.bf16.mxu1 %v8981_v18 }
 0x533   : > { %5664 = vmatpush1.bf16.msra.mxu1 %v5663_v23 }
 0x534   : > { %5665 = vmatprep.subr.bf16.mxu1 %v8981_v18 }
 0x537   : > { %5667 = vmatpush1.bf16.msra.mxu1 %v5666_v16 }
 0x538   : > { %5668 = vmatprep.subr.bf16.mxu1 %v8981_v18 }
 0x53b   : > { %5670 = vmatpush1.bf16.msra.mxu1 %v5669_v10 }
 0x53c   : > { %5671 = vmatprep.subr.bf16.mxu1 %v8981_v18 }
 0x53f   : > { %5673 = vmatpush1.bf16.msra.mxu1 %v5672_v26 }
 0x540   : > { %5674 = vmatprep.subr.bf16.mxu1 %v8981_v18 }
 0x543   : > { %5676 = vmatpush1.bf16.msra.mxu1 %v5675_v47 }
 0x544   : > { %5677 = vmatprep.subr.bf16.mxu1 %v8981_v18 }
 0x547   : > { %5679 = vmatpush1.bf16.msra.mxu1 %v5678_v30 }
 0x548   : > { %5680 = vmatprep.subr.bf16.mxu1 %v8981_v18  ;;  %v4426_v18 = vld [vmem:[%s8888_s6] ss:$0 sm:$0xff] }
 0x54b   : > { %5682 = vmatpush1.bf16.msra.mxu1 %v5681_v29 }
 0x54e   : > { %3970 = vmatmul.mubr.f32.vlgmr.msra.gmra.mrb[48].mxu1 %v3374_v53 }
 0x621   : > { %v3971_v48 = vpop.f32.mrb[48].mxu1 }
 0x622   : > { %v5755_v6 = vadd.f32 %v4426_v18, %v3971_v48  ;;  %v3973_v19 = vpop.f32.mrb[49].mxu1 }
 0x624   : > { %v3976_v25 = vmax.f32 %v5755_v6, 0.0 }
 0x626   : > { %4785 = vmatmul.mubr.f32.vlgmr.msra.gmra.mrb[84].mxu0 %v3976_v25 }
 0x6f9   : > { %v4066_v5 = vpop.f32.mrb[84].mxu0 }
 0x6fa   : > { %v4067_v42 = vadd.f32 %v4552_v56, %v4066_v5  ;;  %v4786_v41 = vpop.f32.mrb[85].mxu0 }
 0x6fc   : > { %4070 = vst [vmem:[%s330_s19] sm:$0xff] %v4067_v42 }
 0x6fd PF: > { %s19_s30 = sadd.s32 1, %s5885_s30  }
 0x6fe   : > { %p16_p4 = scmp.ge.s32.totalorder %s19_s30, 4  }
 0x700   :  { %18 = sbr.rel (!%p16_p4) target bundleno = 1 (0x1), region = 96 }

</bundles_post_ra>
